<compile_context>
chip_gen: v7x
topology: tpu7x:2x2x1
jax: 0.10.0
libtpu: 0.0.40
codegen_flags: <defaults>
</compile_context>

<pallas_src>
import functools

import jax
import jax.numpy as jnp
from jax import lax
from jax.experimental import pallas as pl
from jax.experimental.pallas import tpu as pltpu

BN_EPS = 1e-5  # torch.nn.BatchNorm1d default


def _pick_tile_n(N):
    """Point-axis tile: a multiple of 128 (lane aligned) when possible, else all of N."""
    if N % 128 == 0:
        for cand in (1024, 512, 256, 128):
            if N % cand == 0:
                return cand
    return N


def _stnkd_kernel(B, N,
                  x_ref,
                  w1_ref, g1_ref, be1_ref,
                  w2_ref, g2_ref, be2_ref,
                  w3_ref, g3_ref, be3_ref,
                  fw1_ref, g4_ref, be4_ref,
                  fw2_ref, g5_ref, be5_ref,
                  fw3_ref, b3i_ref,
                  out_ref,
                  s1, q1, s2, q2, s3, q3, pooled):
    p = pl.program_id(0)          # phase 0..3
    b = pl.program_id(1)          # batch element
    t = pl.program_id(2)          # point-tile within the batch element
    nt = pl.num_programs(2)
    first = (b == 0) & (t == 0)
    inv_cnt = 1.0 / float(B * N)  # count behind the conv-layer BN statistics

    x = x_ref[...]                # (K, TILE_N), channel-first, lane-dense

    def bn_cols(h, s_ref, q_ref, g_ref, be_ref):
        # Per-channel training-mode BN from accumulated sum / sum-of-squares over
        # all B*N points (biased variance, matching torch's normalization).
        mean = s_ref[...] * inv_cnt                         # (C, 1)
        var = q_ref[...] * inv_cnt - mean * mean
        return g_ref[...] * (h - mean) * lax.rsqrt(var + BN_EPS) + be_ref[...]

    # Conv biases are omitted: they are cancelled exactly by the BN mean subtraction.
    def conv1():
        return jnp.dot(w1_ref[...], x, preferred_element_type=jnp.float32)       # (12, T)

    def act1():
        return jnp.maximum(bn_cols(conv1(), s1, q1, g1_ref, be1_ref), 0.0)

    def conv2():
        return jnp.dot(w2_ref[...], act1(), preferred_element_type=jnp.float32)  # (24, T)

    def act2():
        return jnp.maximum(bn_cols(conv2(), s2, q2, g2_ref, be2_ref), 0.0)

    def conv3():
        return jnp.dot(w3_ref[...], act2(), preferred_element_type=jnp.float32)  # (192, T)

    def accumulate(h, s_ref, q_ref):
        s_ref[...] += jnp.sum(h, axis=1, keepdims=True)
        q_ref[...] += jnp.sum(h * h, axis=1, keepdims=True)

    # ---- phase 0: bn1 statistics --------------------------------------------
    @pl.when(p == 0)
    def _phase0():
        @pl.when(first)
        def _():
            s1[...] = jnp.zeros(s1.shape, jnp.float32)
            q1[...] = jnp.zeros(q1.shape, jnp.float32)
        accumulate(conv1(), s1, q1)

    # ---- phase 1: bn2 statistics --------------------------------------------
    @pl.when(p == 1)
    def _phase1():
        @pl.when(first)
        def _():
            s2[...] = jnp.zeros(s2.shape, jnp.float32)
            q2[...] = jnp.zeros(q2.shape, jnp.float32)
        accumulate(conv2(), s2, q2)

    # ---- phase 2: bn3 statistics --------------------------------------------
    @pl.when(p == 2)
    def _phase2():
        @pl.when(first)
        def _():
            s3[...] = jnp.zeros(s3.shape, jnp.float32)
            q3[...] = jnp.zeros(q3.shape, jnp.float32)
        accumulate(conv3(), s3, q3)

    # ---- phase 3: full conv stack, per-batch max-pool, fc head --------------
    @pl.when(p == 3)
    def _phase3():
        @pl.when(first)
        def _():
            pooled[...] = jnp.full(pooled.shape, -jnp.inf, jnp.float32)

        a3 = jnp.maximum(bn_cols(conv3(), s3, q3, g3_ref, be3_ref), 0.0)  # (192, T)
        tile_max = jnp.max(a3, axis=1, keepdims=True)                     # (192, 1)
        # Running per-batch max without dynamic-index stores: mask on the batch lane.
        col_ids = lax.broadcasted_iota(jnp.int32, pooled.shape, 1)        # (192, B)
        cur = pooled[...]
        pooled[...] = jnp.where(col_ids == b, jnp.maximum(cur, tile_max), cur)

        @pl.when((b == B - 1) & (t == nt - 1))
        def _fc_head():
            def bn_over_batch(h, g_ref, be_ref):
                # fc-head BN: statistics over the batch lanes (count = B).
                mean = jnp.mean(h, axis=1, keepdims=True)
                var = jnp.mean((h - mean) ** 2, axis=1, keepdims=True)
                return g_ref[...] * (h - mean) * lax.rsqrt(var + BN_EPS) + be_ref[...]

            pc = pooled[...]                                                        # (192, B)
            f = jnp.dot(fw1_ref[...], pc, preferred_element_type=jnp.float32)       # (96, B)
            f = jnp.maximum(bn_over_batch(f, g4_ref, be4_ref), 0.0)
            f = jnp.dot(fw2_ref[...], f, preferred_element_type=jnp.float32)        # (48, B)
            f = jnp.maximum(bn_over_batch(f, g5_ref, be5_ref), 0.0)
            f = jnp.dot(fw3_ref[...], f, preferred_element_type=jnp.float32)        # (K*K, B)
            out_ref[...] = f + b3i_ref[...]                                          # fc3 bias + identity


def stnkd_forward(x, params):
    """x: (B, k, N) float32, same axis convention as the PyTorch Conv1d input."""
    B, K, N = x.shape
    (w1, b1, g1, be1, w2, b2, g2, be2, w3, b3, g3, be3,
     fw1, fb1, g4, be4, fw2, fb2, g5, be5, fw3, fb3) = params
    del b1, b2, b3, fb1, fb2  # cancelled exactly by the following training-mode BN

    TILE_N = _pick_tile_n(N)
    NT = N // TILE_N
    kk = K * K

    col = lambda v: v.reshape(-1, 1).astype(jnp.float32)   # per-channel params as columns
    b3_plus_iden = fb3.reshape(-1, 1) + jnp.eye(K, dtype=jnp.float32).reshape(-1, 1)

    args = (x,
            w1, col(g1), col(be1),
            w2, col(g2), col(be2),
            w3, col(g3), col(be3),
            fw1, col(g4), col(be4),
            fw2, col(g5), col(be5),
            fw3, b3_plus_iden)

    def full_block(a):  # small 2-D params: whole-array block, fetched once (constant index)
        return pl.BlockSpec(a.shape, lambda p, b, t: (0, 0))

    in_specs = [pl.BlockSpec((None, K, TILE_N), lambda p, b, t: (b, 0, t))]
    in_specs += [full_block(a) for a in args[1:]]

    # Advisory cost hint: conv1 is evaluated in 4 phases, conv2 in 3, conv3 in 2.
    cost = pl.CostEstimate(
        flops=int(2 * B * N * (4 * K * 12 + 3 * 12 * 24 + 2 * 24 * 192)
                  + 2 * B * (192 * 96 + 96 * 48 + 48 * kk)),
        transcendentals=int(3 * B * NT * (12 + 24 + 192) + 96 + 48),
        bytes_accessed=int(4 * x.size * 4 + sum(a.size * 4 for a in args[1:]) + kk * B * 4))

    out = pl.pallas_call(
        functools.partial(_stnkd_kernel, B, N),
        grid=(4, B, NT),
        in_specs=in_specs,
        out_specs=pl.BlockSpec((kk, B), lambda p, b, t: (0, 0)),
        out_shape=jax.ShapeDtypeStruct((kk, B), jnp.float32),
        scratch_shapes=[
            pltpu.VMEM((12, 1), jnp.float32), pltpu.VMEM((12, 1), jnp.float32),
            pltpu.VMEM((24, 1), jnp.float32), pltpu.VMEM((24, 1), jnp.float32),
            pltpu.VMEM((192, 1), jnp.float32), pltpu.VMEM((192, 1), jnp.float32),
            pltpu.VMEM((192, B), jnp.float32),
        ],
        # All axes are sequential: BN statistics / pooled-max scratch carry across
        # every grid axis (exact training-mode BN, not folded inference stats).
        compiler_params=pltpu.CompilerParams(
            dimension_semantics=("arbitrary", "arbitrary", "arbitrary")),
        cost_estimate=cost,
    )(*args)

    return out.T.reshape(B, K, K)


def _reference(x, params):
    """Pure-JAX mirror of the torch module (training-mode BN), for a sanity check."""
    (w1, b1, g1, be1, w2, b2, g2, be2, w3, b3, g3, be3,
     fw1, fb1, g4, be4, fw2, fb2, g5, be5, fw3, fb3) = params
    B, K, N = x.shape

    def bn(h, g, be):
        m = jnp.mean(h, axis=0, keepdims=True)
        v = jnp.mean((h - m) ** 2, axis=0, keepdims=True)
        return g * (h - m) / jnp.sqrt(v + BN_EPS) + be

    h = jnp.transpose(x, (0, 2, 1)).reshape(B * N, K)
    h = jnp.maximum(bn(h @ w1.T + b1, g1, be1), 0.0)
    h = jnp.maximum(bn(h @ w2.T + b2, g2, be2), 0.0)
    h = jnp.maximum(bn(h @ w3.T + b3, g3, be3), 0.0)
    pooled = jnp.max(h.reshape(B, N, 192), axis=1)
    f = jnp.maximum(bn(pooled @ fw1.T + fb1, g4, be4), 0.0)
    f = jnp.maximum(bn(f @ fw2.T + fb2, g5, be5), 0.0)
    f = f @ fw3.T + fb3 + jnp.eye(K, dtype=jnp.float32).reshape(1, K * K)
    return f.reshape(B, K, K)


if __name__ == "__main__":
    K, B, N = 5, 2, 16
    key = jax.random.PRNGKey(0)
    ks = jax.random.split(key, 23)

    def w(i, shape, scale=0.1):
        return scale * jax.random.normal(ks[i], shape, dtype=jnp.float32)

    # Deterministic synthetic parameters (same shapes as the torch module's).
    params = (
        w(0, (12, K)),    w(1, (12,)),    1.0 + w(2, (12,)),   w(3, (12,)),    # conv1 / bn1
        w(4, (24, 12)),   w(5, (24,)),    1.0 + w(6, (24,)),   w(7, (24,)),    # conv2 / bn2
        w(8, (192, 24)),  w(9, (192,)),   1.0 + w(10, (192,)), w(11, (192,)),  # conv3 / bn3
        w(12, (96, 192)), w(13, (96,)),   1.0 + w(14, (96,)),  w(15, (96,)),   # fc1 / bn4
        w(16, (48, 96)),  w(17, (48,)),   1.0 + w(18, (48,)),  w(19, (48,)),   # fc2 / bn5
        w(20, (K * K, 48)), w(21, (K * K,)),                                   # fc3
    )

    x = jax.random.normal(ks[22], (B, K, N), dtype=jnp.float32)

    out = stnkd_forward(x, params)
    jax.block_until_ready(out)
    assert out.shape == (B, K, K) and out.dtype == jnp.float32

    ref = _reference(x, params)
    err = float(jnp.max(jnp.abs(out - ref)))
    assert err < 1e-3, f"mismatch vs reference: max abs err = {err}"

    print("KERNEL_OK")
</pallas_src>

<mosaic_0001>
module attributes {stable_mosaic.version = 11 : i64} {
  func.func @_stnkd_kernel(%arg0: i32, %arg1: i32, %arg2: i32, %arg3: memref<1x5x16xf32, #tpu.memory_space<vmem>>, %arg4: memref<12x5xf32, #tpu.memory_space<vmem>>, %arg5: memref<12x1xf32, #tpu.memory_space<vmem>>, %arg6: memref<12x1xf32, #tpu.memory_space<vmem>>, %arg7: memref<24x12xf32, #tpu.memory_space<vmem>>, %arg8: memref<24x1xf32, #tpu.memory_space<vmem>>, %arg9: memref<24x1xf32, #tpu.memory_space<vmem>>, %arg10: memref<192x24xf32, #tpu.memory_space<vmem>>, %arg11: memref<192x1xf32, #tpu.memory_space<vmem>>, %arg12: memref<192x1xf32, #tpu.memory_space<vmem>>, %arg13: memref<96x192xf32, #tpu.memory_space<vmem>>, %arg14: memref<96x1xf32, #tpu.memory_space<vmem>>, %arg15: memref<96x1xf32, #tpu.memory_space<vmem>>, %arg16: memref<48x96xf32, #tpu.memory_space<vmem>>, %arg17: memref<48x1xf32, #tpu.memory_space<vmem>>, %arg18: memref<48x1xf32, #tpu.memory_space<vmem>>, %arg19: memref<25x48xf32, #tpu.memory_space<vmem>>, %arg20: memref<25x1xf32, #tpu.memory_space<vmem>>, %arg21: memref<25x2xf32, #tpu.memory_space<vmem>>, %arg22: memref<12x1xf32, #tpu.memory_space<vmem>>, %arg23: memref<12x1xf32, #tpu.memory_space<vmem>>, %arg24: memref<24x1xf32, #tpu.memory_space<vmem>>, %arg25: memref<24x1xf32, #tpu.memory_space<vmem>>, %arg26: memref<192x1xf32, #tpu.memory_space<vmem>>, %arg27: memref<192x1xf32, #tpu.memory_space<vmem>>, %arg28: memref<192x2xf32, #tpu.memory_space<vmem>>) attributes {dimension_semantics = [#tpu.dimension_semantics<arbitrary>, #tpu.dimension_semantics<arbitrary>, #tpu.dimension_semantics<arbitrary>], iteration_bounds = array<i64: 4, 2, 1>, scalar_prefetch = 0 : i64, scratch_operands = 7 : i64, tpu.core_type = #tpu.core_type<tc>, window_params = [{transform_indices = @transform_0, window_bounds = array<i64: 1, 5, 16>}, {pipeline_mode = #tpu.pipeline_mode<synchronous>, transform_indices = @transform_1, window_bounds = array<i64: 12, 5>}, {pipeline_mode = #tpu.pipeline_mode<synchronous>, transform_indices = @transform_2, window_bounds = array<i64: 12, 1>}, {pipeline_mode = #tpu.pipeline_mode<synchronous>, transform_indices = @transform_3, window_bounds = array<i64: 12, 1>}, {pipeline_mode = #tpu.pipeline_mode<synchronous>, transform_indices = @transform_4, window_bounds = array<i64: 24, 12>}, {pipeline_mode = #tpu.pipeline_mode<synchronous>, transform_indices = @transform_5, window_bounds = array<i64: 24, 1>}, {pipeline_mode = #tpu.pipeline_mode<synchronous>, transform_indices = @transform_6, window_bounds = array<i64: 24, 1>}, {pipeline_mode = #tpu.pipeline_mode<synchronous>, transform_indices = @transform_7, window_bounds = array<i64: 192, 24>}, {pipeline_mode = #tpu.pipeline_mode<synchronous>, transform_indices = @transform_8, window_bounds = array<i64: 192, 1>}, {pipeline_mode = #tpu.pipeline_mode<synchronous>, transform_indices = @transform_9, window_bounds = array<i64: 192, 1>}, {pipeline_mode = #tpu.pipeline_mode<synchronous>, transform_indices = @transform_10, window_bounds = array<i64: 96, 192>}, {pipeline_mode = #tpu.pipeline_mode<synchronous>, transform_indices = @transform_11, window_bounds = array<i64: 96, 1>}, {pipeline_mode = #tpu.pipeline_mode<synchronous>, transform_indices = @transform_12, window_bounds = array<i64: 96, 1>}, {pipeline_mode = #tpu.pipeline_mode<synchronous>, transform_indices = @transform_13, window_bounds = array<i64: 48, 96>}, {pipeline_mode = #tpu.pipeline_mode<synchronous>, transform_indices = @transform_14, window_bounds = array<i64: 48, 1>}, {pipeline_mode = #tpu.pipeline_mode<synchronous>, transform_indices = @transform_15, window_bounds = array<i64: 48, 1>}, {pipeline_mode = #tpu.pipeline_mode<synchronous>, transform_indices = @transform_16, window_bounds = array<i64: 25, 48>}, {pipeline_mode = #tpu.pipeline_mode<synchronous>, transform_indices = @transform_17, window_bounds = array<i64: 25, 1>}, {pipeline_mode = #tpu.pipeline_mode<synchronous>, transform_indices = @transform_18, window_bounds = array<i64: 25, 2>}]} {
    %c0_i32 = arith.constant 0 : i32
    %0 = arith.cmpi eq, %arg1, %c0_i32 : i32
    %c0_i32_0 = arith.constant 0 : i32
    %1 = arith.cmpi eq, %arg2, %c0_i32_0 : i32
    %2 = arith.andi %0, %1 : i1
    %c0 = arith.constant 0 : index
    %c0_1 = arith.constant 0 : index
    %c0_2 = arith.constant 0 : index
    %3 = vector.load %arg3[%c0, %c0_1, %c0_2] : memref<1x5x16xf32, #tpu.memory_space<vmem>>, vector<1x5x16xf32>
    %4 = vector.shape_cast %3 : vector<1x5x16xf32> to vector<5x16xf32>
    %c0_i32_3 = arith.constant 0 : i32
    %5 = arith.cmpi eq, %arg0, %c0_i32_3 : i32
    %6 = arith.extui %5 : i1 to i32
    %c0_i32_4 = arith.constant 0 : i32
    %7 = arith.cmpi ne, %6, %c0_i32_4 : i32
    scf.if %7 {
      %17 = arith.extui %2 : i1 to i32
      %c0_i32_8 = arith.constant 0 : i32
      %18 = arith.cmpi ne, %17, %c0_i32_8 : i32
      scf.if %18 {
        %cst_21 = arith.constant 0.000000e+00 : f32
        %32 = vector.broadcast %cst_21 : f32 to vector<12x1xf32>
        %c0_22 = arith.constant 0 : index
        %c0_23 = arith.constant 0 : index
        %33 = vector.load %arg22[%c0_22, %c0_23] : memref<12x1xf32, #tpu.memory_space<vmem>>, vector<12x1xf32>
        tpu.vector_store %arg22[%c0_22, %c0_23], %32 {strides = array<i32>} : memref<12x1xf32, #tpu.memory_space<vmem>>, vector<12x1xf32>,
        %cst_24 = arith.constant 0.000000e+00 : f32
        %34 = vector.broadcast %cst_24 : f32 to vector<12x1xf32>
        %c0_25 = arith.constant 0 : index
        %c0_26 = arith.constant 0 : index
        %35 = vector.load %arg23[%c0_25, %c0_26] : memref<12x1xf32, #tpu.memory_space<vmem>>, vector<12x1xf32>
        tpu.vector_store %arg23[%c0_25, %c0_26], %34 {strides = array<i32>} : memref<12x1xf32, #tpu.memory_space<vmem>>, vector<12x1xf32>,
      } else {
      }
      %c0_9 = arith.constant 0 : index
      %c0_10 = arith.constant 0 : index
      %19 = vector.load %arg4[%c0_9, %c0_10] : memref<12x5xf32, #tpu.memory_space<vmem>>, vector<12x5xf32>
      %cst = arith.constant dense<0.000000e+00> : vector<12x16xf32>
      %20 = tpu.matmul %19, %4, %cst {dimension_numbers = #tpu.dot_dimension_numbers<[1], [0], [0], [1], [0, 0, 1, 1], [], []>} : vector<12x5xf32>, vector<5x16xf32>, vector<12x16xf32> -> vector<12x16xf32>
      %c0_11 = arith.constant 0 : index
      %c0_12 = arith.constant 0 : index
      %21 = vector.load %arg22[%c0_11, %c0_12] : memref<12x1xf32, #tpu.memory_space<vmem>>, vector<12x1xf32>
      %cst_13 = arith.constant dense<0.000000e+00> : vector<12xf32>
      %22 = vector.multi_reduction <add>, %20, %cst_13 [1] : vector<12x16xf32> to vector<12xf32>
      %23 = vector.shape_cast %22 : vector<12xf32> to vector<12x1xf32>
      %24 = arith.addf %21, %23 : vector<12x1xf32>
      %c0_14 = arith.constant 0 : index
      %c0_15 = arith.constant 0 : index
      %25 = vector.load %arg22[%c0_14, %c0_15] : memref<12x1xf32, #tpu.memory_space<vmem>>, vector<12x1xf32>
      tpu.vector_store %arg22[%c0_14, %c0_15], %24 {strides = array<i32>} : memref<12x1xf32, #tpu.memory_space<vmem>>, vector<12x1xf32>,
      %c0_16 = arith.constant 0 : index
      %c0_17 = arith.constant 0 : index
      %26 = vector.load %arg23[%c0_16, %c0_17] : memref<12x1xf32, #tpu.memory_space<vmem>>, vector<12x1xf32>
      %27 = arith.mulf %20, %20 : vector<12x16xf32>
      %cst_18 = arith.constant dense<0.000000e+00> : vector<12xf32>
      %28 = vector.multi_reduction <add>, %27, %cst_18 [1] : vector<12x16xf32> to vector<12xf32>
      %29 = vector.shape_cast %28 : vector<12xf32> to vector<12x1xf32>
      %30 = arith.addf %26, %29 : vector<12x1xf32>
      %c0_19 = arith.constant 0 : index
      %c0_20 = arith.constant 0 : index
      %31 = vector.load %arg23[%c0_19, %c0_20] : memref<12x1xf32, #tpu.memory_space<vmem>>, vector<12x1xf32>
      tpu.vector_store %arg23[%c0_19, %c0_20], %30 {strides = array<i32>} : memref<12x1xf32, #tpu.memory_space<vmem>>, vector<12x1xf32>,
    } else {
    }
    %c1_i32 = arith.constant 1 : i32
    %8 = arith.cmpi eq, %arg0, %c1_i32 : i32
    %9 = arith.extui %8 : i1 to i32
    %c0_i32_5 = arith.constant 0 : i32
    %10 = arith.cmpi ne, %9, %c0_i32_5 : i32
    scf.if %10 {
      %17 = arith.extui %2 : i1 to i32
      %c0_i32_8 = arith.constant 0 : i32
      %18 = arith.cmpi ne, %17, %c0_i32_8 : i32
      scf.if %18 {
        %cst_36 = arith.constant 0.000000e+00 : f32
        %57 = vector.broadcast %cst_36 : f32 to vector<24x1xf32>
        %c0_37 = arith.constant 0 : index
        %c0_38 = arith.constant 0 : index
        %58 = vector.load %arg24[%c0_37, %c0_38] : memref<24x1xf32, #tpu.memory_space<vmem>>, vector<24x1xf32>
        tpu.vector_store %arg24[%c0_37, %c0_38], %57 {strides = array<i32>} : memref<24x1xf32, #tpu.memory_space<vmem>>, vector<24x1xf32>,
        %cst_39 = arith.constant 0.000000e+00 : f32
        %59 = vector.broadcast %cst_39 : f32 to vector<24x1xf32>
        %c0_40 = arith.constant 0 : index
        %c0_41 = arith.constant 0 : index
        %60 = vector.load %arg25[%c0_40, %c0_41] : memref<24x1xf32, #tpu.memory_space<vmem>>, vector<24x1xf32>
        tpu.vector_store %arg25[%c0_40, %c0_41], %59 {strides = array<i32>} : memref<24x1xf32, #tpu.memory_space<vmem>>, vector<24x1xf32>,
      } else {
      }
      %c0_9 = arith.constant 0 : index
      %c0_10 = arith.constant 0 : index
      %19 = vector.load %arg7[%c0_9, %c0_10] : memref<24x12xf32, #tpu.memory_space<vmem>>, vector<24x12xf32>
      %c0_11 = arith.constant 0 : index
      %c0_12 = arith.constant 0 : index
      %20 = vector.load %arg4[%c0_11, %c0_12] : memref<12x5xf32, #tpu.memory_space<vmem>>, vector<12x5xf32>
      %cst = arith.constant dense<0.000000e+00> : vector<12x16xf32>
      %21 = tpu.matmul %20, %4, %cst {dimension_numbers = #tpu.dot_dimension_numbers<[1], [0], [0], [1], [0, 0, 1, 1], [], []>} : vector<12x5xf32>, vector<5x16xf32>, vector<12x16xf32> -> vector<12x16xf32>
      %c0_13 = arith.constant 0 : index
      %c0_14 = arith.constant 0 : index
      %22 = vector.load %arg22[%c0_13, %c0_14] : memref<12x1xf32, #tpu.memory_space<vmem>>, vector<12x1xf32>
      %cst_15 = arith.constant 3.125000e-02 : f32
      %23 = vector.broadcast %cst_15 : f32 to vector<12x1xf32>
      %24 = arith.mulf %22, %23 : vector<12x1xf32>
      %c0_16 = arith.constant 0 : index
      %c0_17 = arith.constant 0 : index
      %25 = vector.load %arg23[%c0_16, %c0_17] : memref<12x1xf32, #tpu.memory_space<vmem>>, vector<12x1xf32>
      %cst_18 = arith.constant 3.125000e-02 : f32
      %26 = vector.broadcast %cst_18 : f32 to vector<12x1xf32>
      %27 = arith.mulf %25, %26 : vector<12x1xf32>
      %28 = arith.mulf %24, %24 : vector<12x1xf32>
      %29 = arith.subf %27, %28 : vector<12x1xf32>
      %c0_19 = arith.constant 0 : index
      %c0_20 = arith.constant 0 : index
      %30 = vector.load %arg5[%c0_19, %c0_20] : memref<12x1xf32, #tpu.memory_space<vmem>>, vector<12x1xf32>
      %31 = vector.broadcast %24 : vector<12x1xf32> to vector<12x16xf32>
      %32 = arith.subf %21, %31 : vector<12x16xf32>
      %33 = vector.broadcast %30 : vector<12x1xf32> to vector<12x16xf32>
      %34 = arith.mulf %33, %32 : vector<12x16xf32>
      %cst_21 = arith.constant 9.99999974E-6 : f32
      %35 = vector.broadcast %cst_21 : f32 to vector<12x1xf32>
      %36 = arith.addf %29, %35 : vector<12x1xf32>
      %37 = math.rsqrt %36 : vector<12x1xf32>
      %38 = vector.broadcast %37 : vector<12x1xf32> to vector<12x16xf32>
      %39 = arith.mulf %34, %38 : vector<12x16xf32>
      %c0_22 = arith.constant 0 : index
      %c0_23 = arith.constant 0 : index
      %40 = vector.load %arg6[%c0_22, %c0_23] : memref<12x1xf32, #tpu.memory_space<vmem>>, vector<12x1xf32>
      %41 = vector.broadcast %40 : vector<12x1xf32> to vector<12x16xf32>
      %42 = arith.addf %39, %41 : vector<12x16xf32>
      %cst_24 = arith.constant 0.000000e+00 : f32
      %43 = vector.broadcast %cst_24 : f32 to vector<12x16xf32>
      %44 = arith.maximumf %42, %43 : vector<12x16xf32>
      %cst_25 = arith.constant dense<0.000000e+00> : vector<24x16xf32>
      %45 = tpu.matmul %19, %44, %cst_25 {dimension_numbers = #tpu.dot_dimension_numbers<[1], [0], [0], [1], [0, 0, 1, 1], [], []>} : vector<24x12xf32>, vector<12x16xf32>, vector<24x16xf32> -> vector<24x16xf32>
      %c0_26 = arith.constant 0 : index
      %c0_27 = arith.constant 0 : index
      %46 = vector.load %arg24[%c0_26, %c0_27] : memref<24x1xf32, #tpu.memory_space<vmem>>, vector<24x1xf32>
      %cst_28 = arith.constant dense<0.000000e+00> : vector<24xf32>
      %47 = vector.multi_reduction <add>, %45, %cst_28 [1] : vector<24x16xf32> to vector<24xf32>
      %48 = vector.shape_cast %47 : vector<24xf32> to vector<24x1xf32>
      %49 = arith.addf %46, %48 : vector<24x1xf32>
      %c0_29 = arith.constant 0 : index
      %c0_30 = arith.constant 0 : index
      %50 = vector.load %arg24[%c0_29, %c0_30] : memref<24x1xf32, #tpu.memory_space<vmem>>, vector<24x1xf32>
      tpu.vector_store %arg24[%c0_29, %c0_30], %49 {strides = array<i32>} : memref<24x1xf32, #tpu.memory_space<vmem>>, vector<24x1xf32>,
      %c0_31 = arith.constant 0 : index
      %c0_32 = arith.constant 0 : index
      %51 = vector.load %arg25[%c0_31, %c0_32] : memref<24x1xf32, #tpu.memory_space<vmem>>, vector<24x1xf32>
      %52 = arith.mulf %45, %45 : vector<24x16xf32>
      %cst_33 = arith.constant dense<0.000000e+00> : vector<24xf32>
      %53 = vector.multi_reduction <add>, %52, %cst_33 [1] : vector<24x16xf32> to vector<24xf32>
      %54 = vector.shape_cast %53 : vector<24xf32> to vector<24x1xf32>
      %55 = arith.addf %51, %54 : vector<24x1xf32>
      %c0_34 = arith.constant 0 : index
      %c0_35 = arith.constant 0 : index
      %56 = vector.load %arg25[%c0_34, %c0_35] : memref<24x1xf32, #tpu.memory_space<vmem>>, vector<24x1xf32>
      tpu.vector_store %arg25[%c0_34, %c0_35], %55 {strides = array<i32>} : memref<24x1xf32, #tpu.memory_space<vmem>>, vector<24x1xf32>,
    } else {
    }
    %c2_i32 = arith.constant 2 : i32
    %11 = arith.cmpi eq, %arg0, %c2_i32 : i32
    %12 = arith.extui %11 : i1 to i32
    %c0_i32_6 = arith.constant 0 : i32
    %13 = arith.cmpi ne, %12, %c0_i32_6 : i32
    scf.if %13 {
      %17 = arith.extui %2 : i1 to i32
      %c0_i32_8 = arith.constant 0 : i32
      %18 = arith.cmpi ne, %17, %c0_i32_8 : i32
      scf.if %18 {
        %cst_51 = arith.constant 0.000000e+00 : f32
        %82 = vector.broadcast %cst_51 : f32 to vector<192x1xf32>
        %c0_52 = arith.constant 0 : index
        %c0_53 = arith.constant 0 : index
        %83 = vector.load %arg26[%c0_52, %c0_53] : memref<192x1xf32, #tpu.memory_space<vmem>>, vector<192x1xf32>
        tpu.vector_store %arg26[%c0_52, %c0_53], %82 {strides = array<i32>} : memref<192x1xf32, #tpu.memory_space<vmem>>, vector<192x1xf32>,
        %cst_54 = arith.constant 0.000000e+00 : f32
        %84 = vector.broadcast %cst_54 : f32 to vector<192x1xf32>
        %c0_55 = arith.constant 0 : index
        %c0_56 = arith.constant 0 : index
        %85 = vector.load %arg27[%c0_55, %c0_56] : memref<192x1xf32, #tpu.memory_space<vmem>>, vector<192x1xf32>
        tpu.vector_store %arg27[%c0_55, %c0_56], %84 {strides = array<i32>} : memref<192x1xf32, #tpu.memory_space<vmem>>, vector<192x1xf32>,
      } else {
      }
      %c0_9 = arith.constant 0 : index
      %c0_10 = arith.constant 0 : index
      %19 = vector.load %arg10[%c0_9, %c0_10] : memref<192x24xf32, #tpu.memory_space<vmem>>, vector<192x24xf32>
      %c0_11 = arith.constant 0 : index
      %c0_12 = arith.constant 0 : index
      %20 = vector.load %arg7[%c0_11, %c0_12] : memref<24x12xf32, #tpu.memory_space<vmem>>, vector<24x12xf32>
      %c0_13 = arith.constant 0 : index
      %c0_14 = arith.constant 0 : index
      %21 = vector.load %arg4[%c0_13, %c0_14] : memref<12x5xf32, #tpu.memory_space<vmem>>, vector<12x5xf32>
      %cst = arith.constant dense<0.000000e+00> : vector<12x16xf32>
      %22 = tpu.matmul %21, %4, %cst {dimension_numbers = #tpu.dot_dimension_numbers<[1], [0], [0], [1], [0, 0, 1, 1], [], []>} : vector<12x5xf32>, vector<5x16xf32>, vector<12x16xf32> -> vector<12x16xf32>
      %c0_15 = arith.constant 0 : index
      %c0_16 = arith.constant 0 : index
      %23 = vector.load %arg22[%c0_15, %c0_16] : memref<12x1xf32, #tpu.memory_space<vmem>>, vector<12x1xf32>
      %cst_17 = arith.constant 3.125000e-02 : f32
      %24 = vector.broadcast %cst_17 : f32 to vector<12x1xf32>
      %25 = arith.mulf %23, %24 : vector<12x1xf32>
      %c0_18 = arith.constant 0 : index
      %c0_19 = arith.constant 0 : index
      %26 = vector.load %arg23[%c0_18, %c0_19] : memref<12x1xf32, #tpu.memory_space<vmem>>, vector<12x1xf32>
      %cst_20 = arith.constant 3.125000e-02 : f32
      %27 = vector.broadcast %cst_20 : f32 to vector<12x1xf32>
      %28 = arith.mulf %26, %27 : vector<12x1xf32>
      %29 = arith.mulf %25, %25 : vector<12x1xf32>
      %30 = arith.subf %28, %29 : vector<12x1xf32>
      %c0_21 = arith.constant 0 : index
      %c0_22 = arith.constant 0 : index
      %31 = vector.load %arg5[%c0_21, %c0_22] : memref<12x1xf32, #tpu.memory_space<vmem>>, vector<12x1xf32>
      %32 = vector.broadcast %25 : vector<12x1xf32> to vector<12x16xf32>
      %33 = arith.subf %22, %32 : vector<12x16xf32>
      %34 = vector.broadcast %31 : vector<12x1xf32> to vector<12x16xf32>
      %35 = arith.mulf %34, %33 : vector<12x16xf32>
      %cst_23 = arith.constant 9.99999974E-6 : f32
      %36 = vector.broadcast %cst_23 : f32 to vector<12x1xf32>
      %37 = arith.addf %30, %36 : vector<12x1xf32>
      %38 = math.rsqrt %37 : vector<12x1xf32>
      %39 = vector.broadcast %38 : vector<12x1xf32> to vector<12x16xf32>
      %40 = arith.mulf %35, %39 : vector<12x16xf32>
      %c0_24 = arith.constant 0 : index
      %c0_25 = arith.constant 0 : index
      %41 = vector.load %arg6[%c0_24, %c0_25] : memref<12x1xf32, #tpu.memory_space<vmem>>, vector<12x1xf32>
      %42 = vector.broadcast %41 : vector<12x1xf32> to vector<12x16xf32>
      %43 = arith.addf %40, %42 : vector<12x16xf32>
      %cst_26 = arith.constant 0.000000e+00 : f32
      %44 = vector.broadcast %cst_26 : f32 to vector<12x16xf32>
      %45 = arith.maximumf %43, %44 : vector<12x16xf32>
      %cst_27 = arith.constant dense<0.000000e+00> : vector<24x16xf32>
      %46 = tpu.matmul %20, %45, %cst_27 {dimension_numbers = #tpu.dot_dimension_numbers<[1], [0], [0], [1], [0, 0, 1, 1], [], []>} : vector<24x12xf32>, vector<12x16xf32>, vector<24x16xf32> -> vector<24x16xf32>
      %c0_28 = arith.constant 0 : index
      %c0_29 = arith.constant 0 : index
      %47 = vector.load %arg24[%c0_28, %c0_29] : memref<24x1xf32, #tpu.memory_space<vmem>>, vector<24x1xf32>
      %cst_30 = arith.constant 3.125000e-02 : f32
      %48 = vector.broadcast %cst_30 : f32 to vector<24x1xf32>
      %49 = arith.mulf %47, %48 : vector<24x1xf32>
      %c0_31 = arith.constant 0 : index
      %c0_32 = arith.constant 0 : index
      %50 = vector.load %arg25[%c0_31, %c0_32] : memref<24x1xf32, #tpu.memory_space<vmem>>, vector<24x1xf32>
      %cst_33 = arith.constant 3.125000e-02 : f32
      %51 = vector.broadcast %cst_33 : f32 to vector<24x1xf32>
      %52 = arith.mulf %50, %51 : vector<24x1xf32>
      %53 = arith.mulf %49, %49 : vector<24x1xf32>
      %54 = arith.subf %52, %53 : vector<24x1xf32>
      %c0_34 = arith.constant 0 : index
      %c0_35 = arith.constant 0 : index
      %55 = vector.load %arg8[%c0_34, %c0_35] : memref<24x1xf32, #tpu.memory_space<vmem>>, vector<24x1xf32>
      %56 = vector.broadcast %49 : vector<24x1xf32> to vector<24x16xf32>
      %57 = arith.subf %46, %56 : vector<24x16xf32>
      %58 = vector.broadcast %55 : vector<24x1xf32> to vector<24x16xf32>
      %59 = arith.mulf %58, %57 : vector<24x16xf32>
      %cst_36 = arith.constant 9.99999974E-6 : f32
      %60 = vector.broadcast %cst_36 : f32 to vector<24x1xf32>
      %61 = arith.addf %54, %60 : vector<24x1xf32>
      %62 = math.rsqrt %61 : vector<24x1xf32>
      %63 = vector.broadcast %62 : vector<24x1xf32> to vector<24x16xf32>
      %64 = arith.mulf %59, %63 : vector<24x16xf32>
      %c0_37 = arith.constant 0 : index
      %c0_38 = arith.constant 0 : index
      %65 = vector.load %arg9[%c0_37, %c0_38] : memref<24x1xf32, #tpu.memory_space<vmem>>, vector<24x1xf32>
      %66 = vector.broadcast %65 : vector<24x1xf32> to vector<24x16xf32>
      %67 = arith.addf %64, %66 : vector<24x16xf32>
      %cst_39 = arith.constant 0.000000e+00 : f32
      %68 = vector.broadcast %cst_39 : f32 to vector<24x16xf32>
      %69 = arith.maximumf %67, %68 : vector<24x16xf32>
      %cst_40 = arith.constant dense<0.000000e+00> : vector<192x16xf32>
      %70 = tpu.matmul %19, %69, %cst_40 {dimension_numbers = #tpu.dot_dimension_numbers<[1], [0], [0], [1], [0, 0, 1, 1], [], []>} : vector<192x24xf32>, vector<24x16xf32>, vector<192x16xf32> -> vector<192x16xf32>
      %c0_41 = arith.constant 0 : index
      %c0_42 = arith.constant 0 : index
      %71 = vector.load %arg26[%c0_41, %c0_42] : memref<192x1xf32, #tpu.memory_space<vmem>>, vector<192x1xf32>
      %cst_43 = arith.constant dense<0.000000e+00> : vector<192xf32>
      %72 = vector.multi_reduction <add>, %70, %cst_43 [1] : vector<192x16xf32> to vector<192xf32>
      %73 = vector.shape_cast %72 : vector<192xf32> to vector<192x1xf32>
      %74 = arith.addf %71, %73 : vector<192x1xf32>
      %c0_44 = arith.constant 0 : index
      %c0_45 = arith.constant 0 : index
      %75 = vector.load %arg26[%c0_44, %c0_45] : memref<192x1xf32, #tpu.memory_space<vmem>>, vector<192x1xf32>
      tpu.vector_store %arg26[%c0_44, %c0_45], %74 {strides = array<i32>} : memref<192x1xf32, #tpu.memory_space<vmem>>, vector<192x1xf32>,
      %c0_46 = arith.constant 0 : index
      %c0_47 = arith.constant 0 : index
      %76 = vector.load %arg27[%c0_46, %c0_47] : memref<192x1xf32, #tpu.memory_space<vmem>>, vector<192x1xf32>
      %77 = arith.mulf %70, %70 : vector<192x16xf32>
      %cst_48 = arith.constant dense<0.000000e+00> : vector<192xf32>
      %78 = vector.multi_reduction <add>, %77, %cst_48 [1] : vector<192x16xf32> to vector<192xf32>
      %79 = vector.shape_cast %78 : vector<192xf32> to vector<192x1xf32>
      %80 = arith.addf %76, %79 : vector<192x1xf32>
      %c0_49 = arith.constant 0 : index
      %c0_50 = arith.constant 0 : index
      %81 = vector.load %arg27[%c0_49, %c0_50] : memref<192x1xf32, #tpu.memory_space<vmem>>, vector<192x1xf32>
      tpu.vector_store %arg27[%c0_49, %c0_50], %80 {strides = array<i32>} : memref<192x1xf32, #tpu.memory_space<vmem>>, vector<192x1xf32>,
    } else {
    }
    %c3_i32 = arith.constant 3 : i32
    %14 = arith.cmpi eq, %arg0, %c3_i32 : i32
    %15 = arith.extui %14 : i1 to i32
    %c0_i32_7 = arith.constant 0 : i32
    %16 = arith.cmpi ne, %15, %c0_i32_7 : i32
    scf.if %16 {
      %17 = arith.extui %2 : i1 to i32
      %c0_i32_8 = arith.constant 0 : i32
      %18 = arith.cmpi ne, %17, %c0_i32_8 : i32
      scf.if %18 {
        %cst_61 = arith.constant 0xFF800000 : f32
        %109 = vector.broadcast %cst_61 : f32 to vector<192x2xf32>
        %c0_62 = arith.constant 0 : index
        %c0_63 = arith.constant 0 : index
        %110 = vector.load %arg28[%c0_62, %c0_63] : memref<192x2xf32, #tpu.memory_space<vmem>>, vector<192x2xf32>
        tpu.vector_store %arg28[%c0_62, %c0_63], %109 {strides = array<i32>} : memref<192x2xf32, #tpu.memory_space<vmem>>, vector<192x2xf32>,
      } else {
      }
      %c0_9 = arith.constant 0 : index
      %c0_10 = arith.constant 0 : index
      %19 = vector.load %arg10[%c0_9, %c0_10] : memref<192x24xf32, #tpu.memory_space<vmem>>, vector<192x24xf32>
      %c0_11 = arith.constant 0 : index
      %c0_12 = arith.constant 0 : index
      %20 = vector.load %arg7[%c0_11, %c0_12] : memref<24x12xf32, #tpu.memory_space<vmem>>, vector<24x12xf32>
      %c0_13 = arith.constant 0 : index
      %c0_14 = arith.constant 0 : index
      %21 = vector.load %arg4[%c0_13, %c0_14] : memref<12x5xf32, #tpu.memory_space<vmem>>, vector<12x5xf32>
      %cst = arith.constant dense<0.000000e+00> : vector<12x16xf32>
      %22 = tpu.matmul %21, %4, %cst {dimension_numbers = #tpu.dot_dimension_numbers<[1], [0], [0], [1], [0, 0, 1, 1], [], []>} : vector<12x5xf32>, vector<5x16xf32>, vector<12x16xf32> -> vector<12x16xf32>
      %c0_15 = arith.constant 0 : index
      %c0_16 = arith.constant 0 : index
      %23 = vector.load %arg22[%c0_15, %c0_16] : memref<12x1xf32, #tpu.memory_space<vmem>>, vector<12x1xf32>
      %cst_17 = arith.constant 3.125000e-02 : f32
      %24 = vector.broadcast %cst_17 : f32 to vector<12x1xf32>
      %25 = arith.mulf %23, %24 : vector<12x1xf32>
      %c0_18 = arith.constant 0 : index
      %c0_19 = arith.constant 0 : index
      %26 = vector.load %arg23[%c0_18, %c0_19] : memref<12x1xf32, #tpu.memory_space<vmem>>, vector<12x1xf32>
      %cst_20 = arith.constant 3.125000e-02 : f32
      %27 = vector.broadcast %cst_20 : f32 to vector<12x1xf32>
      %28 = arith.mulf %26, %27 : vector<12x1xf32>
      %29 = arith.mulf %25, %25 : vector<12x1xf32>
      %30 = arith.subf %28, %29 : vector<12x1xf32>
      %c0_21 = arith.constant 0 : index
      %c0_22 = arith.constant 0 : index
      %31 = vector.load %arg5[%c0_21, %c0_22] : memref<12x1xf32, #tpu.memory_space<vmem>>, vector<12x1xf32>
      %32 = vector.broadcast %25 : vector<12x1xf32> to vector<12x16xf32>
      %33 = arith.subf %22, %32 : vector<12x16xf32>
      %34 = vector.broadcast %31 : vector<12x1xf32> to vector<12x16xf32>
      %35 = arith.mulf %34, %33 : vector<12x16xf32>
      %cst_23 = arith.constant 9.99999974E-6 : f32
      %36 = vector.broadcast %cst_23 : f32 to vector<12x1xf32>
      %37 = arith.addf %30, %36 : vector<12x1xf32>
      %38 = math.rsqrt %37 : vector<12x1xf32>
      %39 = vector.broadcast %38 : vector<12x1xf32> to vector<12x16xf32>
      %40 = arith.mulf %35, %39 : vector<12x16xf32>
      %c0_24 = arith.constant 0 : index
      %c0_25 = arith.constant 0 : index
      %41 = vector.load %arg6[%c0_24, %c0_25] : memref<12x1xf32, #tpu.memory_space<vmem>>, vector<12x1xf32>
      %42 = vector.broadcast %41 : vector<12x1xf32> to vector<12x16xf32>
      %43 = arith.addf %40, %42 : vector<12x16xf32>
      %cst_26 = arith.constant 0.000000e+00 : f32
      %44 = vector.broadcast %cst_26 : f32 to vector<12x16xf32>
      %45 = arith.maximumf %43, %44 : vector<12x16xf32>
      %cst_27 = arith.constant dense<0.000000e+00> : vector<24x16xf32>
      %46 = tpu.matmul %20, %45, %cst_27 {dimension_numbers = #tpu.dot_dimension_numbers<[1], [0], [0], [1], [0, 0, 1, 1], [], []>} : vector<24x12xf32>, vector<12x16xf32>, vector<24x16xf32> -> vector<24x16xf32>
      %c0_28 = arith.constant 0 : index
      %c0_29 = arith.constant 0 : index
      %47 = vector.load %arg24[%c0_28, %c0_29] : memref<24x1xf32, #tpu.memory_space<vmem>>, vector<24x1xf32>
      %cst_30 = arith.constant 3.125000e-02 : f32
      %48 = vector.broadcast %cst_30 : f32 to vector<24x1xf32>
      %49 = arith.mulf %47, %48 : vector<24x1xf32>
      %c0_31 = arith.constant 0 : index
      %c0_32 = arith.constant 0 : index
      %50 = vector.load %arg25[%c0_31, %c0_32] : memref<24x1xf32, #tpu.memory_space<vmem>>, vector<24x1xf32>
      %cst_33 = arith.constant 3.125000e-02 : f32
      %51 = vector.broadcast %cst_33 : f32 to vector<24x1xf32>
      %52 = arith.mulf %50, %51 : vector<24x1xf32>
      %53 = arith.mulf %49, %49 : vector<24x1xf32>
      %54 = arith.subf %52, %53 : vector<24x1xf32>
      %c0_34 = arith.constant 0 : index
      %c0_35 = arith.constant 0 : index
      %55 = vector.load %arg8[%c0_34, %c0_35] : memref<24x1xf32, #tpu.memory_space<vmem>>, vector<24x1xf32>
      %56 = vector.broadcast %49 : vector<24x1xf32> to vector<24x16xf32>
      %57 = arith.subf %46, %56 : vector<24x16xf32>
      %58 = vector.broadcast %55 : vector<24x1xf32> to vector<24x16xf32>
      %59 = arith.mulf %58, %57 : vector<24x16xf32>
      %cst_36 = arith.constant 9.99999974E-6 : f32
      %60 = vector.broadcast %cst_36 : f32 to vector<24x1xf32>
      %61 = arith.addf %54, %60 : vector<24x1xf32>
      %62 = math.rsqrt %61 : vector<24x1xf32>
      %63 = vector.broadcast %62 : vector<24x1xf32> to vector<24x16xf32>
      %64 = arith.mulf %59, %63 : vector<24x16xf32>
      %c0_37 = arith.constant 0 : index
      %c0_38 = arith.constant 0 : index
      %65 = vector.load %arg9[%c0_37, %c0_38] : memref<24x1xf32, #tpu.memory_space<vmem>>, vector<24x1xf32>
      %66 = vector.broadcast %65 : vector<24x1xf32> to vector<24x16xf32>
      %67 = arith.addf %64, %66 : vector<24x16xf32>
      %cst_39 = arith.constant 0.000000e+00 : f32
      %68 = vector.broadcast %cst_39 : f32 to vector<24x16xf32>
      %69 = arith.maximumf %67, %68 : vector<24x16xf32>
      %cst_40 = arith.constant dense<0.000000e+00> : vector<192x16xf32>
      %70 = tpu.matmul %19, %69, %cst_40 {dimension_numbers = #tpu.dot_dimension_numbers<[1], [0], [0], [1], [0, 0, 1, 1], [], []>} : vector<192x24xf32>, vector<24x16xf32>, vector<192x16xf32> -> vector<192x16xf32>
      %c0_41 = arith.constant 0 : index
      %c0_42 = arith.constant 0 : index
      %71 = vector.load %arg26[%c0_41, %c0_42] : memref<192x1xf32, #tpu.memory_space<vmem>>, vector<192x1xf32>
      %cst_43 = arith.constant 3.125000e-02 : f32
      %72 = vector.broadcast %cst_43 : f32 to vector<192x1xf32>
      %73 = arith.mulf %71, %72 : vector<192x1xf32>
      %c0_44 = arith.constant 0 : index
      %c0_45 = arith.constant 0 : index
      %74 = vector.load %arg27[%c0_44, %c0_45] : memref<192x1xf32, #tpu.memory_space<vmem>>, vector<192x1xf32>
      %cst_46 = arith.constant 3.125000e-02 : f32
      %75 = vector.broadcast %cst_46 : f32 to vector<192x1xf32>
      %76 = arith.mulf %74, %75 : vector<192x1xf32>
      %77 = arith.mulf %73, %73 : vector<192x1xf32>
      %78 = arith.subf %76, %77 : vector<192x1xf32>
      %c0_47 = arith.constant 0 : index
      %c0_48 = arith.constant 0 : index
      %79 = vector.load %arg11[%c0_47, %c0_48] : memref<192x1xf32, #tpu.memory_space<vmem>>, vector<192x1xf32>
      %80 = vector.broadcast %73 : vector<192x1xf32> to vector<192x16xf32>
      %81 = arith.subf %70, %80 : vector<192x16xf32>
      %82 = vector.broadcast %79 : vector<192x1xf32> to vector<192x16xf32>
      %83 = arith.mulf %82, %81 : vector<192x16xf32>
      %cst_49 = arith.constant 9.99999974E-6 : f32
      %84 = vector.broadcast %cst_49 : f32 to vector<192x1xf32>
      %85 = arith.addf %78, %84 : vector<192x1xf32>
      %86 = math.rsqrt %85 : vector<192x1xf32>
      %87 = vector.broadcast %86 : vector<192x1xf32> to vector<192x16xf32>
      %88 = arith.mulf %83, %87 : vector<192x16xf32>
      %c0_50 = arith.constant 0 : index
      %c0_51 = arith.constant 0 : index
      %89 = vector.load %arg12[%c0_50, %c0_51] : memref<192x1xf32, #tpu.memory_space<vmem>>, vector<192x1xf32>
      %90 = vector.broadcast %89 : vector<192x1xf32> to vector<192x16xf32>
      %91 = arith.addf %88, %90 : vector<192x16xf32>
      %cst_52 = arith.constant 0.000000e+00 : f32
      %92 = vector.broadcast %cst_52 : f32 to vector<192x16xf32>
      %93 = arith.maximumf %91, %92 : vector<192x16xf32>
      %cst_53 = arith.constant dense<0xFF800000> : vector<192xf32>
      %94 = vector.multi_reduction <maximumf>, %93, %cst_53 [1] : vector<192x16xf32> to vector<192xf32>
      %95 = vector.shape_cast %94 : vector<192xf32> to vector<192x1xf32>
      %96 = tpu.iota {dimensions = array<i32: 1>} : vector<192x2xi32>
      %c0_54 = arith.constant 0 : index
      %c0_55 = arith.constant 0 : index
      %97 = vector.load %arg28[%c0_54, %c0_55] : memref<192x2xf32, #tpu.memory_space<vmem>>, vector<192x2xf32>
      %98 = vector.broadcast %arg1 : i32 to vector<192x2xi32>
      %99 = arith.cmpi eq, %96, %98 : vector<192x2xi32>
      %100 = vector.broadcast %95 : vector<192x1xf32> to vector<192x2xf32>
      %101 = arith.maximumf %97, %100 : vector<192x2xf32>
      %102 = arith.select %99, %101, %97 : vector<192x2xi1>, vector<192x2xf32>
      %c0_56 = arith.constant 0 : index
      %c0_57 = arith.constant 0 : index
      %103 = vector.load %arg28[%c0_56, %c0_57] : memref<192x2xf32, #tpu.memory_space<vmem>>, vector<192x2xf32>
      tpu.vector_store %arg28[%c0_56, %c0_57], %102 {strides = array<i32>} : memref<192x2xf32, #tpu.memory_space<vmem>>, vector<192x2xf32>,
      %c1_i32_58 = arith.constant 1 : i32
      %104 = arith.cmpi eq, %arg1, %c1_i32_58 : i32
      %c0_i32_59 = arith.constant 0 : i32
      %105 = arith.cmpi eq, %arg2, %c0_i32_59 : i32
      %106 = arith.andi %104, %105 : i1
      %107 = arith.extui %106 : i1 to i32
      %c0_i32_60 = arith.constant 0 : i32
      %108 = arith.cmpi ne, %107, %c0_i32_60 : i32
      scf.if %108 {
        %c0_61 = arith.constant 0 : index
        %c0_62 = arith.constant 0 : index
        %109 = vector.load %arg28[%c0_61, %c0_62] : memref<192x2xf32, #tpu.memory_space<vmem>>, vector<192x2xf32>
        %c0_63 = arith.constant 0 : index
        %c0_64 = arith.constant 0 : index
        %110 = vector.load %arg13[%c0_63, %c0_64] : memref<96x192xf32, #tpu.memory_space<vmem>>, vector<96x192xf32>
        %cst_65 = arith.constant dense<0.000000e+00> : vector<96x2xf32>
        %111 = tpu.matmul %110, %109, %cst_65 {dimension_numbers = #tpu.dot_dimension_numbers<[1], [0], [0], [1], [0, 0, 1, 1], [], []>} : vector<96x192xf32>, vector<192x2xf32>, vector<96x2xf32> -> vector<96x2xf32>
        %cst_66 = arith.constant dense<0.000000e+00> : vector<96xf32>
        %112 = vector.multi_reduction <add>, %111, %cst_66 [1] : vector<96x2xf32> to vector<96xf32>
        %113 = vector.shape_cast %112 : vector<96xf32> to vector<96x1xf32>
        %cst_67 = arith.constant 2.000000e+00 : f32
        %114 = vector.broadcast %cst_67 : f32 to vector<96x1xf32>
        %115 = arith.divf %113, %114 : vector<96x1xf32>
        %116 = vector.broadcast %115 : vector<96x1xf32> to vector<96x2xf32>
        %117 = arith.subf %111, %116 : vector<96x2xf32>
        %118 = arith.mulf %117, %117 : vector<96x2xf32>
        %cst_68 = arith.constant dense<0.000000e+00> : vector<96xf32>
        %119 = vector.multi_reduction <add>, %118, %cst_68 [1] : vector<96x2xf32> to vector<96xf32>
        %120 = vector.shape_cast %119 : vector<96xf32> to vector<96x1xf32>
        %cst_69 = arith.constant 2.000000e+00 : f32
        %121 = vector.broadcast %cst_69 : f32 to vector<96x1xf32>
        %122 = arith.divf %120, %121 : vector<96x1xf32>
        %c0_70 = arith.constant 0 : index
        %c0_71 = arith.constant 0 : index
        %123 = vector.load %arg14[%c0_70, %c0_71] : memref<96x1xf32, #tpu.memory_space<vmem>>, vector<96x1xf32>
        %124 = vector.broadcast %115 : vector<96x1xf32> to vector<96x2xf32>
        %125 = arith.subf %111, %124 : vector<96x2xf32>
        %126 = vector.broadcast %123 : vector<96x1xf32> to vector<96x2xf32>
        %127 = arith.mulf %126, %125 : vector<96x2xf32>
        %cst_72 = arith.constant 9.99999974E-6 : f32
        %128 = vector.broadcast %cst_72 : f32 to vector<96x1xf32>
        %129 = arith.addf %122, %128 : vector<96x1xf32>
        %130 = math.rsqrt %129 : vector<96x1xf32>
        %131 = vector.broadcast %130 : vector<96x1xf32> to vector<96x2xf32>
        %132 = arith.mulf %127, %131 : vector<96x2xf32>
        %c0_73 = arith.constant 0 : index
        %c0_74 = arith.constant 0 : index
        %133 = vector.load %arg15[%c0_73, %c0_74] : memref<96x1xf32, #tpu.memory_space<vmem>>, vector<96x1xf32>
        %134 = vector.broadcast %133 : vector<96x1xf32> to vector<96x2xf32>
        %135 = arith.addf %132, %134 : vector<96x2xf32>
        %cst_75 = arith.constant 0.000000e+00 : f32
        %136 = vector.broadcast %cst_75 : f32 to vector<96x2xf32>
        %137 = arith.maximumf %135, %136 : vector<96x2xf32>
        %c0_76 = arith.constant 0 : index
        %c0_77 = arith.constant 0 : index
        %138 = vector.load %arg16[%c0_76, %c0_77] : memref<48x96xf32, #tpu.memory_space<vmem>>, vector<48x96xf32>
        %cst_78 = arith.constant dense<0.000000e+00> : vector<48x2xf32>
        %139 = tpu.matmul %138, %137, %cst_78 {dimension_numbers = #tpu.dot_dimension_numbers<[1], [0], [0], [1], [0, 0, 1, 1], [], []>} : vector<48x96xf32>, vector<96x2xf32>, vector<48x2xf32> -> vector<48x2xf32>
        %cst_79 = arith.constant dense<0.000000e+00> : vector<48xf32>
        %140 = vector.multi_reduction <add>, %139, %cst_79 [1] : vector<48x2xf32> to vector<48xf32>
        %141 = vector.shape_cast %140 : vector<48xf32> to vector<48x1xf32>
        %cst_80 = arith.constant 2.000000e+00 : f32
        %142 = vector.broadcast %cst_80 : f32 to vector<48x1xf32>
        %143 = arith.divf %141, %142 : vector<48x1xf32>
        %144 = vector.broadcast %143 : vector<48x1xf32> to vector<48x2xf32>
        %145 = arith.subf %139, %144 : vector<48x2xf32>
        %146 = arith.mulf %145, %145 : vector<48x2xf32>
        %cst_81 = arith.constant dense<0.000000e+00> : vector<48xf32>
        %147 = vector.multi_reduction <add>, %146, %cst_81 [1] : vector<48x2xf32> to vector<48xf32>
        %148 = vector.shape_cast %147 : vector<48xf32> to vector<48x1xf32>
        %cst_82 = arith.constant 2.000000e+00 : f32
        %149 = vector.broadcast %cst_82 : f32 to vector<48x1xf32>
        %150 = arith.divf %148, %149 : vector<48x1xf32>
        %c0_83 = arith.constant 0 : index
        %c0_84 = arith.constant 0 : index
        %151 = vector.load %arg17[%c0_83, %c0_84] : memref<48x1xf32, #tpu.memory_space<vmem>>, vector<48x1xf32>
        %152 = vector.broadcast %143 : vector<48x1xf32> to vector<48x2xf32>
        %153 = arith.subf %139, %152 : vector<48x2xf32>
        %154 = vector.broadcast %151 : vector<48x1xf32> to vector<48x2xf32>
        %155 = arith.mulf %154, %153 : vector<48x2xf32>
        %cst_85 = arith.constant 9.99999974E-6 : f32
        %156 = vector.broadcast %cst_85 : f32 to vector<48x1xf32>
        %157 = arith.addf %150, %156 : vector<48x1xf32>
        %158 = math.rsqrt %157 : vector<48x1xf32>
        %159 = vector.broadcast %158 : vector<48x1xf32> to vector<48x2xf32>
        %160 = arith.mulf %155, %159 : vector<48x2xf32>
        %c0_86 = arith.constant 0 : index
        %c0_87 = arith.constant 0 : index
        %161 = vector.load %arg18[%c0_86, %c0_87] : memref<48x1xf32, #tpu.memory_space<vmem>>, vector<48x1xf32>
        %162 = vector.broadcast %161 : vector<48x1xf32> to vector<48x2xf32>
        %163 = arith.addf %160, %162 : vector<48x2xf32>
        %cst_88 = arith.constant 0.000000e+00 : f32
        %164 = vector.broadcast %cst_88 : f32 to vector<48x2xf32>
        %165 = arith.maximumf %163, %164 : vector<48x2xf32>
        %c0_89 = arith.constant 0 : index
        %c0_90 = arith.constant 0 : index
        %166 = vector.load %arg19[%c0_89, %c0_90] : memref<25x48xf32, #tpu.memory_space<vmem>>, vector<25x48xf32>
        %cst_91 = arith.constant dense<0.000000e+00> : vector<25x2xf32>
        %167 = tpu.matmul %166, %165, %cst_91 {dimension_numbers = #tpu.dot_dimension_numbers<[1], [0], [0], [1], [0, 0, 1, 1], [], []>} : vector<25x48xf32>, vector<48x2xf32>, vector<25x2xf32> -> vector<25x2xf32>
        %c0_92 = arith.constant 0 : index
        %c0_93 = arith.constant 0 : index
        %168 = vector.load %arg20[%c0_92, %c0_93] : memref<25x1xf32, #tpu.memory_space<vmem>>, vector<25x1xf32>
        %169 = vector.broadcast %168 : vector<25x1xf32> to vector<25x2xf32>
        %170 = arith.addf %167, %169 : vector<25x2xf32>
        %c0_94 = arith.constant 0 : index
        %c0_95 = arith.constant 0 : index
        %171 = vector.load %arg21[%c0_94, %c0_95] : memref<25x2xf32, #tpu.memory_space<vmem>>, vector<25x2xf32>
        tpu.vector_store %arg21[%c0_94, %c0_95], %170 {strides = array<i32>} : memref<25x2xf32, #tpu.memory_space<vmem>>, vector<25x2xf32>,
      } else {
      }
    } else {
    }
    return
  }
  func.func @transform_0(%arg0: i32, %arg1: i32, %arg2: i32) -> (i32, i32, i32) {
    %c0_i32 = arith.constant 0 : i32
    %c0_i32_0 = arith.constant 0 : i32
    return %arg1, %c0_i32, %arg2 : i32, i32, i32
  }
  func.func @transform_1(%arg0: i32, %arg1: i32, %arg2: i32) -> (i32, i32) {
    %c0_i32 = arith.constant 0 : i32
    %c0_i32_0 = arith.constant 0 : i32
    %c0_i32_1 = arith.constant 0 : i32
    return %c0_i32, %c0_i32_0 : i32, i32
  }
  func.func @transform_2(%arg0: i32, %arg1: i32, %arg2: i32) -> (i32, i32) {
    %c0_i32 = arith.constant 0 : i32
    %c0_i32_0 = arith.constant 0 : i32
    %c0_i32_1 = arith.constant 0 : i32
    return %c0_i32, %c0_i32_0 : i32, i32
  }
  func.func @transform_3(%arg0: i32, %arg1: i32, %arg2: i32) -> (i32, i32) {
    %c0_i32 = arith.constant 0 : i32
    %c0_i32_0 = arith.constant 0 : i32
    %c0_i32_1 = arith.constant 0 : i32
    return %c0_i32, %c0_i32_0 : i32, i32
  }
  func.func @transform_4(%arg0: i32, %arg1: i32, %arg2: i32) -> (i32, i32) {
    %c0_i32 = arith.constant 0 : i32
    %c0_i32_0 = arith.constant 0 : i32
    %c0_i32_1 = arith.constant 0 : i32
    return %c0_i32, %c0_i32_0 : i32, i32
  }
  func.func @transform_5(%arg0: i32, %arg1: i32, %arg2: i32) -> (i32, i32) {
    %c0_i32 = arith.constant 0 : i32
    %c0_i32_0 = arith.constant 0 : i32
    %c0_i32_1 = arith.constant 0 : i32
    return %c0_i32, %c0_i32_0 : i32, i32
  }
  func.func @transform_6(%arg0: i32, %arg1: i32, %arg2: i32) -> (i32, i32) {
    %c0_i32 = arith.constant 0 : i32
    %c0_i32_0 = arith.constant 0 : i32
    %c0_i32_1 = arith.constant 0 : i32
    return %c0_i32, %c0_i32_0 : i32, i32
  }
  func.func @transform_7(%arg0: i32, %arg1: i32, %arg2: i32) -> (i32, i32) {
    %c0_i32 = arith.constant 0 : i32
    %c0_i32_0 = arith.constant 0 : i32
    %c0_i32_1 = arith.constant 0 : i32
    return %c0_i32, %c0_i32_0 : i32, i32
  }
  func.func @transform_8(%arg0: i32, %arg1: i32, %arg2: i32) -> (i32, i32) {
    %c0_i32 = arith.constant 0 : i32
    %c0_i32_0 = arith.constant 0 : i32
    %c0_i32_1 = arith.constant 0 : i32
    return %c0_i32, %c0_i32_0 : i32, i32
  }
  func.func @transform_9(%arg0: i32, %arg1: i32, %arg2: i32) -> (i32, i32) {
    %c0_i32 = arith.constant 0 : i32
    %c0_i32_0 = arith.constant 0 : i32
    %c0_i32_1 = arith.constant 0 : i32
    return %c0_i32, %c0_i32_0 : i32, i32
  }
  func.func @transform_10(%arg0: i32, %arg1: i32, %arg2: i32) -> (i32, i32) {
    %c0_i32 = arith.constant 0 : i32
    %c0_i32_0 = arith.constant 0 : i32
    %c0_i32_1 = arith.constant 0 : i32
    return %c0_i32, %c0_i32_0 : i32, i32
  }
  func.func @transform_11(%arg0: i32, %arg1: i32, %arg2: i32) -> (i32, i32) {
    %c0_i32 = arith.constant 0 : i32
    %c0_i32_0 = arith.constant 0 : i32
    %c0_i32_1 = arith.constant 0 : i32
    return %c0_i32, %c0_i32_0 : i32, i32
  }
  func.func @transform_12(%arg0: i32, %arg1: i32, %arg2: i32) -> (i32, i32) {
    %c0_i32 = arith.constant 0 : i32
    %c0_i32_0 = arith.constant 0 : i32
    %c0_i32_1 = arith.constant 0 : i32
    return %c0_i32, %c0_i32_0 : i32, i32
  }
  func.func @transform_13(%arg0: i32, %arg1: i32, %arg2: i32) -> (i32, i32) {
    %c0_i32 = arith.constant 0 : i32
    %c0_i32_0 = arith.constant 0 : i32
    %c0_i32_1 = arith.constant 0 : i32
    return %c0_i32, %c0_i32_0 : i32, i32
  }
  func.func @transform_14(%arg0: i32, %arg1: i32, %arg2: i32) -> (i32, i32) {
    %c0_i32 = arith.constant 0 : i32
    %c0_i32_0 = arith.constant 0 : i32
    %c0_i32_1 = arith.constant 0 : i32
    return %c0_i32, %c0_i32_0 : i32, i32
  }
  func.func @transform_15(%arg0: i32, %arg1: i32, %arg2: i32) -> (i32, i32) {
    %c0_i32 = arith.constant 0 : i32
    %c0_i32_0 = arith.constant 0 : i32
    %c0_i32_1 = arith.constant 0 : i32
    return %c0_i32, %c0_i32_0 : i32, i32
  }
  func.func @transform_16(%arg0: i32, %arg1: i32, %arg2: i32) -> (i32, i32) {
    %c0_i32 = arith.constant 0 : i32
    %c0_i32_0 = arith.constant 0 : i32
    %c0_i32_1 = arith.constant 0 : i32
    return %c0_i32, %c0_i32_0 : i32, i32
  }
  func.func @transform_17(%arg0: i32, %arg1: i32, %arg2: i32) -> (i32, i32) {
    %c0_i32 = arith.constant 0 : i32
    %c0_i32_0 = arith.constant 0 : i32
    %c0_i32_1 = arith.constant 0 : i32
    return %c0_i32, %c0_i32_0 : i32, i32
  }
  func.func @transform_18(%arg0: i32, %arg1: i32, %arg2: i32) -> (i32, i32) {
    %c0_i32 = arith.constant 0 : i32
    %c0_i32_0 = arith.constant 0 : i32
    %c0_i32_1 = arith.constant 0 : i32
    return %c0_i32, %c0_i32_0 : i32, i32
  }
}

</mosaic_0001>

<bundles_post_ra>
// kernel: tpu_custom_call.1
= control target key start
LH: loop header
LB: loop body
LE: loop exit
PB: predicated region body
PF: predicated region fallthrough
CT: control target
= control target key end

     0   :  { %s5593_s27 = smov 0   ;;  %s5595_s28 = smov 0   ;;  %s7397_s0 = inlined_call_operand.vmem [shape: f32[2,5,16], index: 0, kind: input, shape index: {}]   ;;  %s7398_s1 = inlined_call_operand.vmem [shape: f32[12,5], index: 1, kind: input, shape index: {}]   ;;  %s7399_s2 = inlined_call_operand.vmem [shape: f32[12,1], index: 2, kind: input, shape index: {}]   ;;  %s7400_s3 = inlined_call_operand.vmem [shape: f32[12,1], index: 3, kind: input, shape index: {}]   ;;  %s7401_s4 = inlined_call_operand.vmem [shape: f32[24,12], index: 4, kind: input, shape index: {}]   ;;  %s7402_s5 = inlined_call_operand.vmem [shape: f32[24,1], index: 5, kind: input, shape index: {}]   ;;  %s7403_s6 = inlined_call_operand.vmem [shape: f32[24,1], index: 6, kind: input, shape index: {}]   ;;  %s7404_s7 = inlined_call_operand.vmem [shape: f32[192,24], index: 7, kind: input, shape index: {}]   ;;  %s7405_s8 = inlined_call_operand.vmem [shape: f32[192,1], index: 8, kind: input, shape index: {}]   ;;  %s7406_s9 = inlined_call_operand.vmem [shape: f32[192,1], index: 9, kind: input, shape index: {}]   ;;  %s7407_s10 = inlined_call_operand.vmem [shape: f32[96,192], index: 10, kind: input, shape index: {}]   ;;  %s7408_s11 = inlined_call_operand.vmem [shape: f32[96,1], index: 11, kind: input, shape index: {}]   ;;  %s7409_s12 = inlined_call_operand.vmem [shape: f32[96,1], index: 12, kind: input, shape index: {}]   ;;  %s7410_s13 = inlined_call_operand.vmem [shape: f32[48,96], index: 13, kind: input, shape index: {}]   ;;  %s7411_s14 = inlined_call_operand.vmem [shape: f32[48,1], index: 14, kind: input, shape index: {}]   ;;  %s7412_s15 = inlined_call_operand.vmem [shape: f32[48,1], index: 15, kind: input, shape index: {}]   ;;  %s7413_s16 = inlined_call_operand.vmem [shape: f32[25,48], index: 16, kind: input, shape index: {}]   ;;  %s7414_s17 = inlined_call_operand.vmem [shape: f32[25,1], index: 17, kind: input, shape index: {}]   ;;  %s7415_s18 = inlined_call_operand.vmem [shape: f32[25,2], index: 18, kind: output, shape index: {}]  }
   0x1   :  { %7423 = sst [smem:[#allocation49_spill]] %s7397_s0  ;;  %s5597_s29 = smov 0  }
   0x2   :  { %7424 = sst [smem:[#allocation50_spill]] %s7398_s1  ;;  %s5599_s30 = smov 0  }
   0x3   :  { %7425 = sst [smem:[#allocation51_spill]] %s7399_s2  ;;  %s5601_s0 = smov 0  }
   0x4   :  { %7426 = sst [smem:[#allocation52_spill]] %s7400_s3 }
   0x5 LB: > { %s43_s19 = sadd.s32 1, %s5467_s29  ;;  %s47_s1 = sadd.s32 1, %s5471_s30  ;;  %s5475_s0 = sphi %s5601_s0, %s28_s0   ;;  %s5471_s30 = sphi %s5599_s30, %s7523_s30   ;;  %s5467_s29 = sphi %s5597_s29, %s7522_s29   ;;  %s5463_s28 = sphi %s5595_s28, %s7521_s28   ;;  %s5459_s27 = sphi %s5593_s27, %s7520_s27  }
   0x6   : > { %p45_p0 = scmp.ge.s32.totalorder %s43_s19, 2  ;;  %p4749_p1 = scmp.ge.s32.totalorder %s5475_s0, 1 }
   0x7   : > { %p530_p2 = scmp.lt.s32.totalorder %s5475_s0, 9 }
   0x8   : > { %s7525_s19 = smov (%p45_p0, %s43_s19), 0  ;;  %s7527_s1 = smov (!%p45_p0, %s47_s1), %s5471_s30 }
   0x9   : > { %p531_p3 = pnand %p4749_p1, %p530_p2  ;;  %p49_p4 = scmp.ge.s32.totalorder %s7527_s1, 4 }
   0xa   : > { %p581_p5 = scmp.lt.s32.totalorder (!%p531_p3), %s5459_s27, 1  ;;  %p588_p6 = scmp.eq.s32.totalorder (!%p531_p3), %s5459_s27, 0 }
   0xb   : > { %s7529_s1 = smov (%p49_p4, %s7527_s1), 0  ;;  %534 = sbr.rel (%p531_p3) target bundleno = 4285 (0x10bd), region = 92 }
   0xc   : > { %s7427_s23 = sld [smem:[#allocation49_spill]] (!%p531_p3)  ;;  %p4752_p7 = scmp.ne.s32.totalorder (!%p531_p3), %s5463_s28, 0 }
  0x12   : > { %s582_s20 = scalar_select %p581_p5, %s5459_s27, 1 }
  0x13   : > { %596 = sbr.rel (%p4752_p7) target bundleno = 406 (0x196), region = 96 }
  0x14   : > { %s4750_s21 = sshll.u32 %s582_s20, 3 }
  0x15   : > { %s587_s24 = scalar_lea.vmem %s7427_s23, %s4750_s21 }
  0x16   : > { %v5633_v0 = vld [vmem:[%s587_s24] sm:$0x1f] }
  0x1a   : > { %598 = sbr.rel (!%p588_p6) target bundleno = 33 (0x21), region = 100  ;;  %vm599_vm0 = vcmask (%p588_p6), 7168   ;;  %vm601_vm1 = vcmask (%p588_p6), 3072   ;;  %v5477_v1 = vmov (%p588_p6), 0.0  }
  0x1b   : > { %600 = vst.msk [vmem:[#allocation2] sm:$0xff] (%p588_p6), %vm599_vm0, %v5477_v1  ;;  %603 = vst.msk [vmem:[#allocation3] sm:$0xff] (%p588_p6), %vm599_vm0, %v5477_v1 }
  0x1c   : > { %602 = vst.msk [vmem:[#allocation2 + $0x8] sm:$0xf] (%p588_p6), %vm601_vm1, %v5477_v1  ;;  %604 = vst.msk [vmem:[#allocation3 + $0x8] sm:$0xf] (%p588_p6), %vm601_vm1, %v5477_v1 }
  0x21 PF: > { %vm614_vm2 = vcmask 1044480   ;;  %s7428_s20 = sld [smem:[#allocation50_spill]]  ;;  %vm607_vm3 = vcmask 39936   ;;  %vm695_vm4 = vcmask 130048   ;;  %vm699_vm5 = vcmask 125952  }
  0x22   : > { %4964 = vmatprep.subr.msk.mxu0 %vm614_vm2, %v5633_v0  ;;  %v693_v12 = vld [vmem:[#allocation2] sm:$0xff]  ;;  %vm705_vm6 = vcmask 7168   ;;  %v709_v14 = vld [vmem:[#allocation3] sm:$0xff]  ;;  %vm707_vm7 = vcmask 3072  }
  0x23   : > { %4965 = vmatpush3.msk.msra.mxu0 %vm614_vm2, %v5633_v0  ;;  %v694_v17 = vld [vmem:[#allocation2 + $0x8] sm:$0xf]  ;;  %v710_v20 = vld [vmem:[#allocation3 + $0x8] sm:$0xf] }
  0x27   : > { %v605_v2 = vld [vmem:[%s7428_s20] sm:$0xff]  ;;  %v606_v3 = vld [vmem:[%s7428_s20 + $0x8] sm:$0xf] }
  0x28   : > { %4966 = vmatprep.mubr.msk.f32.mxu0 %vm607_vm3, %v605_v2 }
  0x29   : > { %4967 = vmatmul.mubr.msk.f32.vlgmr.msra.gmra.mrb[0].mxu0 %vm607_vm3, %v606_v3 }
  0xfc   : > { %v4968_v4 = vpop.f32.mrb[0].mxu0 }
  0xfd   : > { %v684_v5 = vpop.f32.mrb[1].mxu0  ;;  %v712_v8 = vmul.f32 %v4968_v4, %v4968_v4  ;;  %v700_v10 = vsel %vm699_vm5, %v4968_v4, 0.0 }
  0xfe   : > { %v711_v6 = vmul.f32 %v684_v5, %v684_v5  ;;  %v696_v7 = vsel %vm695_vm4, %v684_v5, 0.0 }
  0xff   : > { %697 = vadd.xlane.f32.xlu0 %v696_v7  ;;  %v716_v11 = vsel %vm699_vm5, %v712_v8, 0.0 }
 0x100   : > { %v713_v9 = vsel %vm695_vm4, %v711_v6, 0.0 }
 0x101   : > { %714 = vadd.xlane.f32.xlu1 %v713_v9 }
 0x103   : > { %701 = vadd.xlane.f32.xlu0 %v700_v10 }
 0x105   : > { %717 = vadd.xlane.f32.xlu1 %v716_v11 }
 0x18c   : > { %v698_v13 = vpop.xlane.xlu0 %697 }
 0x18d   : > { %v703_v15 = vadd.f32 %v698_v13, %v693_v12 }
 0x18e   : > { %v715_v16 = vpop.xlane.xlu1 %714 }
 0x18f   : > { %706 = vst.msk [vmem:[#allocation2] sm:$0xff] %vm705_vm6, %v703_v15  ;;  %v719_v18 = vadd.f32 %v715_v16, %v709_v14 }
 0x190   : > { %v702_v19 = vpop.xlane.xlu0 %701 }
 0x191   : > { %721 = vst.msk [vmem:[#allocation3] sm:$0xff] %vm705_vm6, %v719_v18  ;;  %v704_v21 = vadd.f32 %v702_v19, %v694_v17 }
 0x192   : > { %v718_v22 = vpop.xlane.xlu1 %717 }
 0x193   : > { %708 = vst.msk [vmem:[#allocation2 + $0x8] sm:$0xf] %vm707_vm7, %v704_v21  ;;  %v720_v23 = vadd.f32 %v718_v22, %v710_v20 }
 0x195   : > { %722 = vst.msk [vmem:[#allocation3 + $0x8] sm:$0xf] %vm707_vm7, %v720_v23 }
 0x196 PF: > { %p4756_p8 = scmp.ne.s32.totalorder %s5463_s28, 1 }
 0x198   : > { %726 = sbr.rel (%p4756_p8) target bundleno = 1028 (0x404), region = 104 }
 0x19f   : > { %728 = sbr.rel (!%p588_p6) target bundleno = 422 (0x1a6), region = 108  ;;  %vm729_vm8 = vcmask (%p588_p6), 7168   ;;  %v5478_v24 = vmov (%p588_p6), 0.0  }
 0x1a0   : > { %730 = vst.msk [vmem:[#allocation4] sm:$0xff] (%p588_p6), %vm729_vm8, %v5478_v24  ;;  %731 = vst.msk [vmem:[#allocation4 + $0x8] sm:$0xff] (%p588_p6), %vm729_vm8, %v5478_v24 }
 0x1a1   : > { %732 = vst.msk [vmem:[#allocation4 + $0x10] sm:$0xff] (%p588_p6), %vm729_vm8, %v5478_v24  ;;  %733 = vst.msk [vmem:[#allocation5] sm:$0xff] (%p588_p6), %vm729_vm8, %v5478_v24 }
 0x1a2   : > { %734 = vst.msk [vmem:[#allocation5 + $0x8] sm:$0xff] (%p588_p6), %vm729_vm8, %v5478_v24  ;;  %735 = vst.msk [vmem:[#allocation5 + $0x10] sm:$0xff] (%p588_p6), %vm729_vm8, %v5478_v24 }
 0x1a6 PF: > { %vm748_vm9 = vcmask 1044480   ;;  %s7429_s24 = sld [smem:[#allocation50_spill]]  ;;  %vm741_vm10 = vcmask 39936   ;;  %s7430_s22 = sld [smem:[#allocation51_spill]]  ;;  %v827_v28 = vld [vmem:[#allocation2] sm:$0xff]  ;;  %v831_v29 = vld [vmem:[#allocation3] sm:$0xff] }
 0x1a7   : > { %4969 = vmatprep.subr.msk.mxu0 %vm748_vm9, %v5633_v0  ;;  %v5479_v30 = vmov 0   ;;  %v829_v31 = vmul.f32 0.03125, %v827_v28  ;;  %v833_v32 = vmul.f32 0.03125, %v831_v29  ;;  %v828_v33 = vld [vmem:[#allocation2 + $0x8] sm:$0xf]  ;;  %s7431_s3 = sld [smem:[#allocation52_spill]] }
 0x1a8   : > { %4970 = vmatpush3.msk.msra.mxu0 %vm748_vm9, %v5633_v0  ;;  %5322 = vset.pattern.permute.xlu1 %v5479_v30  ;;  %v830_v34 = vmul.f32 0.03125, %v828_v33  ;;  %v832_v35 = vld [vmem:[#allocation3 + $0x8] sm:$0xf]  ;;  %v5480_v48 = vmov 0.0|0.0   ;;  %vm5481_vm11 = vmmov 0   ;;  %v5482_v49 = vmov 0.0  }
 0x1a9   : > { %5321 = vset.pattern.permute.xlu0 %v5479_v30  ;;  %v835_v36 = vmul.f32 %v829_v31, %v829_v31  ;;  %v834_v37 = vmul.f32 0.03125, %v832_v35  ;;  %5158 = vmatprep.subr.bf16.mxu0 %v5480_v48  ;;  %vm907_vm12 = vcmask 1043456   ;;  %vm5483_vm13 = vmmov 1   ;;  %v736_v8 = vld [vmem:[%s7401_s4] sm:$0xff]  ;;  %v737_v9 = vld [vmem:[%s7401_s4 + $0x8] sm:$0xff]  ;;  %v738_v10 = vld [vmem:[%s7401_s4 + $0x10] sm:$0xff] }
 0x1aa   : > { %843 = vperm.xlu0 %5321, %v829_v31   ;;  %v836_v39 = vmul.f32 %v830_v34, %v830_v34  ;;  %5250 = vmatprep.subr.bf16.mxu1 %v5480_v48  ;;  %vm5160_vm14 = vmpackc.low %vm907_vm12, %vm5483_vm13  ;;  %vm897_vm15 = vcmask 97280   ;;  %vm994_vm0 = vcmask 130048   ;;  %vm1007_vm1 = vcmask 7168   ;;  %v1012_v33 = vld [vmem:[#allocation5 + $0x8] sm:$0xff] }
 0x1ab   : > { %v837_v40 = vsub.f32 %v833_v32, %v835_v36  ;;  %4981 = vmatprep.mubr.msk.f32.mxu1 %vm5481_vm11, %v5482_v49  ;;  %v1011_v32 = vld [vmem:[#allocation5] sm:$0xff] }
 0x1ac   : > { %v739_v25 = vld [vmem:[%s7429_s24] sm:$0xff]  ;;  %v740_v26 = vld [vmem:[%s7429_s24 + $0x8] sm:$0xf]  ;;  %v838_v41 = vsub.f32 %v834_v37, %v836_v39 }
 0x1ad   : > { %4971 = vmatprep.mubr.msk.f32.mxu0 %vm741_vm10, %v739_v25  ;;  %v839_v27 = vld [vmem:[%s7430_s22] sm:$0xff]  ;;  %v840_v38 = vld [vmem:[%s7430_s22 + $0x8] sm:$0xf]  ;;  %v865_v42 = vadd.f32 1e-05, %v837_v40 }
 0x1ae   : > { %4972 = vmatmul.mubr.msk.f32.vlgmr.msra.gmra.mrb[0].mxu0 %vm741_vm10, %v740_v26  ;;  %855 = vperm.xlu1 %5322, %v839_v27   ;;  %v866_v43 = vadd.f32 1e-05, %v838_v41  ;;  %v881_v46 = vld [vmem:[%s7431_s3] sm:$0xff]  ;;  %v882_v47 = vld [vmem:[%s7431_s3 + $0x8] sm:$0xf]  ;;  %v992_v27 = vld [vmem:[#allocation4 + $0x8] sm:$0xff] }
 0x1af   : > { %848 = vperm.xlu0 %5321, %v830_v34   ;;  %5323 = vrsqrt.f32 %v865_v42  ;;  %4978 = vmatprep.mubr.msk.f32.mxu0 %vm5481_vm11, %v5482_v49  ;;  %v991_v26 = vld [vmem:[#allocation4] sm:$0xff]  ;;  %v1013_v41 = vld [vmem:[#allocation5 + $0x10] sm:$0xff] }
 0x1b0   : > { %5325 = vrsqrt.f32 %v866_v43 }
 0x1b2   : > { %860 = vperm.xlu1 %5322, %v840_v38   ;;  %v993_v38 = vld [vmem:[#allocation4 + $0x10] sm:$0xff] }
 0x1b9   : > { %v5324_v44 = vpop.eup %5323 }
 0x1ba   : > { %v5326_v45 = vpop.eup %5325  ;;  %871 = vperm.xlu0 %5321, %v5324_v44  }
 0x1bb   : > { %876 = vperm.xlu1 %5322, %v5326_v45  }
 0x1be   : > { %885 = vperm.xlu0 %5321, %v881_v46  }
 0x1bf   : > { %890 = vperm.xlu1 %5322, %v882_v47  }
 0x229   : > { %v844_v51 = vpop.permute.xlu0 %843 }
 0x22d   : > { %v856_v50 = vpop.permute.xlu1 %855 }
 0x22e   : > { %v849_v53 = vpop.permute.xlu0 %848 }
 0x231   : > { %v861_v52 = vpop.permute.xlu1 %860 }
 0x239   : > { %v872_v56 = vpop.permute.xlu0 %871 }
 0x23a   : > { %v877_v54 = vpop.permute.xlu1 %876 }
 0x23d   : > { %v886_v2 = vpop.permute.xlu0 %885 }
 0x23e   : > { %v891_v63 = vpop.permute.xlu1 %890 }
 0x281   : > { %v4973_v55 = vpop.f32.mrb[0].mxu0 }
 0x282   : > { %v852_v57 = vsub.f32 %v4973_v55, %v849_v53  ;;  %v818_v58 = vpop.f32.mrb[1].mxu0 }
 0x283   : > { %v851_v59 = vsub.f32 %v818_v58, %v844_v51 }
 0x284   : > { %v864_v60 = vmul.f32 %v861_v52, %v852_v57 }
 0x285   : > { %v863_v61 = vmul.f32 %v856_v50, %v851_v59 }
 0x286   : > { %v880_v62 = vmul.f32 %v877_v54, %v864_v60 }
 0x287   : > { %v879_v1 = vmul.f32 %v872_v56, %v863_v61 }
 0x288   : > { %v894_v3 = vadd.f32 %v891_v63, %v880_v62 }
 0x289   : > { %v893_v4 = vadd.f32 %v886_v2, %v879_v1 }
 0x28a   : > { %v896_v5 = vmax.f32 %v894_v3, 0.0 }
 0x28b   : > { %v895_v6 = vmax.f32 %v893_v4, 0.0 }
 0x28d   : > { %v5159_v7 = vpack.c.bf16 %v896_v5, %v895_v6 }
 0x28f   : > { %5161 = vmatpush3.bf16.msk.msra.mxu0 %vm5160_vm14, %v5159_v7  ;;  %5251 = vmatpush3.bf16.msk.msra.mxu1 %vm5160_vm14, %v5159_v7 }
 0x292   : > { %4979 = vmatmul.mubr.msk.f32.vlgmr.msra.gmra.mrb[2].mxu0 %vm897_vm15, %v736_v8  ;;  %4982 = vmatmul.mubr.msk.f32.vlgmr.msra.gmra.mrb[0].mxu1 %vm897_vm15, %v737_v9 }
 0x293   : > { %4984 = vmatprep.mubr.msk.f32.mxu1 %vm5481_vm11, %v5482_v49 }
 0x296   : > { %4985 = vmatmul.mubr.msk.f32.gmra.mrb[2].mxu1 %vm897_vm15, %v738_v10 }
 0x365   : > { %v977_v11 = vpop.f32.mrb[2].mxu0  ;;  %v982_v12 = vpop.f32.mrb[0].mxu1 }
 0x366   : > { %v1014_v13 = vmul.f32 %v977_v11, %v977_v11  ;;  %v4980_v14 = vpop.f32.mrb[3].mxu0  ;;  %v995_v15 = vsel %vm994_vm0, %v977_v11, 0.0  ;;  %v1015_v16 = vmul.f32 %v982_v12, %v982_v12  ;;  %v998_v17 = vsel %vm994_vm0, %v982_v12, 0.0  ;;  %v4983_v18 = vpop.f32.mrb[1].mxu1 }
 0x367   : > { %996 = vadd.xlane.f32.xlu0 %v995_v15  ;;  %999 = vadd.xlane.f32.xlu1 %v998_v17 }
 0x368   : > { %v1020_v19 = vsel %vm994_vm0, %v1015_v16, 0.0  ;;  %v1017_v21 = vsel %vm994_vm0, %v1014_v13, 0.0 }
 0x369   : > { %v987_v20 = vpop.f32.mrb[2].mxu1 }
 0x36a   : > { %v4986_v22 = vpop.f32.mrb[3].mxu1  ;;  %v1001_v23 = vsel %vm994_vm0, %v987_v20, 0.0  ;;  %v1016_v24 = vmul.f32 %v987_v20, %v987_v20 }
 0x36b   : > { %1018 = vadd.xlane.f32.xlu0 %v1017_v21  ;;  %1021 = vadd.xlane.f32.xlu1 %v1020_v19 }
 0x36c   : > { %v1023_v25 = vsel %vm994_vm0, %v1016_v24, 0.0 }
 0x36f   : > { %1002 = vadd.xlane.f32.xlu0 %v1001_v23 }
 0x373   : > { %1024 = vadd.xlane.f32.xlu0 %v1023_v25 }
 0x3f4   : > { %v997_v28 = vpop.xlane.xlu0 %996  ;;  %v1000_v29 = vpop.xlane.xlu1 %999 }
 0x3f5   : > { %v1004_v30 = vadd.f32 %v997_v28, %v991_v26  ;;  %v1005_v31 = vadd.f32 %v1000_v29, %v992_v27 }
 0x3f7   : > { %1008 = vst.msk [vmem:[#allocation4] sm:$0xff] %vm1007_vm1, %v1004_v30  ;;  %1009 = vst.msk [vmem:[#allocation4 + $0x8] sm:$0xff] %vm1007_vm1, %v1005_v31 }
 0x3f8   : > { %v1019_v34 = vpop.xlane.xlu0 %1018  ;;  %v1022_v35 = vpop.xlane.xlu1 %1021 }
 0x3f9   : > { %v1026_v36 = vadd.f32 %v1019_v34, %v1011_v32  ;;  %v1027_v37 = vadd.f32 %v1022_v35, %v1012_v33 }
 0x3fb   : > { %1029 = vst.msk [vmem:[#allocation5] sm:$0xff] %vm1007_vm1, %v1026_v36  ;;  %1030 = vst.msk [vmem:[#allocation5 + $0x8] sm:$0xff] %vm1007_vm1, %v1027_v37 }
 0x3fc   : > { %v1003_v39 = vpop.xlane.xlu0 %1002 }
 0x3fd   : > { %v1006_v40 = vadd.f32 %v1003_v39, %v993_v38 }
 0x3ff   : > { %1010 = vst.msk [vmem:[#allocation4 + $0x10] sm:$0xff] %vm1007_vm1, %v1006_v40 }
 0x400   : > { %v1025_v42 = vpop.xlane.xlu0 %1024 }
 0x401   : > { %v1028_v43 = vadd.f32 %v1025_v42, %v1013_v41 }
 0x403   : > { %1031 = vst.msk [vmem:[#allocation5 + $0x10] sm:$0xff] %vm1007_vm1, %v1028_v43 }
 0x404 PF: > { %p4764_p9 = scmp.ne.s32.totalorder %s5463_s28, 2 }
 0x406   : > { %1035 = sbr.rel (%p4764_p9) target bundleno = 1986 (0x7c2), region = 112 }
 0x40d   : > { %1037 = sbr.rel (!%p588_p6) target bundleno = 1062 (0x426), region = 116  ;;  %vm1038_vm2 = vcmask (%p588_p6), 7168   ;;  %v5484_v44 = vmov (%p588_p6), 0.0  }
 0x40e   : > { %1039 = vst.msk [vmem:[#allocation6] sm:$0xff] (%p588_p6), %vm1038_vm2, %v5484_v44  ;;  %1040 = vst.msk [vmem:[#allocation6 + $0x8] sm:$0xff] (%p588_p6), %vm1038_vm2, %v5484_v44 }
 0x40f   : > { %1041 = vst.msk [vmem:[#allocation6 + $0x10] sm:$0xff] (%p588_p6), %vm1038_vm2, %v5484_v44  ;;  %1042 = vst.msk [vmem:[#allocation6 + $0x18] sm:$0xff] (%p588_p6), %vm1038_vm2, %v5484_v44 }
 0x410   : > { %1043 = vst.msk [vmem:[#allocation6 + $0x20] sm:$0xff] (%p588_p6), %vm1038_vm2, %v5484_v44  ;;  %1044 = vst.msk [vmem:[#allocation6 + $0x28] sm:$0xff] (%p588_p6), %vm1038_vm2, %v5484_v44 }
 0x411   : > { %1045 = vst.msk [vmem:[#allocation6 + $0x30] sm:$0xff] (%p588_p6), %vm1038_vm2, %v5484_v44  ;;  %1046 = vst.msk [vmem:[#allocation6 + $0x38] sm:$0xff] (%p588_p6), %vm1038_vm2, %v5484_v44 }
 0x412   : > { %1047 = vst.msk [vmem:[#allocation6 + $0x40] sm:$0xff] (%p588_p6), %vm1038_vm2, %v5484_v44  ;;  %1048 = vst.msk [vmem:[#allocation6 + $0x48] sm:$0xff] (%p588_p6), %vm1038_vm2, %v5484_v44 }
 0x413   : > { %1049 = vst.msk [vmem:[#allocation6 + $0x50] sm:$0xff] (%p588_p6), %vm1038_vm2, %v5484_v44  ;;  %1050 = vst.msk [vmem:[#allocation6 + $0x58] sm:$0xff] (%p588_p6), %vm1038_vm2, %v5484_v44 }
 0x414   : > { %1051 = vst.msk [vmem:[#allocation6 + $0x60] sm:$0xff] %vm1038_vm2, %v5484_v44  ;;  %1052 = vst.msk [vmem:[#allocation6 + $0x68] sm:$0xff] %vm1038_vm2, %v5484_v44 }
 0x415   : > { %1053 = vst.msk [vmem:[#allocation6 + $0x70] sm:$0xff] %vm1038_vm2, %v5484_v44  ;;  %1054 = vst.msk [vmem:[#allocation6 + $0x78] sm:$0xff] %vm1038_vm2, %v5484_v44 }
 0x416   : > { %1055 = vst.msk [vmem:[#allocation6 + $0x80] sm:$0xff] %vm1038_vm2, %v5484_v44  ;;  %1056 = vst.msk [vmem:[#allocation6 + $0x88] sm:$0xff] %vm1038_vm2, %v5484_v44 }
 0x417   : > { %1057 = vst.msk [vmem:[#allocation6 + $0x90] sm:$0xff] %vm1038_vm2, %v5484_v44  ;;  %1058 = vst.msk [vmem:[#allocation6 + $0x98] sm:$0xff] %vm1038_vm2, %v5484_v44 }
 0x418   : > { %1059 = vst.msk [vmem:[#allocation6 + $0xa0] sm:$0xff] %vm1038_vm2, %v5484_v44  ;;  %1060 = vst.msk [vmem:[#allocation6 + $0xa8] sm:$0xff] %vm1038_vm2, %v5484_v44 }
 0x419   : > { %1061 = vst.msk [vmem:[#allocation6 + $0xb0] sm:$0xff] %vm1038_vm2, %v5484_v44  ;;  %1062 = vst.msk [vmem:[#allocation6 + $0xb8] sm:$0xff] %vm1038_vm2, %v5484_v44 }
 0x41a   : > { %1063 = vst.msk [vmem:[#allocation7] sm:$0xff] %vm1038_vm2, %v5484_v44  ;;  %1064 = vst.msk [vmem:[#allocation7 + $0x8] sm:$0xff] %vm1038_vm2, %v5484_v44 }
 0x41b   : > { %1065 = vst.msk [vmem:[#allocation7 + $0x10] sm:$0xff] %vm1038_vm2, %v5484_v44  ;;  %1066 = vst.msk [vmem:[#allocation7 + $0x18] sm:$0xff] %vm1038_vm2, %v5484_v44 }
 0x41c   : > { %1067 = vst.msk [vmem:[#allocation7 + $0x20] sm:$0xff] %vm1038_vm2, %v5484_v44  ;;  %1068 = vst.msk [vmem:[#allocation7 + $0x28] sm:$0xff] %vm1038_vm2, %v5484_v44 }
 0x41d   : > { %1069 = vst.msk [vmem:[#allocation7 + $0x30] sm:$0xff] %vm1038_vm2, %v5484_v44  ;;  %1070 = vst.msk [vmem:[#allocation7 + $0x38] sm:$0xff] %vm1038_vm2, %v5484_v44 }
 0x41e   : > { %1071 = vst.msk [vmem:[#allocation7 + $0x40] sm:$0xff] %vm1038_vm2, %v5484_v44  ;;  %1072 = vst.msk [vmem:[#allocation7 + $0x48] sm:$0xff] %vm1038_vm2, %v5484_v44 }
 0x41f   : > { %1073 = vst.msk [vmem:[#allocation7 + $0x50] sm:$0xff] %vm1038_vm2, %v5484_v44  ;;  %1074 = vst.msk [vmem:[#allocation7 + $0x58] sm:$0xff] %vm1038_vm2, %v5484_v44 }
 0x420   : > { %1075 = vst.msk [vmem:[#allocation7 + $0x60] sm:$0xff] %vm1038_vm2, %v5484_v44  ;;  %1076 = vst.msk [vmem:[#allocation7 + $0x68] sm:$0xff] %vm1038_vm2, %v5484_v44 }
 0x421   : > { %1077 = vst.msk [vmem:[#allocation7 + $0x70] sm:$0xff] %vm1038_vm2, %v5484_v44  ;;  %1078 = vst.msk [vmem:[#allocation7 + $0x78] sm:$0xff] %vm1038_vm2, %v5484_v44 }
 0x422   : > { %1079 = vst.msk [vmem:[#allocation7 + $0x80] sm:$0xff] %vm1038_vm2, %v5484_v44  ;;  %1080 = vst.msk [vmem:[#allocation7 + $0x88] sm:$0xff] %vm1038_vm2, %v5484_v44 }
 0x423   : > { %1081 = vst.msk [vmem:[#allocation7 + $0x90] sm:$0xff] %vm1038_vm2, %v5484_v44  ;;  %1082 = vst.msk [vmem:[#allocation7 + $0x98] sm:$0xff] %vm1038_vm2, %v5484_v44 }
 0x424   : > { %1083 = vst.msk [vmem:[#allocation7 + $0xa0] sm:$0xff] %vm1038_vm2, %v5484_v44  ;;  %1084 = vst.msk [vmem:[#allocation7 + $0xa8] sm:$0xff] %vm1038_vm2, %v5484_v44 }
 0x425   : > { %1085 = vst.msk [vmem:[#allocation7 + $0xb0] sm:$0xff] %vm1038_vm2, %v5484_v44  ;;  %1086 = vst.msk [vmem:[#allocation7 + $0xb8] sm:$0xff] %vm1038_vm2, %v5484_v44 }
 0x426 PF: > { %vm1123_vm3 = vcmask 1044480   ;;  %s7432_s21 = sld [smem:[#allocation50_spill]]  ;;  %vm1116_vm4 = vcmask 39936   ;;  %s7433_s25 = sld [smem:[#allocation51_spill]]  ;;  %v1202_v48 = vld [vmem:[#allocation2] sm:$0xff]  ;;  %v1206_v49 = vld [vmem:[#allocation3] sm:$0xff] }
 0x427   : > { %4987 = vmatprep.subr.msk.mxu0 %vm1123_vm3, %v5633_v0  ;;  %v5485_v50 = vmov 0   ;;  %v1204_v51 = vmul.f32 0.03125, %v1202_v48  ;;  %v1208_v52 = vmul.f32 0.03125, %v1206_v49  ;;  %v1203_v53 = vld [vmem:[#allocation2 + $0x8] sm:$0xf]  ;;  %v1366_v60 = vld [vmem:[#allocation4] sm:$0xff] }
 0x428   : > { %4988 = vmatpush3.msk.msra.mxu0 %vm1123_vm3, %v5633_v0  ;;  %5328 = vset.pattern.permute.xlu1 %v5485_v50  ;;  %v1205_v54 = vmul.f32 0.03125, %v1203_v53  ;;  %v1207_v55 = vld [vmem:[#allocation3 + $0x8] sm:$0xf]  ;;  %v1367_v62 = vld [vmem:[#allocation4 + $0x8] sm:$0xff]  ;;  %v1369_v2 = vmul.f32 0.03125, %v1366_v60  ;;  %v1373_v6 = vld [vmem:[#allocation5 + $0x8] sm:$0xff] }
 0x429   : > { %5327 = vset.pattern.permute.xlu0 %v5485_v50  ;;  %v1210_v56 = vmul.f32 %v1204_v51, %v1204_v51  ;;  %v1209_v57 = vmul.f32 0.03125, %v1207_v55  ;;  %v1370_v4 = vmul.f32 0.03125, %v1367_v62  ;;  %v1372_v5 = vld [vmem:[#allocation5] sm:$0xff]  ;;  %v1376_v9 = vmul.f32 0.03125, %v1373_v6  ;;  %v1368_v13 = vld [vmem:[#allocation4 + $0x10] sm:$0xff]  ;;  %v1374_v19 = vld [vmem:[#allocation5 + $0x10] sm:$0xff] }
 0x42a   : > { %1218 = vperm.xlu0 %5327, %v1204_v51   ;;  %v1211_v59 = vmul.f32 %v1205_v54, %v1205_v54  ;;  %v1375_v7 = vmul.f32 0.03125, %v1372_v5  ;;  %v1378_v8 = vmul.f32 %v1369_v2, %v1369_v2  ;;  %v1371_v16 = vmul.f32 0.03125, %v1368_v13  ;;  %s7434_s3 = sld [smem:[#allocation52_spill]]  ;;  %v1384_v25 = vld [vmem:[%s7402_s5] sm:$0xff]  ;;  %v1385_v26 = vld [vmem:[%s7402_s5 + $0x8] sm:$0xff]  ;;  %v1386_v32 = vld [vmem:[%s7402_s5 + $0x10] sm:$0xff] }
 0x42b   : > { %v1212_v61 = vsub.f32 %v1208_v52, %v1210_v56  ;;  %v1379_v10 = vmul.f32 %v1370_v4, %v1370_v4  ;;  %v1377_v22 = vmul.f32 0.03125, %v1374_v19  ;;  %v1447_v30 = vld [vmem:[%s7403_s6] sm:$0xff]  ;;  %v1448_v31 = vld [vmem:[%s7403_s6 + $0x8] sm:$0xff]  ;;  %v1449_v34 = vld [vmem:[%s7403_s6 + $0x10] sm:$0xff]  ;;  %v5486_v35 = vmov 0.0|0.0  }
 0x42c   : > { %v1114_v45 = vld [vmem:[%s7432_s21] sm:$0xff]  ;;  %v1115_v46 = vld [vmem:[%s7432_s21 + $0x8] sm:$0xf]  ;;  %v1213_v63 = vsub.f32 %v1209_v57, %v1211_v59  ;;  %v1381_v11 = vsub.f32 %v1375_v7, %v1378_v8  ;;  %v1380_v23 = vmul.f32 %v1371_v16, %v1371_v16  ;;  %5162 = vmatprep.subr.bf16.mxu1 %v5486_v35  ;;  %vm5487_vm5 = vmmov 0   ;;  %v1113_v60 = vld [vmem:[%s7401_s4 + $0x10] sm:$0xff] }
 0x42d   : > { %4989 = vmatprep.mubr.msk.f32.mxu0 %vm1116_vm4, %v1114_v45  ;;  %v1214_v47 = vld [vmem:[%s7433_s25] sm:$0xff]  ;;  %v1215_v58 = vld [vmem:[%s7433_s25 + $0x8] sm:$0xf]  ;;  %v1240_v1 = vadd.f32 1e-05, %v1212_v61  ;;  %v1382_v12 = vsub.f32 %v1376_v9, %v1379_v10  ;;  %v5488_v36 = vmov 0.0  }
 0x42e   : > { %4990 = vmatmul.mubr.msk.f32.vlgmr.msra.gmra.mrb[0].mxu0 %vm1116_vm4, %v1115_v46  ;;  %1230 = vperm.xlu1 %5328, %v1214_v47   ;;  %v1241_v3 = vadd.f32 1e-05, %v1213_v63  ;;  %v1423_v15 = vadd.f32 1e-05, %v1381_v11  ;;  %v1383_v24 = vsub.f32 %v1377_v22, %v1380_v23  ;;  %vm1282_vm6 = vcmask 1043456   ;;  %v1112_v59 = vld [vmem:[%s7401_s4 + $0x8] sm:$0xff] }
 0x42f   : > { %1223 = vperm.xlu0 %5327, %v1205_v54   ;;  %5329 = vrsqrt.f32 %v1240_v1  ;;  %v1424_v18 = vadd.f32 1e-05, %v1382_v12  ;;  %4996 = vmatprep.mubr.msk.f32.mxu1 %vm5487_vm5, %v5488_v36  ;;  %vm5489_vm7 = vmmov 1   ;;  %vm1272_vm9 = vcmask 97280   ;;  %v1087_v61 = vld [vmem:[%s7404_s7] sm:$0xff]  ;;  %v1101_v62 = vld [vmem:[%s7404_s7 + $0x70] sm:$0xff] }
 0x430   : > { %5331 = vrsqrt.f32 %v1241_v3  ;;  %v1256_v20 = vld [vmem:[%s7434_s3] sm:$0xff]  ;;  %v1257_v21 = vld [vmem:[%s7434_s3 + $0x8] sm:$0xf]  ;;  %v1425_v27 = vadd.f32 1e-05, %v1383_v24  ;;  %vm5164_vm8 = vmpackc.low %vm1282_vm6, %vm5489_vm7  ;;  %vm1471_vm10 = vcmask 195584  }
 0x431   : > { %5333 = vrsqrt.f32 %v1423_v15  ;;  %5011 = vmatprep.mubr.msk.f32.mxu0 %vm1471_vm10, %v1087_v61  ;;  %v1102_v35 = vld [vmem:[%s7404_s7 + $0x78] sm:$0xff]  ;;  %vm1753_vm11 = vcmask 130048   ;;  %vm1850_vm12 = vcmask 7168  }
 0x432   : > { %1235 = vperm.xlu1 %5328, %v1215_v58   ;;  %5335 = vrsqrt.f32 %v1424_v18  ;;  %v1111_v58 = vld [vmem:[%s7401_s4] sm:$0xff] }
 0x433   : > { %5337 = vrsqrt.f32 %v1425_v27 }
 0x439   : > { %v5330_v14 = vpop.eup %5329 }
 0x43a   : > { %v5332_v17 = vpop.eup %5331  ;;  %1246 = vperm.xlu0 %5327, %v5330_v14  }
 0x43b   : > { %1251 = vperm.xlu1 %5328, %v5332_v17   ;;  %v5334_v28 = vpop.eup %5333 }
 0x43c   : > { %v5336_v29 = vpop.eup %5335 }
 0x43d   : > { %v5338_v33 = vpop.eup %5337 }
 0x43e   : > { %1260 = vperm.xlu0 %5327, %v1256_v20  }
 0x43f   : > { %1265 = vperm.xlu1 %5328, %v1257_v21  }
 0x442   : > { %1389 = vperm.xlu0 %5327, %v1369_v2  }
 0x443   : > { %1394 = vperm.xlu1 %5328, %v1370_v4  }
 0x446   : > { %1407 = vperm.xlu0 %5327, %v1384_v25  }
 0x447   : > { %1412 = vperm.xlu1 %5328, %v1385_v26  }
 0x44a   : > { %1431 = vperm.xlu0 %5327, %v5334_v28  }
 0x44b   : > { %1436 = vperm.xlu1 %5328, %v5336_v29  }
 0x44e   : > { %1399 = vperm.xlu0 %5327, %v1371_v16  }
 0x44f   : > { %1452 = vperm.xlu1 %5328, %v1447_v30  }
 0x452   : > { %1457 = vperm.xlu0 %5327, %v1448_v31  }
 0x453   : > { %1417 = vperm.xlu1 %5328, %v1386_v32  }
 0x456   : > { %1441 = vperm.xlu0 %5327, %v5338_v33  }
 0x457   : > { %1462 = vperm.xlu1 %5328, %v1449_v34   ;;  %v1088_v34 = vld [vmem:[%s7404_s7 + $0x8] sm:$0xff] }
 0x4a9   : > { %v1219_v38 = vpop.permute.xlu0 %1218 }
 0x4ad   : > { %v1231_v37 = vpop.permute.xlu1 %1230 }
 0x4ae   : > { %v1224_v40 = vpop.permute.xlu0 %1223 }
 0x4b1   : > { %v1236_v39 = vpop.permute.xlu1 %1235 }
 0x4b9   : > { %v1247_v43 = vpop.permute.xlu0 %1246 }
 0x4ba   : > { %v1252_v41 = vpop.permute.xlu1 %1251 }
 0x4bd   : > { %v1261_v52 = vpop.permute.xlu0 %1260 }
 0x4be   : > { %v1266_v50 = vpop.permute.xlu1 %1265 }
 0x4c1   : > { %v1390_v63 = vpop.permute.xlu0 %1389 }
 0x4c2   : > { %v1395_v1 = vpop.permute.xlu1 %1394 }
 0x4c5   : > { %v1408_v2 = vpop.permute.xlu0 %1407 }
 0x4c6   : > { %v1413_v3 = vpop.permute.xlu1 %1412 }
 0x4c9   : > { %v1432_v4 = vpop.permute.xlu0 %1431 }
 0x4ca   : > { %v1437_v5 = vpop.permute.xlu1 %1436 }
 0x4cd   : > { %v1400_v6 = vpop.permute.xlu0 %1399 }
 0x4ce   : > { %v1453_v10 = vpop.permute.xlu1 %1452 }
 0x4d1   : > { %v1458_v16 = vpop.permute.xlu0 %1457 }
 0x4d2   : > { %v1418_v18 = vpop.permute.xlu1 %1417 }
 0x4d5   : > { %v1442_v26 = vpop.permute.xlu0 %1441 }
 0x4d6   : > { %v1463_v30 = vpop.permute.xlu1 %1462 }
 0x501   : > { %v4991_v42 = vpop.f32.mrb[0].mxu0 }
 0x502   : > { %v1227_v44 = vsub.f32 %v4991_v42, %v1224_v40  ;;  %v1193_v45 = vpop.f32.mrb[1].mxu0  ;;  %v1091_v40 = vld [vmem:[%s7404_s7 + $0x20] sm:$0xff]  ;;  %v1092_v42 = vld [vmem:[%s7404_s7 + $0x28] sm:$0xff] }
 0x503   : > { %v1226_v46 = vsub.f32 %v1193_v45, %v1219_v38  ;;  %v1104_v38 = vld [vmem:[%s7404_s7 + $0x88] sm:$0xff]  ;;  %v1107_v45 = vld [vmem:[%s7404_s7 + $0xa0] sm:$0xff] }
 0x504   : > { %v1239_v47 = vmul.f32 %v1236_v39, %v1227_v44  ;;  %v1090_v39 = vld [vmem:[%s7404_s7 + $0x18] sm:$0xff]  ;;  %v1093_v44 = vld [vmem:[%s7404_s7 + $0x30] sm:$0xff] }
 0x505   : > { %v1238_v48 = vmul.f32 %v1231_v37, %v1226_v46  ;;  %v1089_v37 = vld [vmem:[%s7404_s7 + $0x10] sm:$0xff]  ;;  %v1094_v46 = vld [vmem:[%s7404_s7 + $0x38] sm:$0xff] }
 0x506   : > { %v1255_v49 = vmul.f32 %v1252_v41, %v1239_v47  ;;  %v1105_v41 = vld [vmem:[%s7404_s7 + $0x90] sm:$0xff]  ;;  %v1108_v47 = vld [vmem:[%s7404_s7 + $0xa8] sm:$0xff] }
 0x507   : > { %v1254_v51 = vmul.f32 %v1247_v43, %v1238_v48  ;;  %v1106_v43 = vld [vmem:[%s7404_s7 + $0x98] sm:$0xff]  ;;  %v1095_v48 = vld [vmem:[%s7404_s7 + $0x40] sm:$0xff] }
 0x508   : > { %v1269_v53 = vadd.f32 %v1266_v50, %v1255_v49  ;;  %v1109_v49 = vld [vmem:[%s7404_s7 + $0xb0] sm:$0xff]  ;;  %v1096_v50 = vld [vmem:[%s7404_s7 + $0x48] sm:$0xff] }
 0x509   : > { %v1268_v54 = vadd.f32 %v1261_v52, %v1254_v51  ;;  %v1110_v51 = vld [vmem:[%s7404_s7 + $0xb8] sm:$0xff]  ;;  %v1097_v52 = vld [vmem:[%s7404_s7 + $0x50] sm:$0xff] }
 0x50a   : > { %v1271_v55 = vmax.f32 %v1269_v53, 0.0  ;;  %v1098_v53 = vld [vmem:[%s7404_s7 + $0x58] sm:$0xff] }
 0x50b   : > { %v1270_v56 = vmax.f32 %v1268_v54, 0.0  ;;  %v1099_v54 = vld [vmem:[%s7404_s7 + $0x60] sm:$0xff] }
 0x50d   : > { %v5163_v57 = vpack.c.bf16 %v1271_v55, %v1270_v56  ;;  %v1100_v55 = vld [vmem:[%s7404_s7 + $0x68] sm:$0xff] }
 0x50f   : > { %5165 = vmatpush3.bf16.msk.msra.mxu1 %vm5164_vm8, %v5163_v57 }
 0x512   : > { %4997 = vmatmul.mubr.msk.f32.vlgmr.msra.gmra.mrb[0].mxu1 %vm1272_vm9, %v1111_v58 }
 0x513   : > { %4999 = vmatprep.mubr.msk.f32.mxu1 %vm5487_vm5, %v5488_v36 }
 0x516   : > { %5000 = vmatmul.mubr.msk.f32.gmra.mrb[2].mxu1 %vm1272_vm9, %v1112_v59 }
 0x517   : > { %5002 = vmatprep.mubr.msk.f32.mxu1 %vm5487_vm5, %v5488_v36  ;;  %v1103_v36 = vld [vmem:[%s7404_s7 + $0x80] sm:$0xff] }
 0x51a   : > { %5003 = vmatmul.mubr.msk.f32.gmra.mrb[4].mxu1 %vm1272_vm9, %v1113_v60 }
 0x51b   : > { %5032 = vmatprep.mubr.msk.f32.mxu1 %vm1471_vm10, %v1101_v62 }
 0x5e5   : > { %v1352_v7 = vpop.f32.mrb[0].mxu1 }
 0x5e6   : > { %v1402_v8 = vsub.f32 %v1352_v7, %v1390_v63  ;;  %v4998_v9 = vpop.f32.mrb[1].mxu1 }
 0x5e8   : > { %v1420_v11 = vmul.f32 %v1408_v2, %v1402_v8 }
 0x5e9   : > { %v1357_v12 = vpop.f32.mrb[2].mxu1 }
 0x5ea   : > { %v1444_v13 = vmul.f32 %v1432_v4, %v1420_v11  ;;  %v1403_v14 = vsub.f32 %v1357_v12, %v1395_v1  ;;  %v5001_v15 = vpop.f32.mrb[3].mxu1 }
 0x5ec   : > { %v1421_v17 = vmul.f32 %v1413_v3, %v1403_v14  ;;  %v1465_v20 = vadd.f32 %v1453_v10, %v1444_v13 }
 0x5ed   : > { %v1362_v19 = vpop.f32.mrb[4].mxu1 }
 0x5ee   : > { %v1445_v21 = vmul.f32 %v1437_v5, %v1421_v17  ;;  %v1404_v22 = vsub.f32 %v1362_v19, %v1400_v6  ;;  %v5004_v23 = vpop.f32.mrb[5].mxu1  ;;  %v1468_v27 = vmax.f32 %v1465_v20, 0.0 }
 0x5f0   : > { %v1466_v24 = vadd.f32 %v1458_v16, %v1445_v21  ;;  %v1422_v25 = vmul.f32 %v1418_v18, %v1404_v22 }
 0x5f2   : > { %v1469_v28 = vmax.f32 %v1466_v24, 0.0  ;;  %v1446_v29 = vmul.f32 %v1442_v26, %v1422_v25 }
 0x5f4   : > { %v1467_v31 = vadd.f32 %v1463_v30, %v1446_v29  ;;  %v5166_v32 = vpack.c.bf16 %v1469_v28, %v1468_v27 }
 0x5f6   : > { %v1470_v33 = vmax.f32 %v1467_v31, 0.0  ;;  %5167 = vmatprep.subr.bf16.mxu0 %v5166_v32  ;;  %5252 = vmatprep.subr.bf16.mxu1 %v5166_v32 }
 0x5f7   : > { %5169 = vmatpush3.bf16.msra.mxu0 %v5166_v32  ;;  %5254 = vmatpush3.bf16.msra.mxu1 %v5166_v32 }
 0x5f8   : > { %5009 = vmatprep.subr.mxu0 %v1470_v33  ;;  %5253 = vmatprep.subr.mxu1 %v1470_v33 }
 0x5fb   : > { %5010 = vmatpush3.msra.mxu0 %v1470_v33  ;;  %5255 = vmatpush3.msra.mxu1 %v1470_v33 }
 0x5fc   : > { %5012 = vmatmul.mubr.msk.f32.vlgmr.msra.gmra.mrb[2].mxu0 %vm1471_vm10, %v1088_v34  ;;  %5033 = vmatmul.mubr.msk.f32.vlgmr.msra.gmra.mrb[6].mxu1 %vm1471_vm10, %v1102_v35 }
 0x5fd   : > { %5035 = vmatprep.mubr.msk.f32.mxu1 %vm1471_vm10, %v1103_v36  ;;  %5014 = vmatprep.mubr.msk.f32.mxu0 %vm1471_vm10, %v1089_v37 }
 0x600   : > { %5036 = vmatmul.mubr.msk.f32.gmra.mrb[8].mxu1 %vm1471_vm10, %v1104_v38  ;;  %5015 = vmatmul.mubr.msk.f32.gmra.mrb[4].mxu0 %vm1471_vm10, %v1090_v39 }
 0x601   : > { %5017 = vmatprep.mubr.msk.f32.mxu0 %vm1471_vm10, %v1091_v40  ;;  %5038 = vmatprep.mubr.msk.f32.mxu1 %vm1471_vm10, %v1105_v41 }
 0x604   : > { %5018 = vmatmul.mubr.msk.f32.gmra.mrb[6].mxu0 %vm1471_vm10, %v1092_v42  ;;  %5039 = vmatmul.mubr.msk.f32.gmra.mrb[10].mxu1 %vm1471_vm10, %v1106_v43 }
 0x605   : > { %5020 = vmatprep.mubr.msk.f32.mxu0 %vm1471_vm10, %v1093_v44  ;;  %5041 = vmatprep.mubr.msk.f32.mxu1 %vm1471_vm10, %v1107_v45 }
 0x608   : > { %5021 = vmatmul.mubr.msk.f32.gmra.mrb[8].mxu0 %vm1471_vm10, %v1094_v46  ;;  %5042 = vmatmul.mubr.msk.f32.gmra.mrb[12].mxu1 %vm1471_vm10, %v1108_v47 }
 0x609   : > { %5023 = vmatprep.mubr.msk.f32.mxu0 %vm1471_vm10, %v1095_v48  ;;  %5044 = vmatprep.mubr.msk.f32.mxu1 %vm1471_vm10, %v1109_v49 }
 0x60c   : > { %5024 = vmatmul.mubr.msk.f32.gmra.mrb[10].mxu0 %vm1471_vm10, %v1096_v50  ;;  %5045 = vmatmul.mubr.msk.f32.gmra.mrb[14].mxu1 %vm1471_vm10, %v1110_v51 }
 0x60d   : > { %5026 = vmatprep.mubr.msk.f32.mxu0 %vm1471_vm10, %v1097_v52 }
 0x610   : > { %5027 = vmatmul.mubr.msk.f32.gmra.mrb[12].mxu0 %vm1471_vm10, %v1098_v53 }
 0x611   : > { %5029 = vmatprep.mubr.msk.f32.mxu0 %vm1471_vm10, %v1099_v54 }
 0x614   : > { %5030 = vmatmul.mubr.msk.f32.gmra.mrb[14].mxu0 %vm1471_vm10, %v1100_v55 }
 0x6cf   : > { %v5013_v56 = vpop.f32.mrb[2].mxu0  ;;  %v5034_v57 = vpop.f32.mrb[6].mxu1 }
 0x6d0   : > { %v1799_v58 = vsel %vm1753_vm11, %v5034_v57, 0.0  ;;  %v1757_v59 = vsel %vm1753_vm11, %v5013_v56, 0.0  ;;  %v1610_v60 = vpop.f32.mrb[3].mxu0  ;;  %v1680_v61 = vpop.f32.mrb[7].mxu1  ;;  %v1900_v2 = vmul.f32 %v5013_v56, %v5013_v56  ;;  %v1914_v9 = vmul.f32 %v5034_v57, %v5034_v57 }
 0x6d1   : > { %1800 = vadd.xlane.f32.xlu0 %v1799_v58  ;;  %1758 = vadd.xlane.f32.xlu1 %v1757_v59  ;;  %v1754_v62 = vsel %vm1753_vm11, %v1610_v60, 0.0  ;;  %v1899_v3 = vmul.f32 %v1610_v60, %v1610_v60  ;;  %v1796_v4 = vsel %vm1753_vm11, %v1680_v61, 0.0  ;;  %v1913_v10 = vmul.f32 %v1680_v61, %v1680_v61 }
 0x6d2   : > { %v1926_v12 = vsel %vm1753_vm11, %v1900_v2, 0.0  ;;  %v1968_v18 = vsel %vm1753_vm11, %v1914_v9, 0.0 }
 0x6d3   : > { %v5893_v63 = vpop.f32.mrb[8].mxu1  ;;  %v5016_v1 = vpop.f32.mrb[4].mxu0  ;;  %v1923_v11 = vsel %vm1753_vm11, %v1899_v3, 0.0  ;;  %v1965_v17 = vsel %vm1753_vm11, %v1913_v10, 0.0 }
 0x6d4   : > { %v1690_v5 = vpop.f32.mrb[9].mxu1  ;;  %v1620_v6 = vpop.f32.mrb[5].mxu0  ;;  %v1763_v23 = vsel %vm1753_vm11, %v5016_v1, 0.0  ;;  %v1805_v37 = vsel %vm1753_vm11, %v5893_v63, 0.0  ;;  %v1902_v51 = vmul.f32 %v5016_v1, %v5016_v1  ;;  %v1916_v2 = vmul.f32 %v5893_v63, %v5893_v63 }
 0x6d5   : > { %1797 = vadd.xlane.f32.xlu1 %v1796_v4  ;;  %1755 = vadd.xlane.f32.xlu0 %v1754_v62  ;;  %v1802_v22 = vsel %vm1753_vm11, %v1690_v5, 0.0  ;;  %v1901_v25 = vmul.f32 %v1620_v6, %v1620_v6  ;;  %v1915_v43 = vmul.f32 %v1690_v5, %v1690_v5  ;;  %v1760_v55 = vsel %vm1753_vm11, %v1620_v6, 0.0 }
 0x6d6   : > { %v1932_v3 = vsel %vm1753_vm11, %v1902_v51, 0.0  ;;  %v1974_v6 = vsel %vm1753_vm11, %v1916_v2, 0.0  ;;  %v1732_v51 = vld [vmem:[#allocation6 + $0x18] sm:$0xff] }
 0x6d7   : > { %v5896_v7 = vpop.f32.mrb[6].mxu0  ;;  %v5898_v8 = vpop.f32.mrb[10].mxu1  ;;  %v1929_v44 = vsel %vm1753_vm11, %v1901_v25, 0.0  ;;  %v1971_v54 = vsel %vm1753_vm11, %v1915_v43, 0.0 }
 0x6d8   : > { %v5902_v13 = vpop.f32.mrb[7].mxu0  ;;  %v5904_v14 = vpop.f32.mrb[11].mxu1  ;;  %v1769_v63 = vsel %vm1753_vm11, %v5896_v7, 0.0 }
 0x6d9   : > { %1924 = vadd.xlane.f32.xlu1 %v1923_v11  ;;  %1927 = vadd.xlane.f32.xlu0 %v1926_v12  ;;  %v1766_v61 = vsel %vm1753_vm11, %v5902_v13, 0.0  ;;  %v1903_v4 = vmul.f32 %v5902_v13, %v5902_v13  ;;  %v1808_v5 = vsel %vm1753_vm11, %v5904_v14, 0.0  ;;  %v1917_v9 = vmul.f32 %v5904_v14, %v5904_v14 }
 0x6da   : > { %v1811_v11 = vsel %vm1753_vm11, %v5898_v8, 0.0  ;;  %v1904_v13 = vmul.f32 %v5896_v7, %v5896_v7 }
 0x6db   : > { %v5906_v15 = vpop.f32.mrb[8].mxu0  ;;  %v5908_v16 = vpop.f32.mrb[12].mxu1  ;;  %v1935_v10 = vsel %vm1753_vm11, %v1903_v4, 0.0  ;;  %v1977_v12 = vsel %vm1753_vm11, %v1917_v9, 0.0  ;;  %v1733_v9 = vld [vmem:[#allocation6 + $0x20] sm:$0xff] }
 0x6dc   : > { %v5912_v19 = vpop.f32.mrb[9].mxu0  ;;  %v1920_v20 = vmul.f32 %v5908_v16, %v5908_v16  ;;  %v5916_v21 = vpop.f32.mrb[13].mxu1 }
 0x6dd   : > { %1966 = vadd.xlane.f32.xlu1 %v1965_v17  ;;  %1969 = vadd.xlane.f32.xlu0 %v1968_v18  ;;  %v1772_v14 = vsel %vm1753_vm11, %v5912_v19, 0.0  ;;  %v1918_v17 = vmul.f32 %v5898_v8, %v5898_v8  ;;  %v1938_v18 = vsel %vm1753_vm11, %v1904_v13, 0.0  ;;  %v1775_v8 = vsel %vm1753_vm11, %v5906_v15, 0.0  ;;  %v1892_v13 = vld [vmem:[#allocation7 + $0x88] sm:$0xff] }
 0x6de   : > { %v5921_v24 = vsel %vm1753_vm11, %v1920_v20, 0.0  ;;  %v1905_v20 = vmul.f32 %v5912_v19, %v5912_v19  ;;  %v1817_v19 = vsel %vm1753_vm11, %v5908_v16, 0.0  ;;  %v1730_v16 = vld [vmem:[#allocation6 + $0x8] sm:$0xff] }
 0x6df   : > { %v5025_v26 = vpop.f32.mrb[10].mxu0  ;;  %v5046_v27 = vpop.f32.mrb[14].mxu1  ;;  %v1980_v7 = vsel %vm1753_vm11, %v1918_v17, 0.0 }
 0x6e0   : > { %v1908_v28 = vmul.f32 %v5025_v26, %v5025_v26  ;;  %v5923_v29 = vpop.f32.mrb[11].mxu0  ;;  %v1922_v30 = vmul.f32 %v5046_v27, %v5046_v27  ;;  %v1720_v31 = vpop.f32.mrb[15].mxu1  ;;  %v5926_v32 = vsel %vm1753_vm11, %v5025_v26, 0.0  ;;  %v5929_v33 = vsel %vm1753_vm11, %v5046_v27, 0.0 }
 0x6e1   : > { %1803 = vadd.xlane.f32.xlu1 %v1802_v22  ;;  %1764 = vadd.xlane.f32.xlu0 %v1763_v23  ;;  %v1907_v34 = vmul.f32 %v5923_v29, %v5923_v29  ;;  %v1921_v35 = vmul.f32 %v1720_v31, %v1720_v31  ;;  %v5934_v36 = vsel %vm1753_vm11, %v1720_v31, 0.0  ;;  %v1814_v22 = vsel %vm1753_vm11, %v5916_v21, 0.0 }
 0x6e2   : > { %v5939_v38 = vsel %vm1753_vm11, %v1908_v28, 0.0  ;;  %v5942_v39 = vsel %vm1753_vm11, %v1922_v30, 0.0  ;;  %v1919_v23 = vmul.f32 %v5916_v21, %v5916_v21  ;;  %v1941_v25 = vsel %vm1753_vm11, %v1905_v20, 0.0 }
 0x6e3   : > { %v5945_v40 = vsel %vm1753_vm11, %v1907_v34, 0.0  ;;  %v5028_v41 = vpop.f32.mrb[12].mxu0  ;;  %v5948_v42 = vsel %vm1753_vm11, %v1921_v35, 0.0  ;;  %v1906_v27 = vmul.f32 %v5906_v15, %v5906_v15  ;;  %v1778_v21 = vsel %vm1753_vm11, %v5923_v29, 0.0  ;;  %v1744_v15 = vld [vmem:[#allocation6 + $0x78] sm:$0xff] }
 0x6e4   : > { %v1910_v45 = vmul.f32 %v5028_v41, %v5028_v41  ;;  %v1660_v46 = vpop.f32.mrb[13].mxu0  ;;  %v5952_v47 = vsel %vm1753_vm11, %v5028_v41, 0.0  ;;  %v1983_v26 = vsel %vm1753_vm11, %v1919_v23, 0.0  ;;  %v1879_v23 = vld [vmem:[#allocation7 + $0x20] sm:$0xff] }
 0x6e5   : > { %1806 = vadd.xlane.f32.xlu0 %v1805_v37  ;;  %1930 = vadd.xlane.f32.xlu1 %v1929_v44  ;;  %v1909_v48 = vmul.f32 %v1660_v46, %v1660_v46  ;;  %v5955_v49 = vsel %vm1753_vm11, %v1660_v46, 0.0  ;;  %v1944_v28 = vsel %vm1753_vm11, %v1906_v27, 0.0  ;;  %v1889_v44 = vld [vmem:[#allocation7 + $0x70] sm:$0xff]  ;;  %v1748_v27 = vld [vmem:[#allocation6 + $0x98] sm:$0xff] }
 0x6e6   : > { %v5958_v50 = vsel %vm1753_vm11, %v1910_v45, 0.0  ;;  %v1890_v45 = vld [vmem:[#allocation7 + $0x78] sm:$0xff] }
 0x6e7   : > { %v5961_v52 = vsel %vm1753_vm11, %v1909_v48, 0.0  ;;  %v5031_v53 = vpop.f32.mrb[14].mxu0 }
 0x6e8   : > { %v1912_v56 = vmul.f32 %v5031_v53, %v5031_v53  ;;  %v1670_v57 = vpop.f32.mrb[15].mxu0  ;;  %v1793_v58 = vsel %vm1753_vm11, %v5031_v53, 0.0 }
 0x6e9   : > { %1972 = vadd.xlane.f32.xlu1 %v1971_v54  ;;  %1761 = vadd.xlane.f32.xlu0 %v1760_v55  ;;  %v1911_v59 = vmul.f32 %v1670_v57, %v1670_v57  ;;  %v1790_v60 = vsel %vm1753_vm11, %v1670_v57, 0.0  ;;  %v1877_v57 = vld [vmem:[#allocation7 + $0x10] sm:$0xff] }
 0x6ea   : > { %v1962_v62 = vsel %vm1753_vm11, %v1912_v56, 0.0  ;;  %v1746_v56 = vld [vmem:[#allocation6 + $0x88] sm:$0xff] }
 0x6eb   : > { %v1959_v1 = vsel %vm1753_vm11, %v1911_v59, 0.0 }
 0x6ed   : > { %1933 = vadd.xlane.f32.xlu0 %v1932_v3  ;;  %1767 = vadd.xlane.f32.xlu1 %v1766_v61 }
 0x6f1   : > { %1975 = vadd.xlane.f32.xlu0 %v1974_v6  ;;  %1809 = vadd.xlane.f32.xlu1 %v1808_v5  ;;  %v1878_v6 = vld [vmem:[#allocation7 + $0x18] sm:$0xff] }
 0x6f5   : > { %1770 = vadd.xlane.f32.xlu0 %v1769_v63  ;;  %1936 = vadd.xlane.f32.xlu1 %v1935_v10 }
 0x6f9   : > { %1812 = vadd.xlane.f32.xlu0 %v1811_v11  ;;  %1978 = vadd.xlane.f32.xlu1 %v1977_v12 }
 0x6fd   : > { %1939 = vadd.xlane.f32.xlu0 %v1938_v18  ;;  %1773 = vadd.xlane.f32.xlu1 %v1772_v14  ;;  %v1747_v14 = vld [vmem:[#allocation6 + $0x90] sm:$0xff] }
 0x701   : > { %1981 = vadd.xlane.f32.xlu0 %v1980_v7  ;;  %1815 = vadd.xlane.f32.xlu1 %v1814_v22  ;;  %v1734_v7 = vld [vmem:[#allocation6 + $0x28] sm:$0xff] }
 0x705   : > { %1776 = vadd.xlane.f32.xlu0 %v1775_v8  ;;  %1942 = vadd.xlane.f32.xlu1 %v1941_v25 }
 0x709   : > { %1818 = vadd.xlane.f32.xlu0 %v1817_v19  ;;  %1984 = vadd.xlane.f32.xlu1 %v1983_v26 }
 0x70d   : > { %1945 = vadd.xlane.f32.xlu0 %v1944_v28  ;;  %1779 = vadd.xlane.f32.xlu1 %v1778_v21  ;;  %v1893_v21 = vld [vmem:[#allocation7 + $0x90] sm:$0xff] }
 0x711   : > { %1987 = vadd.xlane.f32.xlu0 %v5921_v24  ;;  %1821 = vadd.xlane.f32.xlu1 %v5934_v36 }
 0x715   : > { %1782 = vadd.xlane.f32.xlu0 %v5926_v32  ;;  %1948 = vadd.xlane.f32.xlu1 %v5945_v40  ;;  %v1743_v32 = vld [vmem:[#allocation6 + $0x70] sm:$0xff]  ;;  %v1876_v40 = vld [vmem:[#allocation7 + $0x8] sm:$0xff] }
 0x719   : > { %1824 = vadd.xlane.f32.xlu0 %v5929_v33  ;;  %1785 = vadd.xlane.f32.xlu1 %v5955_v49  ;;  %v1729_v33 = vld [vmem:[#allocation6] sm:$0xff] }
 0x71d   : > { %1951 = vadd.xlane.f32.xlu0 %v5939_v38  ;;  %1954 = vadd.xlane.f32.xlu1 %v5961_v52  ;;  %v1875_v38 = vld [vmem:[#allocation7] sm:$0xff] }
 0x721   : > { %1788 = vadd.xlane.f32.xlu0 %v5952_v47  ;;  %1791 = vadd.xlane.f32.xlu1 %v1790_v60 }
 0x725   : > { %1957 = vadd.xlane.f32.xlu0 %v5958_v50  ;;  %1960 = vadd.xlane.f32.xlu1 %v1959_v1  ;;  %v1745_v50 = vld [vmem:[#allocation6 + $0x80] sm:$0xff]  ;;  %v1731_v1 = vld [vmem:[#allocation6 + $0x10] sm:$0xff] }
 0x729   : > { %1794 = vadd.xlane.f32.xlu0 %v1793_v58  ;;  %1990 = vadd.xlane.f32.xlu1 %v5948_v42 }
 0x72d   : > { %1963 = vadd.xlane.f32.xlu0 %v1962_v62  ;;  %v1891_v62 = vld [vmem:[#allocation7 + $0x80] sm:$0xff] }
 0x731   : > { %1993 = vadd.xlane.f32.xlu0 %v5942_v39 }
 0x75e   : > { %v1801_v24 = vpop.xlane.xlu0 %1800  ;;  %v1759_v29 = vpop.xlane.xlu1 %1758 }
 0x75f   : > { %v1841_v30 = vadd.f32 %v1801_v24, %v1744_v15  ;;  %v1827_v31 = vadd.f32 %v1759_v29, %v1730_v16  ;;  %v1880_v29 = vld [vmem:[#allocation7 + $0x28] sm:$0xff] }
 0x761   : > { %1866 = vst.msk [vmem:[#allocation6 + $0x78] sm:$0xff] %vm1850_vm12, %v1841_v30  ;;  %1852 = vst.msk [vmem:[#allocation6 + $0x8] sm:$0xff] %vm1850_vm12, %v1827_v31  ;;  %v1735_v30 = vld [vmem:[#allocation6 + $0x30] sm:$0xff] }
 0x762   : > { %v1798_v34 = vpop.xlane.xlu1 %1797  ;;  %v1756_v35 = vpop.xlane.xlu0 %1755 }
 0x763   : > { %v1840_v36 = vadd.f32 %v1798_v34, %v1743_v32  ;;  %v1826_v37 = vadd.f32 %v1756_v35, %v1729_v33  ;;  %v1894_v35 = vld [vmem:[#allocation7 + $0x98] sm:$0xff] }
 0x765   : > { %1865 = vst.msk [vmem:[#allocation6 + $0x70] sm:$0xff] %vm1850_vm12, %v1840_v36  ;;  %1851 = vst.msk [vmem:[#allocation6] sm:$0xff] %vm1850_vm12, %v1826_v37  ;;  %v1749_v36 = vld [vmem:[#allocation6 + $0xa0] sm:$0xff] }
 0x766   : > { %v1925_v39 = vpop.xlane.xlu1 %1924  ;;  %v1928_v41 = vpop.xlane.xlu0 %1927 }
 0x767   : > { %v1995_v42 = vadd.f32 %v1925_v39, %v1875_v38  ;;  %v1996_v43 = vadd.f32 %v1928_v41, %v1876_v40  ;;  %v1736_v41 = vld [vmem:[#allocation6 + $0x38] sm:$0xff] }
 0x769   : > { %2019 = vst.msk [vmem:[#allocation7] sm:$0xff] %vm1850_vm12, %v1995_v42  ;;  %2020 = vst.msk [vmem:[#allocation7 + $0x8] sm:$0xff] %vm1850_vm12, %v1996_v43  ;;  %v1881_v42 = vld [vmem:[#allocation7 + $0x30] sm:$0xff] }
 0x76a   : > { %v1967_v46 = vpop.xlane.xlu1 %1966  ;;  %v1970_v47 = vpop.xlane.xlu0 %1969 }
 0x76b   : > { %v2009_v48 = vadd.f32 %v1967_v46, %v1889_v44  ;;  %v2010_v49 = vadd.f32 %v1970_v47, %v1890_v45  ;;  %v1750_v47 = vld [vmem:[#allocation6 + $0xa8] sm:$0xff] }
 0x76d   : > { %2033 = vst.msk [vmem:[#allocation7 + $0x70] sm:$0xff] %vm1850_vm12, %v2009_v48  ;;  %2034 = vst.msk [vmem:[#allocation7 + $0x78] sm:$0xff] %vm1850_vm12, %v2010_v49  ;;  %v1895_v48 = vld [vmem:[#allocation7 + $0xa0] sm:$0xff] }
 0x76e   : > { %v1804_v52 = vpop.xlane.xlu1 %1803  ;;  %v1765_v53 = vpop.xlane.xlu0 %1764 }
 0x76f   : > { %v1842_v54 = vadd.f32 %v1804_v52, %v1745_v50  ;;  %v1829_v55 = vadd.f32 %v1765_v53, %v1732_v51  ;;  %v1882_v53 = vld [vmem:[#allocation7 + $0x38] sm:$0xff] }
 0x771   : > { %1867 = vst.msk [vmem:[#allocation6 + $0x80] sm:$0xff] %vm1850_vm12, %v1842_v54  ;;  %1854 = vst.msk [vmem:[#allocation6 + $0x18] sm:$0xff] %vm1850_vm12, %v1829_v55  ;;  %v1737_v54 = vld [vmem:[#allocation6 + $0x40] sm:$0xff] }
 0x772   : > { %v1807_v58 = vpop.xlane.xlu0 %1806  ;;  %v1931_v59 = vpop.xlane.xlu1 %1930 }
 0x773   : > { %v1843_v60 = vadd.f32 %v1807_v58, %v1746_v56  ;;  %v1997_v61 = vadd.f32 %v1931_v59, %v1877_v57  ;;  %v1896_v59 = vld [vmem:[#allocation7 + $0xa8] sm:$0xff] }
 0x775   : > { %1868 = vst.msk [vmem:[#allocation6 + $0x88] sm:$0xff] %vm1850_vm12, %v1843_v60  ;;  %2021 = vst.msk [vmem:[#allocation7 + $0x10] sm:$0xff] %vm1850_vm12, %v1997_v61  ;;  %v1751_v60 = vld [vmem:[#allocation6 + $0xb0] sm:$0xff] }
 0x776   : > { %v1973_v2 = vpop.xlane.xlu1 %1972  ;;  %v1762_v3 = vpop.xlane.xlu0 %1761 }
 0x777   : > { %v2011_v4 = vadd.f32 %v1973_v2, %v1891_v62  ;;  %v1828_v5 = vadd.f32 %v1762_v3, %v1731_v1  ;;  %v1738_v3 = vld [vmem:[#allocation6 + $0x48] sm:$0xff] }
 0x779   : > { %2035 = vst.msk [vmem:[#allocation7 + $0x80] sm:$0xff] %vm1850_vm12, %v2011_v4  ;;  %1853 = vst.msk [vmem:[#allocation6 + $0x10] sm:$0xff] %vm1850_vm12, %v1828_v5  ;;  %v1883_v4 = vld [vmem:[#allocation7 + $0x40] sm:$0xff] }
 0x77a   : > { %v1934_v63 = vpop.xlane.xlu0 %1933  ;;  %v1768_v10 = vpop.xlane.xlu1 %1767 }
 0x77b   : > { %v1998_v11 = vadd.f32 %v1934_v63, %v1878_v6  ;;  %v1830_v12 = vadd.f32 %v1768_v10, %v1733_v9  ;;  %v1752_v10 = vld [vmem:[#allocation6 + $0xb8] sm:$0xff] }
 0x77d   : > { %2022 = vst.msk [vmem:[#allocation7 + $0x18] sm:$0xff] %vm1850_vm12, %v1998_v11  ;;  %1855 = vst.msk [vmem:[#allocation6 + $0x20] sm:$0xff] %vm1850_vm12, %v1830_v12  ;;  %v1739_v11 = vld [vmem:[#allocation6 + $0x50] sm:$0xff] }
 0x77e   : > { %v1976_v17 = vpop.xlane.xlu0 %1975  ;;  %v1810_v18 = vpop.xlane.xlu1 %1809 }
 0x77f   : > { %v2012_v20 = vadd.f32 %v1976_v17, %v1892_v13  ;;  %v1844_v22 = vadd.f32 %v1810_v18, %v1747_v14  ;;  %v1884_v18 = vld [vmem:[#allocation7 + $0x48] sm:$0xff] }
 0x781   : > { %2036 = vst.msk [vmem:[#allocation7 + $0x88] sm:$0xff] %vm1850_vm12, %v2012_v20  ;;  %1869 = vst.msk [vmem:[#allocation6 + $0x90] sm:$0xff] %vm1850_vm12, %v1844_v22  ;;  %v1885_v20 = vld [vmem:[#allocation7 + $0x50] sm:$0xff] }
 0x782   : > { %v1771_v8 = vpop.xlane.xlu0 %1770  ;;  %v1937_v25 = vpop.xlane.xlu1 %1936 }
 0x783   : > { %v1831_v19 = vadd.f32 %v1771_v8, %v1734_v7  ;;  %v1999_v26 = vadd.f32 %v1937_v25, %v1879_v23  ;;  %v1740_v25 = vld [vmem:[#allocation6 + $0x58] sm:$0xff] }
 0x785   : > { %1856 = vst.msk [vmem:[#allocation6 + $0x28] sm:$0xff] %vm1850_vm12, %v1831_v19  ;;  %2023 = vst.msk [vmem:[#allocation7 + $0x20] sm:$0xff] %vm1850_vm12, %v1999_v26  ;;  %v1741_v19 = vld [vmem:[#allocation6 + $0x60] sm:$0xff] }
 0x786   : > { %v1813_v28 = vpop.xlane.xlu0 %1812  ;;  %v1979_v15 = vpop.xlane.xlu1 %1978 }
 0x787   : > { %v1845_v16 = vadd.f32 %v1813_v28, %v1748_v27  ;;  %v2013_v24 = vadd.f32 %v1979_v15, %v1893_v21  ;;  %v1886_v15 = vld [vmem:[#allocation7 + $0x58] sm:$0xff] }
 0x789   : > { %1870 = vst.msk [vmem:[#allocation6 + $0x98] sm:$0xff] %vm1850_vm12, %v1845_v16  ;;  %2037 = vst.msk [vmem:[#allocation7 + $0x90] sm:$0xff] %vm1850_vm12, %v2013_v24  ;;  %v1887_v16 = vld [vmem:[#allocation7 + $0x60] sm:$0xff] }
 0x78a   : > { %v1940_v31 = vpop.xlane.xlu0 %1939  ;;  %v1774_v32 = vpop.xlane.xlu1 %1773 }
 0x78b   : > { %v2000_v33 = vadd.f32 %v1940_v31, %v1880_v29  ;;  %v1832_v34 = vadd.f32 %v1774_v32, %v1735_v30  ;;  %v1742_v32 = vld [vmem:[#allocation6 + $0x68] sm:$0xff] }
 0x78d   : > { %2024 = vst.msk [vmem:[#allocation7 + $0x28] sm:$0xff] %vm1850_vm12, %v2000_v33  ;;  %1857 = vst.msk [vmem:[#allocation6 + $0x30] sm:$0xff] %vm1850_vm12, %v1832_v34  ;;  %v1897_v33 = vld [vmem:[#allocation7 + $0xb0] sm:$0xff] }
 0x78e   : > { %v1982_v37 = vpop.xlane.xlu0 %1981  ;;  %v1816_v38 = vpop.xlane.xlu1 %1815 }
 0x78f   : > { %v2014_v40 = vadd.f32 %v1982_v37, %v1894_v35  ;;  %v1846_v39 = vadd.f32 %v1816_v38, %v1749_v36  ;;  %v1888_v38 = vld [vmem:[#allocation7 + $0x68] sm:$0xff] }
 0x791   : > { %2038 = vst.msk [vmem:[#allocation7 + $0x98] sm:$0xff] %vm1850_vm12, %v2014_v40  ;;  %1871 = vst.msk [vmem:[#allocation6 + $0xa0] sm:$0xff] %vm1850_vm12, %v1846_v39 }
 0x792   : > { %v1777_v43 = vpop.xlane.xlu0 %1776  ;;  %v1943_v44 = vpop.xlane.xlu1 %1942 }
 0x793   : > { %v1833_v45 = vadd.f32 %v1777_v43, %v1736_v41  ;;  %v2001_v46 = vadd.f32 %v1943_v44, %v1881_v42  ;;  %v1898_v41 = vld [vmem:[#allocation7 + $0xb8] sm:$0xff] }
 0x795   : > { %1858 = vst.msk [vmem:[#allocation6 + $0x38] sm:$0xff] %vm1850_vm12, %v1833_v45  ;;  %2025 = vst.msk [vmem:[#allocation7 + $0x30] sm:$0xff] %vm1850_vm12, %v2001_v46 }
 0x796   : > { %v1819_v49 = vpop.xlane.xlu0 %1818  ;;  %v1985_v50 = vpop.xlane.xlu1 %1984 }
 0x797   : > { %v1847_v51 = vadd.f32 %v1819_v49, %v1750_v47  ;;  %v2015_v52 = vadd.f32 %v1985_v50, %v1895_v48 }
 0x799   : > { %1872 = vst.msk [vmem:[#allocation6 + $0xa8] sm:$0xff] %vm1850_vm12, %v1847_v51  ;;  %2039 = vst.msk [vmem:[#allocation7 + $0xa0] sm:$0xff] %vm1850_vm12, %v2015_v52 }
 0x79a   : > { %v1946_v55 = vpop.xlane.xlu0 %1945  ;;  %v1780_v56 = vpop.xlane.xlu1 %1779 }
 0x79b   : > { %v2002_v57 = vadd.f32 %v1946_v55, %v1882_v53  ;;  %v1834_v58 = vadd.f32 %v1780_v56, %v1737_v54 }
 0x79d   : > { %2026 = vst.msk [vmem:[#allocation7 + $0x38] sm:$0xff] %vm1850_vm12, %v2002_v57  ;;  %1859 = vst.msk [vmem:[#allocation6 + $0x40] sm:$0xff] %vm1850_vm12, %v1834_v58 }
 0x79e   : > { %v1988_v61 = vpop.xlane.xlu0 %1987  ;;  %v1822_v62 = vpop.xlane.xlu1 %1821 }
 0x79f   : > { %v2016_v1 = vadd.f32 %v1988_v61, %v1896_v59  ;;  %v1848_v2 = vadd.f32 %v1822_v62, %v1751_v60 }
 0x7a1   : > { %2040 = vst.msk [vmem:[#allocation7 + $0xa8] sm:$0xff] %vm1850_vm12, %v2016_v1  ;;  %1873 = vst.msk [vmem:[#allocation6 + $0xb0] sm:$0xff] %vm1850_vm12, %v1848_v2 }
 0x7a2   : > { %v1783_v5 = vpop.xlane.xlu0 %1782  ;;  %v1949_v6 = vpop.xlane.xlu1 %1948 }
 0x7a3   : > { %v1835_v9 = vadd.f32 %v1783_v5, %v1738_v3  ;;  %v2003_v63 = vadd.f32 %v1949_v6, %v1883_v4 }
 0x7a5   : > { %1860 = vst.msk [vmem:[#allocation6 + $0x48] sm:$0xff] %vm1850_vm12, %v1835_v9  ;;  %2027 = vst.msk [vmem:[#allocation7 + $0x40] sm:$0xff] %vm1850_vm12, %v2003_v63 }
 0x7a6   : > { %v1825_v12 = vpop.xlane.xlu0 %1824  ;;  %v1786_v13 = vpop.xlane.xlu1 %1785 }
 0x7a7   : > { %v1849_v14 = vadd.f32 %v1825_v12, %v1752_v10  ;;  %v1836_v17 = vadd.f32 %v1786_v13, %v1739_v11 }
 0x7a9   : > { %1874 = vst.msk [vmem:[#allocation6 + $0xb8] sm:$0xff] %vm1850_vm12, %v1849_v14  ;;  %1861 = vst.msk [vmem:[#allocation6 + $0x50] sm:$0xff] %vm1850_vm12, %v1836_v17 }
 0x7aa   : > { %v1952_v22 = vpop.xlane.xlu0 %1951  ;;  %v1955_v7 = vpop.xlane.xlu1 %1954 }
 0x7ab   : > { %v2004_v23 = vadd.f32 %v1952_v22, %v1884_v18  ;;  %v2005_v8 = vadd.f32 %v1955_v7, %v1885_v20 }
 0x7ad   : > { %2028 = vst.msk [vmem:[#allocation7 + $0x48] sm:$0xff] %vm1850_vm12, %v2004_v23  ;;  %2029 = vst.msk [vmem:[#allocation7 + $0x50] sm:$0xff] %vm1850_vm12, %v2005_v8 }
 0x7ae   : > { %v1789_v26 = vpop.xlane.xlu0 %1788  ;;  %v1792_v27 = vpop.xlane.xlu1 %1791 }
 0x7af   : > { %v1837_v21 = vadd.f32 %v1789_v26, %v1740_v25  ;;  %v1838_v28 = vadd.f32 %v1792_v27, %v1741_v19 }
 0x7b1   : > { %1862 = vst.msk [vmem:[#allocation6 + $0x58] sm:$0xff] %vm1850_vm12, %v1837_v21  ;;  %1863 = vst.msk [vmem:[#allocation6 + $0x60] sm:$0xff] %vm1850_vm12, %v1838_v28 }
 0x7b2   : > { %v1958_v24 = vpop.xlane.xlu0 %1957  ;;  %v1961_v29 = vpop.xlane.xlu1 %1960 }
 0x7b3   : > { %v2006_v30 = vadd.f32 %v1958_v24, %v1886_v15  ;;  %v2007_v31 = vadd.f32 %v1961_v29, %v1887_v16 }
 0x7b5   : > { %2030 = vst.msk [vmem:[#allocation7 + $0x58] sm:$0xff] %vm1850_vm12, %v2006_v30  ;;  %2031 = vst.msk [vmem:[#allocation7 + $0x60] sm:$0xff] %vm1850_vm12, %v2007_v31 }
 0x7b6   : > { %v1795_v34 = vpop.xlane.xlu0 %1794  ;;  %v1991_v35 = vpop.xlane.xlu1 %1990 }
 0x7b7   : > { %v1839_v36 = vadd.f32 %v1795_v34, %v1742_v32  ;;  %v2017_v37 = vadd.f32 %v1991_v35, %v1897_v33 }
 0x7b9   : > { %1864 = vst.msk [vmem:[#allocation6 + $0x68] sm:$0xff] %vm1850_vm12, %v1839_v36  ;;  %2041 = vst.msk [vmem:[#allocation7 + $0xb0] sm:$0xff] %vm1850_vm12, %v2017_v37 }
 0x7ba   : > { %v1964_v40 = vpop.xlane.xlu0 %1963 }
 0x7bb   : > { %v2008_v39 = vadd.f32 %v1964_v40, %v1888_v38 }
 0x7bd   : > { %2032 = vst.msk [vmem:[#allocation7 + $0x68] sm:$0xff] %vm1850_vm12, %v2008_v39 }
 0x7be   : > { %v1994_v42 = vpop.xlane.xlu0 %1993 }
 0x7bf   : > { %v2018_v43 = vadd.f32 %v1994_v42, %v1898_v41 }
 0x7c1   : > { %2042 = vst.msk [vmem:[#allocation7 + $0xb8] sm:$0xff] %vm1850_vm12, %v2018_v43 }
 0x7c2 PF: > { %p4796_p10 = scmp.ne.s32.totalorder %s5463_s28, 3 }
 0x7c4   : > { %2046 = sbr.rel (%p4796_p10) target bundleno = 4285 (0x10bd), region = 120 }
 0x7cb   : > { %2048 = sbr.rel (!%p588_p6) target bundleno = 2008 (0x7d8), region = 124  ;;  %vm2049_vm13 = vcmask (%p588_p6), 15360   ;;  %v5490_v44 = vmov (%p588_p6), -inf  }
 0x7cc   : > { %2050 = vst.msk [vmem:[#allocation8] sm:$0xff] (%p588_p6), %vm2049_vm13, %v5490_v44  ;;  %2051 = vst.msk [vmem:[#allocation8 + $0x8] sm:$0xff] (%p588_p6), %vm2049_vm13, %v5490_v44 }
 0x7cd   : > { %2052 = vst.msk [vmem:[#allocation8 + $0x10] sm:$0xff] (%p588_p6), %vm2049_vm13, %v5490_v44  ;;  %2053 = vst.msk [vmem:[#allocation8 + $0x18] sm:$0xff] (%p588_p6), %vm2049_vm13, %v5490_v44 }
 0x7ce   : > { %2054 = vst.msk [vmem:[#allocation8 + $0x20] sm:$0xff] (%p588_p6), %vm2049_vm13, %v5490_v44  ;;  %2055 = vst.msk [vmem:[#allocation8 + $0x28] sm:$0xff] (%p588_p6), %vm2049_vm13, %v5490_v44 }
 0x7cf   : > { %2056 = vst.msk [vmem:[#allocation8 + $0x30] sm:$0xff] (%p588_p6), %vm2049_vm13, %v5490_v44  ;;  %2057 = vst.msk [vmem:[#allocation8 + $0x38] sm:$0xff] (%p588_p6), %vm2049_vm13, %v5490_v44 }
 0x7d0   : > { %2058 = vst.msk [vmem:[#allocation8 + $0x40] sm:$0xff] (%p588_p6), %vm2049_vm13, %v5490_v44  ;;  %2059 = vst.msk [vmem:[#allocation8 + $0x48] sm:$0xff] (%p588_p6), %vm2049_vm13, %v5490_v44 }
 0x7d1   : > { %2060 = vst.msk [vmem:[#allocation8 + $0x50] sm:$0xff] (%p588_p6), %vm2049_vm13, %v5490_v44  ;;  %2061 = vst.msk [vmem:[#allocation8 + $0x58] sm:$0xff] (%p588_p6), %vm2049_vm13, %v5490_v44 }
 0x7d2   : > { %2062 = vst.msk [vmem:[#allocation8 + $0x60] sm:$0xff] %vm2049_vm13, %v5490_v44  ;;  %2063 = vst.msk [vmem:[#allocation8 + $0x68] sm:$0xff] %vm2049_vm13, %v5490_v44 }
 0x7d3   : > { %2064 = vst.msk [vmem:[#allocation8 + $0x70] sm:$0xff] %vm2049_vm13, %v5490_v44  ;;  %2065 = vst.msk [vmem:[#allocation8 + $0x78] sm:$0xff] %vm2049_vm13, %v5490_v44 }
 0x7d4   : > { %2066 = vst.msk [vmem:[#allocation8 + $0x80] sm:$0xff] %vm2049_vm13, %v5490_v44  ;;  %2067 = vst.msk [vmem:[#allocation8 + $0x88] sm:$0xff] %vm2049_vm13, %v5490_v44 }
 0x7d5   : > { %2068 = vst.msk [vmem:[#allocation8 + $0x90] sm:$0xff] %vm2049_vm13, %v5490_v44  ;;  %2069 = vst.msk [vmem:[#allocation8 + $0x98] sm:$0xff] %vm2049_vm13, %v5490_v44 }
 0x7d6   : > { %2070 = vst.msk [vmem:[#allocation8 + $0xa0] sm:$0xff] %vm2049_vm13, %v5490_v44  ;;  %2071 = vst.msk [vmem:[#allocation8 + $0xa8] sm:$0xff] %vm2049_vm13, %v5490_v44 }
 0x7d7   : > { %2072 = vst.msk [vmem:[#allocation8 + $0xb0] sm:$0xff] %vm2049_vm13, %v5490_v44  ;;  %2073 = vst.msk [vmem:[#allocation8 + $0xb8] sm:$0xff] %vm2049_vm13, %v5490_v44 }
 0x7d8 PF: > { %vm2110_vm14 = vcmask 1044480   ;;  %s7435_s20 = sld [smem:[#allocation50_spill]]  ;;  %vm2103_vm15 = vcmask 39936   ;;  %s7436_s24 = sld [smem:[#allocation51_spill]]  ;;  %v2189_v48 = vld [vmem:[#allocation2] sm:$0xff]  ;;  %v2193_v49 = vld [vmem:[#allocation3] sm:$0xff] }
 0x7d9   : > { %5047 = vmatprep.subr.msk.mxu0 %vm2110_vm14, %v5633_v0  ;;  %v5491_v50 = vmov 0   ;;  %v2191_v51 = vmul.f32 0.03125, %v2189_v48  ;;  %v2195_v52 = vmul.f32 0.03125, %v2193_v49  ;;  %v2190_v53 = vld [vmem:[#allocation2 + $0x8] sm:$0xf]  ;;  %v2353_v1 = vld [vmem:[#allocation4] sm:$0xff] }
 0x7da   : > { %5048 = vmatpush3.msk.msra.mxu0 %vm2110_vm14, %v5633_v0  ;;  %5340 = vset.pattern.permute.xlu1 %v5491_v50  ;;  %v2192_v54 = vmul.f32 0.03125, %v2190_v53  ;;  %v2194_v55 = vld [vmem:[#allocation3 + $0x8] sm:$0xf]  ;;  %v2354_v2 = vld [vmem:[#allocation4 + $0x8] sm:$0xff]  ;;  %v2356_v3 = vmul.f32 0.03125, %v2353_v1  ;;  %v2355_v6 = vld [vmem:[#allocation4 + $0x10] sm:$0xff] }
 0x7db   : > { %5339 = vset.pattern.permute.xlu0 %v5491_v50  ;;  %v2197_v56 = vmul.f32 %v2191_v51, %v2191_v51  ;;  %v2196_v57 = vmul.f32 0.03125, %v2194_v55  ;;  %v2357_v4 = vmul.f32 0.03125, %v2354_v2  ;;  %v2359_v5 = vld [vmem:[#allocation5] sm:$0xff]  ;;  %v2360_v9 = vld [vmem:[#allocation5 + $0x8] sm:$0xff]  ;;  %v2358_v11 = vmul.f32 0.03125, %v2355_v6  ;;  %v2361_v14 = vld [vmem:[#allocation5 + $0x10] sm:$0xff] }
 0x7dc   : > { %2205 = vperm.xlu0 %5339, %v2191_v51   ;;  %v2198_v59 = vmul.f32 %v2192_v54, %v2192_v54  ;;  %v2362_v63 = vmul.f32 0.03125, %v2359_v5  ;;  %v2365_v10 = vmul.f32 %v2356_v3, %v2356_v3  ;;  %v2363_v12 = vmul.f32 0.03125, %v2360_v9  ;;  %s7437_s3 = sld [smem:[#allocation52_spill]]  ;;  %v2371_v28 = vld [vmem:[%s7402_s5] sm:$0xff]  ;;  %v2372_v15 = vld [vmem:[%s7402_s5 + $0x8] sm:$0xff]  ;;  %v2373_v16 = vld [vmem:[%s7402_s5 + $0x10] sm:$0xff] }
 0x7dd   : > { %v2199_v60 = vsub.f32 %v2195_v52, %v2197_v56  ;;  %v2366_v13 = vmul.f32 %v2357_v4, %v2357_v4  ;;  %v2364_v20 = vmul.f32 0.03125, %v2361_v14  ;;  %v2367_v22 = vmul.f32 %v2358_v11, %v2358_v11  ;;  %v2434_v31 = vld [vmem:[%s7403_s6] sm:$0xff]  ;;  %v2435_v32 = vld [vmem:[%s7403_s6 + $0x8] sm:$0xff]  ;;  %v2716_v33 = vld [vmem:[#allocation6] sm:$0xff]  ;;  %p3730_p11 = scmp.eq.s32.totalorder %s5459_s27, 1 }
 0x7de   : > { %v2101_v45 = vld [vmem:[%s7435_s20] sm:$0xff]  ;;  %v2102_v46 = vld [vmem:[%s7435_s20 + $0x8] sm:$0xf]  ;;  %v2200_v0 = vsub.f32 %v2196_v57, %v2198_v59  ;;  %v2368_v18 = vsub.f32 %v2362_v63, %v2365_v10  ;;  %v2436_v34 = vld [vmem:[%s7403_s6 + $0x10] sm:$0xff]  ;;  %v6137_v36 = vmul.f32 0.03125, %v2716_v33  ;;  %vm5493_vm0 = vmmov 0  }
 0x7df   : > { %5049 = vmatprep.mubr.msk.f32.mxu0 %vm2103_vm15, %v2101_v45  ;;  %v2201_v47 = vld [vmem:[%s7436_s24] sm:$0xff]  ;;  %v2202_v58 = vld [vmem:[%s7436_s24 + $0x8] sm:$0xf]  ;;  %v2227_v61 = vadd.f32 1e-05, %v2199_v60  ;;  %v2369_v23 = vsub.f32 %v2363_v12, %v2366_v13  ;;  %v2370_v26 = vsub.f32 %v2364_v20, %v2367_v22  ;;  %v2719_v40 = vld [vmem:[#allocation6 + $0x18] sm:$0xff] }
 0x7e0   : > { %5050 = vmatmul.mubr.msk.f32.vlgmr.msra.gmra.mrb[0].mxu0 %vm2103_vm15, %v2102_v46  ;;  %2217 = vperm.xlu1 %5340, %v2201_v47   ;;  %v2228_v62 = vadd.f32 1e-05, %v2200_v0  ;;  %v2410_v19 = vadd.f32 1e-05, %v2368_v18  ;;  %v2717_v35 = vld [vmem:[#allocation6 + $0x8] sm:$0xff]  ;;  %v2718_v38 = vld [vmem:[#allocation6 + $0x10] sm:$0xff] }
 0x7e1   : > { %2210 = vperm.xlu0 %5339, %v2192_v54   ;;  %5341 = vrsqrt.f32 %v2227_v61  ;;  %v2411_v27 = vadd.f32 1e-05, %v2369_v23  ;;  %v2412_v21 = vadd.f32 1e-05, %v2370_v26  ;;  %v6139_v37 = vmul.f32 0.03125, %v2717_v35  ;;  %v2720_v42 = vld [vmem:[#allocation6 + $0x20] sm:$0xff] }
 0x7e2   : > { %5343 = vrsqrt.f32 %v2228_v62  ;;  %v2243_v8 = vld [vmem:[%s7437_s3] sm:$0xff]  ;;  %v2244_v25 = vld [vmem:[%s7437_s3 + $0x8] sm:$0xf]  ;;  %v6142_v39 = vmul.f32 0.03125, %v2718_v38  ;;  %v6145_v41 = vmul.f32 0.03125, %v2719_v40  ;;  %v6148_v44 = vmul.f32 0.03125, %v2720_v42 }
 0x7e3   : > { %5345 = vrsqrt.f32 %v2410_v19  ;;  %v2721_v43 = vld [vmem:[#allocation6 + $0x28] sm:$0xff]  ;;  %v2722_v46 = vld [vmem:[#allocation6 + $0x30] sm:$0xff]  ;;  %v2723_v47 = vld [vmem:[#allocation6 + $0x38] sm:$0xff]  ;;  %v2813_v35 = vmul.f32 %v6139_v37, %v6139_v37  ;;  %v2812_v42 = vmul.f32 %v6137_v36, %v6137_v36  ;;  %vm2269_vm1 = vcmask 1043456  }
 0x7e4   : > { %2222 = vperm.xlu1 %5340, %v2202_v58   ;;  %5347 = vrsqrt.f32 %v2411_v27  ;;  %v6151_v45 = vmul.f32 0.03125, %v2721_v43  ;;  %v6154_v48 = vmul.f32 0.03125, %v2722_v46  ;;  %v6157_v49 = vmul.f32 0.03125, %v2723_v47  ;;  %v2724_v50 = vld [vmem:[#allocation6 + $0x40] sm:$0xff]  ;;  %v2725_v51 = vld [vmem:[#allocation6 + $0x48] sm:$0xff]  ;;  %v2726_v54 = vld [vmem:[#allocation6 + $0x50] sm:$0xff] }
 0x7e5   : > { %5349 = vrsqrt.f32 %v2412_v21  ;;  %v6160_v52 = vmul.f32 0.03125, %v2724_v50  ;;  %v6163_v53 = vmul.f32 0.03125, %v2725_v51  ;;  %v2727_v55 = vld [vmem:[#allocation6 + $0x58] sm:$0xff]  ;;  %v6166_v56 = vmul.f32 0.03125, %v2726_v54  ;;  %v2728_v58 = vld [vmem:[#allocation6 + $0x60] sm:$0xff]  ;;  %v2729_v59 = vld [vmem:[#allocation6 + $0x68] sm:$0xff] }
 0x7e6   : > { %v6169_v57 = vmul.f32 0.03125, %v2727_v55  ;;  %v6172_v60 = vmul.f32 0.03125, %v2728_v58  ;;  %v6175_v0 = vmul.f32 0.03125, %v2729_v59  ;;  %v2730_v61 = vld [vmem:[#allocation6 + $0x70] sm:$0xff]  ;;  %v2731_v62 = vld [vmem:[#allocation6 + $0x78] sm:$0xff]  ;;  %v2736_v12 = vld [vmem:[#allocation6 + $0xa0] sm:$0xff]  ;;  %v2815_v59 = vmul.f32 %v6145_v41, %v6145_v41 }
 0x7e7   : > { %v6178_v1 = vmul.f32 0.03125, %v2730_v61  ;;  %v6181_v2 = vmul.f32 0.03125, %v2731_v62  ;;  %v2734_v9 = vld [vmem:[#allocation6 + $0x90] sm:$0xff]  ;;  %v2735_v63 = vld [vmem:[#allocation6 + $0x98] sm:$0xff]  ;;  %v2737_v13 = vld [vmem:[#allocation6 + $0xa8] sm:$0xff]  ;;  %v6196_v14 = vmul.f32 0.03125, %v2736_v12 }
 0x7e8   : > { %v6190_v10 = vmul.f32 0.03125, %v2734_v9  ;;  %v2738_v18 = vld [vmem:[#allocation6 + $0xb0] sm:$0xff]  ;;  %v2739_v20 = vld [vmem:[#allocation6 + $0xb8] sm:$0xff]  ;;  %v2860_v23 = vld [vmem:[%s7405_s8] sm:$0xff]  ;;  %v5494_v27 = vmov 0.0   ;;  %vm5495_vm2 = vmmov 1  }
 0x7e9   : > { %v6202_v22 = vmul.f32 0.03125, %v2738_v18  ;;  %v2862_v19 = vld [vmem:[%s7405_s8 + $0x10] sm:$0xff]  ;;  %v2863_v26 = vld [vmem:[%s7405_s8 + $0x18] sm:$0xff]  ;;  %5056 = vmatprep.mubr.msk.f32.mxu1 %vm5493_vm0, %v5494_v27  ;;  %v2864_v21 = vld [vmem:[%s7405_s8 + $0x20] sm:$0xff]  ;;  %vm2259_vm4 = vcmask 97280   ;;  %vm2458_vm5 = vcmask 195584  }
 0x7ea   : > { %v2764_v33 = vld [vmem:[#allocation7] sm:$0xff]  ;;  %v2872_v38 = vld [vmem:[%s7405_s8 + $0x60] sm:$0xff]  ;;  %v2873_v43 = vld [vmem:[%s7405_s8 + $0x68] sm:$0xff]  ;;  %vm3556_vm6 = vcmask 130048   ;;  %vm3705_vm8 = vcmask 15360   ;;  %vm3783_vm9 = vcmask (%p3730_p11), 523264  }
 0x7eb   : > { %v5342_v17 = vpop.eup %5341  ;;  %v2788_v40 = vmul.f32 0.03125, %v2764_v33  ;;  %v2766_v46 = vld [vmem:[#allocation7 + $0x10] sm:$0xff]  ;;  %v2767_v50 = vld [vmem:[#allocation7 + $0x18] sm:$0xff]  ;;  %v2875_v54 = vld [vmem:[%s7405_s8 + $0x78] sm:$0xff]  ;;  %vm4288_vm10 = vcmask (%p3730_p11), 785408   ;;  %vm4598_vm11 = vcmask (%p3730_p11), 392192  }
 0x7ec   : > { %v5344_v7 = vpop.eup %5343  ;;  %2233 = vperm.xlu0 %5339, %v5342_v17   ;;  %v6199_v17 = vmul.f32 0.03125, %v2737_v13  ;;  %v2790_v55 = vmul.f32 0.03125, %v2766_v46  ;;  %v2791_v58 = vmul.f32 0.03125, %v2767_v50  ;;  %v2768_v61 = vld [vmem:[#allocation7 + $0x20] sm:$0xff]  ;;  %v2816_v13 = vmul.f32 %v6148_v44, %v6148_v44  ;;  %v2880_v33 = vld [vmem:[%s7405_s8 + $0xa0] sm:$0xff]  ;;  %v2775_v46 = vld [vmem:[#allocation7 + $0x58] sm:$0xff] }
 0x7ed   : > { %2238 = vperm.xlu1 %5340, %v5344_v7   ;;  %v5346_v24 = vpop.eup %5345  ;;  %v6205_v7 = vmul.f32 0.03125, %v2739_v20  ;;  %v2836_v51 = vsub.f32 %v2788_v40, %v2812_v42  ;;  %v2817_v20 = vmul.f32 %v6151_v45, %v6151_v45  ;;  %v2883_v50 = vld [vmem:[%s7405_s8 + $0xb8] sm:$0xff]  ;;  %vm5172_vm3 = vmpackc.low %vm2269_vm1, %vm5495_vm2  ;;  %vm4699_vm12 = vcmask (%p3730_p11), 8192  }
 0x7ee   : > { %v5348_v29 = vpop.eup %5347 }
 0x7ef   : > { %v5350_v30 = vpop.eup %5349  ;;  %v3172_v9 = vadd.f32 1e-05, %v2836_v51 }
 0x7f0   : > { %2247 = vperm.xlu0 %5339, %v2243_v8   ;;  %v2861_v8 = vld [vmem:[%s7405_s8 + $0x8] sm:$0xff] }
 0x7f1   : > { %2252 = vperm.xlu1 %5340, %v2244_v25   ;;  %v5492_v25 = vmov 0.0|0.0  }
 0x7f2   : > { %5170 = vmatprep.subr.bf16.mxu1 %v5492_v25  ;;  %v2878_v25 = vld [vmem:[%s7405_s8 + $0x90] sm:$0xff] }
 0x7f4   : > { %2376 = vperm.xlu0 %5339, %v2356_v3   ;;  %v2732_v3 = vld [vmem:[#allocation6 + $0x80] sm:$0xff] }
 0x7f5   : > { %2381 = vperm.xlu1 %5340, %v2357_v4   ;;  %v2733_v4 = vld [vmem:[#allocation6 + $0x88] sm:$0xff]  ;;  %v6184_v5 = vmul.f32 0.03125, %v2732_v3 }
 0x7f6   : > { %v6187_v6 = vmul.f32 0.03125, %v2733_v4  ;;  %v2769_v3 = vld [vmem:[#allocation7 + $0x28] sm:$0xff] }
 0x7f7   : > { %v2876_v4 = vld [vmem:[%s7405_s8 + $0x80] sm:$0xff]  ;;  %v2793_v18 = vmul.f32 0.03125, %v2769_v3 }
 0x7f8   : > { %2386 = vperm.xlu0 %5339, %v2358_v11   ;;  %v6193_v11 = vmul.f32 0.03125, %v2735_v63  ;;  %v2877_v63 = vld [vmem:[%s7405_s8 + $0x88] sm:$0xff] }
 0x7f9   : > { %2394 = vperm.xlu1 %5340, %v2371_v28   ;;  %v2865_v28 = vld [vmem:[%s7405_s8 + $0x28] sm:$0xff] }
 0x7fc   : > { %2399 = vperm.xlu0 %5339, %v2372_v15   ;;  %v2866_v15 = vld [vmem:[%s7405_s8 + $0x30] sm:$0xff] }
 0x7fd   : > { %2404 = vperm.xlu1 %5340, %v2373_v16   ;;  %v2867_v16 = vld [vmem:[%s7405_s8 + $0x38] sm:$0xff] }
 0x800   : > { %2418 = vperm.xlu0 %5339, %v5346_v24   ;;  %v2868_v24 = vld [vmem:[%s7405_s8 + $0x40] sm:$0xff] }
 0x801   : > { %2423 = vperm.xlu1 %5340, %v5348_v29   ;;  %v2869_v29 = vld [vmem:[%s7405_s8 + $0x48] sm:$0xff] }
 0x804   : > { %2428 = vperm.xlu0 %5339, %v5350_v30   ;;  %v2870_v30 = vld [vmem:[%s7405_s8 + $0x50] sm:$0xff] }
 0x805   : > { %2439 = vperm.xlu1 %5340, %v2434_v31   ;;  %v2765_v31 = vld [vmem:[#allocation7 + $0x8] sm:$0xff] }
 0x808   : > { %2444 = vperm.xlu0 %5339, %v2435_v32   ;;  %v2871_v32 = vld [vmem:[%s7405_s8 + $0x58] sm:$0xff] }
 0x809   : > { %2449 = vperm.xlu1 %5340, %v2436_v34   ;;  %v2789_v34 = vmul.f32 0.03125, %v2765_v31 }
 0x80b   : > { %v2837_v47 = vsub.f32 %v2789_v34, %v2813_v35  ;;  %v2881_v35 = vld [vmem:[%s7405_s8 + $0xa8] sm:$0xff] }
 0x80c   : > { %2886 = vperm.xlu0 %5339, %v6137_v36   ;;  %v2814_v36 = vmul.f32 %v6142_v39, %v6142_v39 }
 0x80d   : > { %2891 = vperm.xlu1 %5340, %v6139_v37   ;;  %v2874_v37 = vld [vmem:[%s7405_s8 + $0x70] sm:$0xff]  ;;  %v3173_v62 = vadd.f32 1e-05, %v2837_v47 }
 0x80e   : > { %v2838_v12 = vsub.f32 %v2790_v55, %v2814_v36  ;;  %v2882_v47 = vld [vmem:[%s7405_s8 + $0xb0] sm:$0xff]  ;;  %v2822_v55 = vmul.f32 %v6166_v56, %v6166_v56 }
 0x80f   : > { %5351 = vrsqrt.f32 %v3173_v62  ;;  %v2776_v62 = vld [vmem:[#allocation7 + $0x60] sm:$0xff] }
 0x810   : > { %2896 = vperm.xlu0 %5339, %v6142_v39   ;;  %v2792_v39 = vmul.f32 0.03125, %v2768_v61  ;;  %5353 = vrsqrt.f32 %v3172_v9  ;;  %v2823_v61 = vmul.f32 %v6169_v57, %v6169_v57 }
 0x811   : > { %2901 = vperm.xlu1 %5340, %v6145_v41   ;;  %v2839_v41 = vsub.f32 %v2791_v58, %v2815_v59  ;;  %v2799_v59 = vmul.f32 0.03125, %v2775_v46 }
 0x814   : > { %2906 = vperm.xlu0 %5339, %v6148_v44   ;;  %v2879_v44 = vld [vmem:[%s7405_s8 + $0x98] sm:$0xff] }
 0x815   : > { %2911 = vperm.xlu1 %5340, %v6151_v45   ;;  %v2818_v45 = vmul.f32 %v6154_v48, %v6154_v48 }
 0x818   : > { %2916 = vperm.xlu0 %5339, %v6154_v48   ;;  %v2820_v48 = vmul.f32 %v6160_v52, %v6160_v52 }
 0x819   : > { %2921 = vperm.xlu1 %5340, %v6157_v49  }
 0x81c   : > { %2926 = vperm.xlu0 %5339, %v6160_v52  }
 0x81d   : > { %2931 = vperm.xlu1 %5340, %v6163_v53  }
 0x820   : > { %2936 = vperm.xlu0 %5339, %v6166_v56   ;;  %v2847_v56 = vsub.f32 %v2799_v59, %v2823_v61  ;;  %v2833_v61 = vmul.f32 %v6199_v17, %v6199_v17 }
 0x821   : > { %2941 = vperm.xlu1 %5340, %v6169_v57  }
 0x824   : > { %2946 = vperm.xlu0 %5339, %v6172_v60  }
 0x825   : > { %2951 = vperm.xlu1 %5340, %v6175_v0  }
 0x828   : > { %2956 = vperm.xlu0 %5339, %v6178_v1  }
 0x829   : > { %2961 = vperm.xlu1 %5340, %v6181_v2  }
 0x82c   : > { %2966 = vperm.xlu0 %5339, %v6184_v5  }
 0x82d   : > { %2971 = vperm.xlu1 %5340, %v6187_v6  }
 0x830   : > { %2976 = vperm.xlu0 %5339, %v6190_v10  }
 0x831   : > { %2981 = vperm.xlu1 %5340, %v6193_v11  }
 0x834   : > { %2986 = vperm.xlu0 %5339, %v6196_v14  }
 0x835   : > { %2991 = vperm.xlu1 %5340, %v6199_v17   ;;  %v2835_v17 = vmul.f32 %v6205_v7, %v6205_v7 }
 0x838   : > { %2996 = vperm.xlu0 %5339, %v6202_v22  }
 0x839   : > { %3001 = vperm.xlu1 %5340, %v6205_v7  }
 0x83c   : > { %3030 = vperm.xlu0 %5339, %v2860_v23   ;;  %v2770_v23 = vld [vmem:[#allocation7 + $0x30] sm:$0xff] }
 0x83d   : > { %3035 = vperm.xlu1 %5340, %v2861_v8   ;;  %v2771_v8 = vld [vmem:[#allocation7 + $0x38] sm:$0xff] }
 0x840   : > { %3040 = vperm.xlu0 %5339, %v2862_v19   ;;  %v2773_v19 = vld [vmem:[#allocation7 + $0x48] sm:$0xff] }
 0x841   : > { %3045 = vperm.xlu1 %5340, %v2863_v26   ;;  %v3174_v26 = vadd.f32 1e-05, %v2838_v12  ;;  %v2797_v31 = vmul.f32 0.03125, %v2773_v19  ;;  %v2800_v12 = vmul.f32 0.03125, %v2776_v62  ;;  %v2786_v62 = vld [vmem:[#allocation7 + $0xb0] sm:$0xff] }
 0x843   : > { %5355 = vrsqrt.f32 %v3174_v26  ;;  %v2780_v26 = vld [vmem:[#allocation7 + $0x80] sm:$0xff] }
 0x844   : > { %3050 = vperm.xlu0 %5339, %v2864_v21   ;;  %v2840_v21 = vsub.f32 %v2792_v39, %v2816_v13  ;;  %v2824_v39 = vmul.f32 %v6172_v60, %v6172_v60  ;;  %v2826_v60 = vmul.f32 %v6178_v1, %v6178_v1 }
 0x845   : > { %3055 = vperm.xlu1 %5340, %v2865_v28   ;;  %v2794_v28 = vmul.f32 0.03125, %v2770_v23 }
 0x846   : > { %v2848_v19 = vsub.f32 %v2800_v12, %v2824_v39  ;;  %v2810_v12 = vmul.f32 0.03125, %v2786_v62  ;;  %v3378_v62 = vld [vmem:[%s7406_s9 + $0x70] sm:$0xff] }
 0x848   : > { %3060 = vperm.xlu0 %5339, %v2866_v15   ;;  %v2772_v15 = vld [vmem:[#allocation7 + $0x40] sm:$0xff]  ;;  %v3184_v1 = vadd.f32 1e-05, %v2848_v19 }
 0x849   : > { %3065 = vperm.xlu1 %5340, %v2867_v16   ;;  %v3175_v16 = vadd.f32 1e-05, %v2839_v41  ;;  %v2796_v34 = vmul.f32 0.03125, %v2772_v15  ;;  %v2825_v41 = vmul.f32 %v6175_v0, %v6175_v0  ;;  %v2827_v0 = vmul.f32 %v6181_v2, %v6181_v2 }
 0x84b   : > { %5357 = vrsqrt.f32 %v3175_v16  ;;  %v2844_v52 = vsub.f32 %v2796_v34, %v2820_v48  ;;  %v2782_v48 = vld [vmem:[#allocation7 + $0x90] sm:$0xff] }
 0x84c   : > { %3070 = vperm.xlu0 %5339, %v2868_v24   ;;  %v2841_v24 = vsub.f32 %v2793_v18, %v2817_v20  ;;  %v2778_v18 = vld [vmem:[#allocation7 + $0x70] sm:$0xff]  ;;  %v2779_v20 = vld [vmem:[#allocation7 + $0x78] sm:$0xff] }
 0x84d   : > { %3075 = vperm.xlu1 %5340, %v2869_v29   ;;  %v2795_v29 = vmul.f32 0.03125, %v2771_v8  ;;  %v3180_v9 = vadd.f32 1e-05, %v2844_v52  ;;  %v2781_v8 = vld [vmem:[#allocation7 + $0x88] sm:$0xff]  ;;  %v2831_v52 = vmul.f32 %v6193_v11, %v6193_v11 }
 0x84e   : > { %v3177_v40 = vadd.f32 1e-05, %v2841_v24  ;;  %v2805_v16 = vmul.f32 0.03125, %v2781_v8  ;;  %v2829_v24 = vmul.f32 %v6187_v6, %v6187_v6 }
 0x850   : > { %3080 = vperm.xlu0 %5339, %v2870_v30   ;;  %v2819_v30 = vmul.f32 %v6157_v49, %v6157_v49  ;;  %v3176_v49 = vadd.f32 1e-05, %v2840_v21  ;;  %v3183_v21 = vadd.f32 1e-05, %v2847_v56 }
 0x851   : > { %3085 = vperm.xlu1 %5340, %v2871_v32   ;;  %v2821_v32 = vmul.f32 %v6163_v53, %v6163_v53  ;;  %v2774_v53 = vld [vmem:[#allocation7 + $0x50] sm:$0xff] }
 0x852   : > { %v2843_v42 = vsub.f32 %v2795_v29, %v2819_v30  ;;  %5359 = vrsqrt.f32 %v3176_v49  ;;  %v2804_v30 = vmul.f32 0.03125, %v2780_v26  ;;  %v2783_v49 = vld [vmem:[#allocation7 + $0x98] sm:$0xff] }
 0x853   : > { %5361 = vrsqrt.f32 %v3177_v40 }
 0x854   : > { %3090 = vperm.xlu0 %5339, %v2872_v38   ;;  %v2842_v38 = vsub.f32 %v2794_v28, %v2818_v45  ;;  %v3179_v58 = vadd.f32 1e-05, %v2843_v42  ;;  %v2803_v45 = vmul.f32 0.03125, %v2779_v20 }
 0x855   : > { %3095 = vperm.xlu1 %5340, %v2873_v43   ;;  %v2845_v43 = vsub.f32 %v2797_v31, %v2821_v32  ;;  %v2828_v31 = vmul.f32 %v6184_v5, %v6184_v5  ;;  %v2830_v5 = vmul.f32 %v6190_v10, %v6190_v10 }
 0x856   : > { %v3178_v51 = vadd.f32 1e-05, %v2842_v38  ;;  %v2851_v34 = vsub.f32 %v2803_v45, %v2827_v0 }
 0x857   : > { %v3181_v3 = vadd.f32 1e-05, %v2845_v43  ;;  %v2852_v6 = vsub.f32 %v2804_v30, %v2828_v31  ;;  %v3365_v30 = vld [vmem:[%s7406_s9 + $0x8] sm:$0xff]  ;;  %v3366_v31 = vld [vmem:[%s7406_s9 + $0x10] sm:$0xff] }
 0x858   : > { %3100 = vperm.xlu0 %5339, %v2874_v37   ;;  %v5352_v37 = vpop.eup %5351  ;;  %5363 = vrsqrt.f32 %v3178_v51  ;;  %v3187_v46 = vadd.f32 1e-05, %v2851_v34  ;;  %v2785_v51 = vld [vmem:[#allocation7 + $0xa8] sm:$0xff] }
 0x859   : > { %3105 = vperm.xlu1 %5340, %v2875_v54   ;;  %v2798_v54 = vmul.f32 0.03125, %v2774_v53  ;;  %v5354_v36 = vpop.eup %5353  ;;  %5365 = vrsqrt.f32 %v3179_v58  ;;  %v2806_v53 = vmul.f32 0.03125, %v2782_v48  ;;  %v2832_v58 = vmul.f32 %v6196_v14, %v6196_v14  ;;  %v3368_v34 = vld [vmem:[%s7406_s9 + $0x20] sm:$0xff]  ;;  %v3369_v48 = vld [vmem:[%s7406_s9 + $0x28] sm:$0xff] }
 0x85a   : > { %v5356_v57 = vpop.eup %5355  ;;  %5367 = vrsqrt.f32 %v3181_v3  ;;  %v2809_v59 = vmul.f32 0.03125, %v2785_v51  ;;  %v2787_v3 = vld [vmem:[#allocation7 + $0xb8] sm:$0xff]  ;;  %v2834_v14 = vmul.f32 %v6202_v22, %v6202_v22 }
 0x85b   : > { %v5358_v23 = vpop.eup %5357  ;;  %5369 = vrsqrt.f32 %v3180_v9 }
 0x85c   : > { %3110 = vperm.xlu0 %5339, %v2876_v4   ;;  %v2777_v4 = vld [vmem:[#allocation7 + $0x68] sm:$0xff]  ;;  %v5360_v15 = vpop.eup %5359  ;;  %v2857_v56 = vsub.f32 %v2809_v59, %v2833_v61  ;;  %v2858_v20 = vsub.f32 %v2810_v12, %v2834_v14 }
 0x85d   : > { %3115 = vperm.xlu1 %5340, %v2877_v63   ;;  %v2846_v63 = vsub.f32 %v2798_v54, %v2822_v55  ;;  %v2801_v13 = vmul.f32 0.03125, %v2777_v4  ;;  %v5362_v29 = vpop.eup %5361  ;;  %v3188_v54 = vadd.f32 1e-05, %v2852_v6  ;;  %v2854_v55 = vsub.f32 %v2806_v53, %v2830_v5  ;;  %v3372_v6 = vld [vmem:[%s7406_s9 + $0x40] sm:$0xff] }
 0x85e   : > { %v3380_v14 = vld [vmem:[%s7406_s9 + $0x80] sm:$0xff] }
 0x85f   : > { %v2849_v28 = vsub.f32 %v2801_v13, %v2825_v41  ;;  %v3190_v9 = vadd.f32 1e-05, %v2854_v55  ;;  %v2811_v13 = vmul.f32 0.03125, %v2787_v3 }
 0x860   : > { %3120 = vperm.xlu0 %5339, %v2878_v25   ;;  %v3182_v25 = vadd.f32 1e-05, %v2846_v63 }
 0x861   : > { %3125 = vperm.xlu1 %5340, %v2879_v44   ;;  %v2802_v44 = vmul.f32 0.03125, %v2778_v18  ;;  %v2859_v8 = vsub.f32 %v2811_v13, %v2835_v17  ;;  %v2098_v13 = vld [vmem:[%s7401_s4] sm:$0xff] }
 0x862   : > { %5371 = vrsqrt.f32 %v3182_v25  ;;  %v5364_v2 = vpop.eup %5363 }
 0x863   : > { %v2850_v32 = vsub.f32 %v2802_v44, %v2826_v60  ;;  %5373 = vrsqrt.f32 %v3183_v21  ;;  %v5366_v38 = vpop.eup %5365  ;;  %v3194_v44 = vadd.f32 1e-05, %v2858_v20  ;;  %v3195_v7 = vadd.f32 1e-05, %v2859_v8  ;;  %v2099_v20 = vld [vmem:[%s7401_s4 + $0x8] sm:$0xff] }
 0x864   : > { %3130 = vperm.xlu0 %5339, %v2880_v33   ;;  %v3185_v33 = vadd.f32 1e-05, %v2849_v28  ;;  %v5368_v40 = vpop.eup %5367  ;;  %5375 = vrsqrt.f32 %v3184_v1 }
 0x865   : > { %3135 = vperm.xlu1 %5340, %v2881_v35   ;;  %v2853_v35 = vsub.f32 %v2805_v16, %v2829_v24  ;;  %v3186_v42 = vadd.f32 1e-05, %v2850_v32  ;;  %v5370_v43 = vpop.eup %5369  ;;  %v2206_v16 = vpop.permute.xlu0 %2205  ;;  %v3367_v32 = vld [vmem:[%s7406_s9 + $0x18] sm:$0xff] }
 0x866   : > { %5377 = vrsqrt.f32 %v3185_v33  ;;  %v2218_v24 = vpop.permute.xlu1 %2217 }
 0x867   : > { %5379 = vrsqrt.f32 %v3186_v42  ;;  %v3373_v42 = vld [vmem:[%s7406_s9 + $0x48] sm:$0xff] }
 0x868   : > { %3140 = vperm.xlu0 %5339, %v2882_v47   ;;  %v2807_v47 = vmul.f32 0.03125, %v2783_v49  ;;  %5381 = vrsqrt.f32 %v3187_v46  ;;  %v3370_v49 = vld [vmem:[%s7406_s9 + $0x30] sm:$0xff] }
 0x869   : > { %3145 = vperm.xlu1 %5340, %v2883_v50   ;;  %v2784_v50 = vld [vmem:[#allocation7 + $0xa0] sm:$0xff]  ;;  %v2211_v1 = vpop.permute.xlu0 %2210 }
 0x86a   : > { %v2855_v10 = vsub.f32 %v2807_v47, %v2831_v52  ;;  %v2223_v33 = vpop.permute.xlu1 %2222  ;;  %v3375_v52 = vld [vmem:[%s7406_s9 + $0x58] sm:$0xff] }
 0x86c   : > { %3222 = vperm.xlu0 %5339, %v5354_v36   ;;  %v2808_v36 = vmul.f32 0.03125, %v2784_v50  ;;  %v5372_v11 = vpop.eup %5371  ;;  %v3191_v39 = vadd.f32 1e-05, %v2855_v10  ;;  %v3377_v10 = vld [vmem:[%s7406_s9 + $0x68] sm:$0xff] }
 0x86d   : > { %3227 = vperm.xlu1 %5340, %v5352_v37   ;;  %v3189_v37 = vadd.f32 1e-05, %v2853_v35  ;;  %v5374_v4 = vpop.eup %5373 }
 0x86e   : > { %v2856_v63 = vsub.f32 %v2808_v36, %v2832_v58  ;;  %v5376_v41 = vpop.eup %5375  ;;  %v2239_v35 = vpop.permute.xlu1 %2238  ;;  %v3376_v36 = vld [vmem:[%s7406_s9 + $0x60] sm:$0xff] }
 0x86f   : > { %5383 = vrsqrt.f32 %v3189_v37 }
 0x870   : > { %3232 = vperm.xlu0 %5339, %v5356_v57   ;;  %5385 = vrsqrt.f32 %v3188_v54  ;;  %v5378_v18 = vpop.eup %5377  ;;  %v3192_v57 = vadd.f32 1e-05, %v2856_v63 }
 0x871   : > { %3237 = vperm.xlu1 %5340, %v5358_v23   ;;  %5387 = vrsqrt.f32 %v3190_v9  ;;  %v3193_v23 = vadd.f32 1e-05, %v2857_v56  ;;  %v5380_v25 = vpop.eup %5379  ;;  %v3381_v56 = vld [vmem:[%s7406_s9 + $0x88] sm:$0xff] }
 0x872   : > { %5389 = vrsqrt.f32 %v3191_v39  ;;  %v5382_v22 = vpop.eup %5381  ;;  %v2253_v53 = vpop.permute.xlu1 %2252 }
 0x873   : > { %5391 = vrsqrt.f32 %v3192_v57  ;;  %v3383_v57 = vld [vmem:[%s7406_s9 + $0x98] sm:$0xff] }
 0x874   : > { %3242 = vperm.xlu0 %5339, %v5360_v15   ;;  %5393 = vrsqrt.f32 %v3193_v23  ;;  %v3384_v23 = vld [vmem:[%s7406_s9 + $0xa0] sm:$0xff] }
 0x875   : > { %3247 = vperm.xlu1 %5340, %v5362_v29   ;;  %5395 = vrsqrt.f32 %v3194_v44  ;;  %v3364_v29 = vld [vmem:[%s7406_s9] sm:$0xff]  ;;  %v3386_v44 = vld [vmem:[%s7406_s9 + $0xb0] sm:$0xff] }
 0x876   : > { %5397 = vrsqrt.f32 %v3195_v7  ;;  %v6369_v54 = vpop.permute.xlu1 %2381 }
 0x878   : > { %3252 = vperm.xlu0 %5339, %v5364_v2   ;;  %v2234_v2 = vpop.permute.xlu0 %2233 }
 0x879   : > { %3257 = vperm.xlu1 %5340, %v5366_v38   ;;  %v5384_v19 = vpop.eup %5383  ;;  %v3371_v38 = vld [vmem:[%s7406_s9 + $0x38] sm:$0xff] }
 0x87a   : > { %v5386_v60 = vpop.eup %5385  ;;  %v2395_v63 = vpop.permute.xlu1 %2394 }
 0x87b   : > { %v5388_v26 = vpop.eup %5387 }
 0x87c   : > { %3262 = vperm.xlu0 %5339, %v5370_v43   ;;  %v5390_v21 = vpop.eup %5389  ;;  %v3374_v43 = vld [vmem:[%s7406_s9 + $0x50] sm:$0xff] }
 0x87d   : > { %3267 = vperm.xlu1 %5340, %v5368_v40   ;;  %v5392_v28 = vpop.eup %5391  ;;  %v2248_v40 = vpop.permute.xlu0 %2247 }
 0x87e   : > { %v5394_v45 = vpop.eup %5393 }
 0x87f   : > { %v5396_v0 = vpop.eup %5395 }
 0x880   : > { %3272 = vperm.xlu0 %5339, %v5372_v11   ;;  %v5398_v15 = vpop.eup %5397 }
 0x881   : > { %3277 = vperm.xlu1 %5340, %v5374_v4   ;;  %v6367_v37 = vpop.permute.xlu0 %2376  ;;  %v3379_v4 = vld [vmem:[%s7406_s9 + $0x78] sm:$0xff] }
 0x884   : > { %3282 = vperm.xlu0 %5339, %v5376_v41   ;;  %v2405_v41 = vpop.permute.xlu1 %2404 }
 0x885   : > { %3287 = vperm.xlu1 %5340, %v5378_v18   ;;  %v6380_v3 = vpop.permute.xlu0 %2386  ;;  %v3382_v18 = vld [vmem:[%s7406_s9 + $0x90] sm:$0xff] }
 0x888   : > { %3292 = vperm.xlu0 %5339, %v5380_v25   ;;  %v3385_v25 = vld [vmem:[%s7406_s9 + $0xa8] sm:$0xff] }
 0x889   : > { %3297 = vperm.xlu1 %5340, %v5382_v22   ;;  %v2400_v17 = vpop.permute.xlu0 %2399  ;;  %v2424_v22 = vpop.permute.xlu1 %2423 }
 0x88c   : > { %3302 = vperm.xlu0 %5339, %v5386_v60   ;;  %v3387_v60 = vld [vmem:[%s7406_s9 + $0xb8] sm:$0xff] }
 0x88d   : > { %3307 = vperm.xlu1 %5340, %v5384_v19   ;;  %v2419_v8 = vpop.permute.xlu0 %2418  ;;  %v2100_v19 = vld [vmem:[%s7401_s4 + $0x10] sm:$0xff] }
 0x890   : > { %3312 = vperm.xlu0 %5339, %v5388_v26   ;;  %v2440_v26 = vpop.permute.xlu1 %2439 }
 0x891   : > { %3317 = vperm.xlu1 %5340, %v5390_v21   ;;  %v2429_v7 = vpop.permute.xlu0 %2428  ;;  %v2088_v21 = vld [vmem:[%s7404_s7 + $0x70] sm:$0xff] }
 0x894   : > { %3322 = vperm.xlu0 %5339, %v5392_v28  }
 0x895   : > { %3327 = vperm.xlu1 %5340, %v5394_v45   ;;  %v2445_v28 = vpop.permute.xlu0 %2444  ;;  %v2450_v45 = vpop.permute.xlu1 %2449 }
 0x898   : > { %3332 = vperm.xlu0 %5339, %v5396_v0  }
 0x899   : > { %3337 = vperm.xlu1 %5340, %v5398_v15   ;;  %v6433_v0 = vpop.permute.xlu0 %2886  ;;  %v6435_v15 = vpop.permute.xlu1 %2891 }
 0x89c   : > { %3390 = vperm.xlu0 %5339, %v3364_v29  }
 0x89d   : > { %3395 = vperm.xlu1 %5340, %v3365_v30  }
 0x8a0   : > { %3400 = vperm.xlu0 %5339, %v3366_v31  }
 0x8a1   : > { %3405 = vperm.xlu1 %5340, %v3367_v32  }
 0x8a4   : > { %3410 = vperm.xlu0 %5339, %v3368_v34  }
 0x8a5   : > { %3415 = vperm.xlu1 %5340, %v3369_v48  }
 0x8a8   : > { %3420 = vperm.xlu0 %5339, %v3370_v49  }
 0x8a9   : > { %3425 = vperm.xlu1 %5340, %v3371_v38  }
 0x8ac   : > { %3430 = vperm.xlu0 %5339, %v3372_v6  }
 0x8ad   : > { %3435 = vperm.xlu1 %5340, %v3373_v42  }
 0x8b0   : > { %3440 = vperm.xlu0 %5339, %v3374_v43  }
 0x8b1   : > { %3445 = vperm.xlu1 %5340, %v3375_v52  }
 0x8b3   : > { %v5051_v5 = vpop.f32.mrb[0].mxu0 }
 0x8b4   : > { %v2214_v46 = vsub.f32 %v5051_v5, %v2211_v1  ;;  %v2180_v47 = vpop.f32.mrb[1].mxu0  ;;  %3450 = vperm.xlu0 %5339, %v3376_v36  }
 0x8b5   : > { %v2213_v50 = vsub.f32 %v2180_v47, %v2206_v16  ;;  %3455 = vperm.xlu1 %5340, %v3377_v10   ;;  %v6437_v16 = vpop.permute.xlu0 %2896 }
 0x8b6   : > { %v2226_v51 = vmul.f32 %v2223_v33, %v2214_v46 }
 0x8b7   : > { %v2225_v55 = vmul.f32 %v2218_v24, %v2213_v50  ;;  %v6439_v24 = vpop.permute.xlu1 %2901 }
 0x8b8   : > { %v2242_v58 = vmul.f32 %v2239_v35, %v2226_v51  ;;  %3460 = vperm.xlu0 %5339, %v3378_v62  }
 0x8b9   : > { %v2241_v59 = vmul.f32 %v2234_v2, %v2225_v55  ;;  %3465 = vperm.xlu1 %5340, %v3379_v4   ;;  %v6441_v29 = vpop.permute.xlu0 %2906  ;;  %v2076_v4 = vld [vmem:[%s7404_s7 + $0x10] sm:$0xff] }
 0x8ba   : > { %v2256_v61 = vadd.f32 %v2253_v53, %v2242_v58 }
 0x8bb   : > { %v2255_v11 = vadd.f32 %v2248_v40, %v2241_v59  ;;  %v6443_v30 = vpop.permute.xlu1 %2911 }
 0x8bc   : > { %v2258_v9 = vmax.f32 %v2256_v61, 0.0  ;;  %3470 = vperm.xlu0 %5339, %v3380_v14   ;;  %v2077_v14 = vld [vmem:[%s7404_s7 + $0x18] sm:$0xff] }
 0x8bd   : > { %v2257_v12 = vmax.f32 %v2255_v11, 0.0  ;;  %3475 = vperm.xlu1 %5340, %v3381_v56   ;;  %v6445_v31 = vpop.permute.xlu0 %2916  ;;  %v2075_v11 = vld [vmem:[%s7404_s7 + $0x8] sm:$0xff]  ;;  %v2078_v56 = vld [vmem:[%s7404_s7 + $0x20] sm:$0xff] }
 0x8bf   : > { %v5171_v39 = vpack.c.bf16 %v2258_v9, %v2257_v12  ;;  %v6447_v1 = vpop.permute.xlu1 %2921  ;;  %v2090_v9 = vld [vmem:[%s7404_s7 + $0x80] sm:$0xff] }
 0x8c0   : > { %3480 = vperm.xlu0 %5339, %v3382_v18  }
 0x8c1   : > { %5173 = vmatpush3.bf16.msk.msra.mxu1 %vm5172_vm3, %v5171_v39  ;;  %3485 = vperm.xlu1 %5340, %v3383_v57   ;;  %v6450_v2 = vpop.permute.xlu0 %2926  ;;  %v2091_v39 = vld [vmem:[%s7404_s7 + $0x88] sm:$0xff] }
 0x8c2   : > { %7438 = vst [vmem:[#allocation9_spill] sm:$0xff] %v6450_v2 }
 0x8c3   : > { %v6452_v49 = vpop.permute.xlu1 %2931 }
 0x8c4   : > { %5057 = vmatmul.mubr.msk.f32.vlgmr.msra.gmra.mrb[0].mxu1 %vm2259_vm4, %v2098_v13  ;;  %3490 = vperm.xlu0 %5339, %v3384_v23   ;;  %7439 = vst [vmem:[#allocation10_spill] sm:$0xff] %v6452_v49  ;;  %v2092_v13 = vld [vmem:[%s7404_s7 + $0x90] sm:$0xff]  ;;  %v2094_v23 = vld [vmem:[%s7404_s7 + $0xa0] sm:$0xff] }
 0x8c5   : > { %5059 = vmatprep.mubr.msk.f32.mxu1 %vm5493_vm0, %v5494_v27  ;;  %3495 = vperm.xlu1 %5340, %v3385_v25   ;;  %v6458_v50 = vpop.permute.xlu0 %2936  ;;  %v2095_v25 = vld [vmem:[%s7404_s7 + $0xa8] sm:$0xff] }
 0x8c6   : > { %7441 = vst [vmem:[#allocation12_spill] sm:$0xff] %v6458_v50 }
 0x8c7   : > { %v6456_v52 = vpop.permute.xlu1 %2941 }
 0x8c8   : > { %5060 = vmatmul.mubr.msk.f32.gmra.mrb[2].mxu1 %vm2259_vm4, %v2099_v20  ;;  %3500 = vperm.xlu0 %5339, %v3386_v44   ;;  %7440 = vst [vmem:[#allocation11_spill] sm:$0xff] %v6456_v52  ;;  %v2080_v20 = vld [vmem:[%s7404_s7 + $0x30] sm:$0xff] }
 0x8c9   : > { %5062 = vmatprep.mubr.msk.f32.mxu1 %vm5493_vm0, %v5494_v27  ;;  %3505 = vperm.xlu1 %5340, %v3387_v60   ;;  %v2074_v27 = vld [vmem:[%s7404_s7] sm:$0xff]  ;;  %v6462_v61 = vpop.permute.xlu0 %2946 }
 0x8ca   : > { %5071 = vmatprep.mubr.msk.f32.mxu0 %vm2458_vm5, %v2074_v27  ;;  %7443 = vst [vmem:[#allocation14_spill] sm:$0xff] %v6462_v61  ;;  %v2084_v27 = vld [vmem:[%s7404_s7 + $0x50] sm:$0xff] }
 0x8cc   : > { %5063 = vmatmul.mubr.msk.f32.gmra.mrb[4].mxu1 %vm2259_vm4, %v2100_v19  ;;  %v2096_v19 = vld [vmem:[%s7404_s7 + $0xb0] sm:$0xff] }
 0x8cd   : > { %5092 = vmatprep.mubr.msk.f32.mxu1 %vm2458_vm5, %v2088_v21  ;;  %v6478_v12 = vpop.permute.xlu0 %2956  ;;  %v2085_v21 = vld [vmem:[%s7404_s7 + $0x58] sm:$0xff] }
 0x8d1   : > { %v6508_v57 = vpop.permute.xlu0 %2966 }
 0x8d5   : > { %v6534_v60 = vpop.permute.xlu0 %2976 }
 0x997   : > { %v2339_v32 = vpop.f32.mrb[0].mxu1 }
 0x998   : > { %v2389_v33 = vsub.f32 %v2339_v32, %v6367_v37  ;;  %v5058_v34 = vpop.f32.mrb[1].mxu1  ;;  %v2086_v32 = vld [vmem:[%s7404_s7 + $0x60] sm:$0xff] }
 0x99a   : > { %v2407_v48 = vmul.f32 %v2395_v63, %v2389_v33  ;;  %v2087_v33 = vld [vmem:[%s7404_s7 + $0x68] sm:$0xff] }
 0x99b   : > { %v2344_v35 = vpop.f32.mrb[2].mxu1 }
 0x99c   : > { %v2431_v38 = vmul.f32 %v2419_v8, %v2407_v48  ;;  %v2390_v6 = vsub.f32 %v2344_v35, %v6369_v54  ;;  %v5061_v40 = vpop.f32.mrb[3].mxu1  ;;  %v6460_v54 = vpop.permute.xlu1 %2951  ;;  %v2081_v8 = vld [vmem:[%s7404_s7 + $0x38] sm:$0xff] }
 0x99d   : > { %7442 = vst [vmem:[#allocation13_spill] sm:$0xff] %v6460_v54 }
 0x99e   : > { %v2408_v42 = vmul.f32 %v2400_v17, %v2390_v6  ;;  %v2452_v5 = vadd.f32 %v2440_v26, %v2431_v38  ;;  %v2079_v17 = vld [vmem:[%s7404_s7 + $0x28] sm:$0xff]  ;;  %v2097_v26 = vld [vmem:[%s7404_s7 + $0xb8] sm:$0xff] }
 0x99f   : > { %v2349_v53 = vpop.f32.mrb[4].mxu1 }
 0x9a0   : > { %v2432_v43 = vmul.f32 %v2424_v22, %v2408_v42  ;;  %v2391_v46 = vsub.f32 %v2349_v53, %v6380_v3  ;;  %v5064_v47 = vpop.f32.mrb[5].mxu1  ;;  %v2455_v55 = vmax.f32 %v2452_v5, 0.0  ;;  %v2089_v3 = vld [vmem:[%s7404_s7 + $0x78] sm:$0xff]  ;;  %v6476_v63 = vpop.permute.xlu1 %2961  ;;  %v2082_v22 = vld [vmem:[%s7404_s7 + $0x40] sm:$0xff] }
 0x9a2   : > { %v2453_v37 = vadd.f32 %v2445_v28, %v2432_v43  ;;  %v2409_v51 = vmul.f32 %v2405_v41, %v2391_v46  ;;  %v2093_v41 = vld [vmem:[%s7404_s7 + $0x98] sm:$0xff] }
 0x9a4   : > { %v2456_v36 = vmax.f32 %v2453_v37, 0.0  ;;  %v2433_v58 = vmul.f32 %v2429_v7, %v2409_v51  ;;  %v6506_v18 = vpop.permute.xlu1 %2971  ;;  %v2083_v7 = vld [vmem:[%s7404_s7 + $0x48] sm:$0xff] }
 0x9a6   : > { %v2454_v10 = vadd.f32 %v2450_v45, %v2433_v58  ;;  %v5174_v59 = vpack.c.bf16 %v2456_v36, %v2455_v55  ;;  %v6557_v45 = vpop.permute.xlu0 %2986 }
 0x9a8   : > { %v2457_v62 = vmax.f32 %v2454_v10, 0.0  ;;  %5175 = vmatprep.subr.bf16.mxu0 %v5174_v59  ;;  %5256 = vmatprep.subr.bf16.mxu1 %v5174_v59  ;;  %v6532_v44 = vpop.permute.xlu1 %2981 }
 0x9a9   : > { %5177 = vmatpush3.bf16.msra.mxu0 %v5174_v59  ;;  %5258 = vmatpush3.bf16.msra.mxu1 %v5174_v59 }
 0x9aa   : > { %5069 = vmatprep.subr.mxu0 %v2457_v62  ;;  %5257 = vmatprep.subr.mxu1 %v2457_v62  ;;  %v6569_v48 = vpop.permute.xlu0 %2996 }
 0x9ac   : > { %v6555_v28 = vpop.permute.xlu1 %2991 }
 0x9ad   : > { %5070 = vmatpush3.msra.mxu0 %v2457_v62  ;;  %5259 = vmatpush3.msra.mxu1 %v2457_v62 }
 0x9ae   : > { %5072 = vmatmul.mubr.msk.f32.vlgmr.msra.gmra.mrb[2].mxu0 %vm2458_vm5, %v2075_v11  ;;  %5093 = vmatmul.mubr.msk.f32.vlgmr.msra.gmra.mrb[6].mxu1 %vm2458_vm5, %v2089_v3  ;;  %v6574_v38 = vpop.permute.xlu0 %3030 }
 0x9af   : > { %5074 = vmatprep.mubr.msk.f32.mxu0 %vm2458_vm5, %v2076_v4  ;;  %5095 = vmatprep.mubr.msk.f32.mxu1 %vm2458_vm5, %v2090_v9 }
 0x9b0   : > { %v6567_v34 = vpop.permute.xlu1 %3001 }
 0x9b1   : > { %7444 = vst [vmem:[#allocation15_spill] sm:$0xff] %v6567_v34 }
 0x9b2   : > { %5075 = vmatmul.mubr.msk.f32.gmra.mrb[4].mxu0 %vm2458_vm5, %v2077_v14  ;;  %5096 = vmatmul.mubr.msk.f32.gmra.mrb[8].mxu1 %vm2458_vm5, %v2091_v39  ;;  %v6578_v40 = vpop.permute.xlu0 %3040 }
 0x9b3   : > { %5077 = vmatprep.mubr.msk.f32.mxu0 %vm2458_vm5, %v2078_v56  ;;  %5098 = vmatprep.mubr.msk.f32.mxu1 %vm2458_vm5, %v2092_v13 }
 0x9b4   : > { %v6572_v35 = vpop.permute.xlu1 %3035 }
 0x9b6   : > { %5078 = vmatmul.mubr.msk.f32.gmra.mrb[6].mxu0 %vm2458_vm5, %v2079_v17  ;;  %5099 = vmatmul.mubr.msk.f32.gmra.mrb[10].mxu1 %vm2458_vm5, %v2093_v41  ;;  %v6582_v53 = vpop.permute.xlu0 %3050 }
 0x9b7   : > { %5080 = vmatprep.mubr.msk.f32.mxu0 %vm2458_vm5, %v2080_v20  ;;  %5101 = vmatprep.mubr.msk.f32.mxu1 %vm2458_vm5, %v2094_v23 }
 0x9b8   : > { %v6576_v6 = vpop.permute.xlu1 %3045 }
 0x9ba   : > { %5081 = vmatmul.mubr.msk.f32.gmra.mrb[8].mxu0 %vm2458_vm5, %v2081_v8  ;;  %5102 = vmatmul.mubr.msk.f32.gmra.mrb[12].mxu1 %vm2458_vm5, %v2095_v25  ;;  %v6586_v43 = vpop.permute.xlu0 %3060 }
 0x9bb   : > { %5083 = vmatprep.mubr.msk.f32.mxu0 %vm2458_vm5, %v2082_v22  ;;  %5104 = vmatprep.mubr.msk.f32.mxu1 %vm2458_vm5, %v2096_v19 }
 0x9bc   : > { %v6580_v42 = vpop.permute.xlu1 %3055 }
 0x9be   : > { %5084 = vmatmul.mubr.msk.f32.gmra.mrb[10].mxu0 %vm2458_vm5, %v2083_v7  ;;  %5105 = vmatmul.mubr.msk.f32.gmra.mrb[14].mxu1 %vm2458_vm5, %v2097_v26  ;;  %v6590_v47 = vpop.permute.xlu0 %3070 }
 0x9bf   : > { %5086 = vmatprep.mubr.msk.f32.mxu0 %vm2458_vm5, %v2084_v27  ;;  %7447 = vst [vmem:[#allocation18_spill] sm:$0xff] %v6590_v47 }
 0x9c0   : > { %v6584_v5 = vpop.permute.xlu1 %3065 }
 0x9c1   : > { %7445 = vst [vmem:[#allocation16_spill] sm:$0xff] %v6584_v5 }
 0x9c2   : > { %5087 = vmatmul.mubr.msk.f32.gmra.mrb[12].mxu0 %vm2458_vm5, %v2085_v21  ;;  %v6594_v51 = vpop.permute.xlu0 %3080 }
 0x9c3   : > { %5089 = vmatprep.mubr.msk.f32.mxu0 %vm2458_vm5, %v2086_v32  ;;  %7449 = vst [vmem:[#allocation20_spill] sm:$0xff] %v6594_v51 }
 0x9c4   : > { %v6588_v46 = vpop.permute.xlu1 %3075 }
 0x9c5   : > { %7446 = vst [vmem:[#allocation17_spill] sm:$0xff] %v6588_v46 }
 0x9c6   : > { %5090 = vmatmul.mubr.msk.f32.gmra.mrb[14].mxu0 %vm2458_vm5, %v2087_v33  ;;  %v6598_v36 = vpop.permute.xlu0 %3090 }
 0x9c7   : > { %7451 = vst [vmem:[#allocation22_spill] sm:$0xff] %v6598_v36 }
 0x9c8   : > { %v6592_v37 = vpop.permute.xlu1 %3085 }
 0x9c9   : > { %7448 = vst [vmem:[#allocation19_spill] sm:$0xff] %v6592_v37 }
 0x9ca   : > { %v3101_v10 = vpop.permute.xlu0 %3100 }
 0x9cc   : > { %v6596_v55 = vpop.permute.xlu1 %3095 }
 0x9cd   : > { %7450 = vst [vmem:[#allocation21_spill] sm:$0xff] %v6596_v55 }
 0x9ce   : > { %v6602_v62 = vpop.permute.xlu0 %3110 }
 0x9d0   : > { %v3106_v58 = vpop.permute.xlu1 %3105 }
 0x9d2   : > { %v6606_v3 = vpop.permute.xlu0 %3120 }
 0x9d4   : > { %v6600_v59 = vpop.permute.xlu1 %3115 }
 0x9d6   : > { %v6610_v9 = vpop.permute.xlu0 %3130 }
 0x9d7   : > { %7452 = vst [vmem:[#allocation23_spill] sm:$0xff] %v6610_v9 }
 0x9d8   : > { %v6604_v11 = vpop.permute.xlu1 %3125 }
 0x9da   : > { %v6614_v39 = vpop.permute.xlu0 %3140 }
 0x9dc   : > { %v6608_v4 = vpop.permute.xlu1 %3135 }
 0x9de   : > { %v3223_v13 = vpop.permute.xlu0 %3222 }
 0x9e0   : > { %v6612_v14 = vpop.permute.xlu1 %3145 }
 0x9e1   : > { %7453 = vst [vmem:[#allocation24_spill] sm:$0xff] %v6612_v14 }
 0x9e2   : > { %v6618_v41 = vpop.permute.xlu0 %3232 }
 0x9e4   : > { %v3228_v56 = vpop.permute.xlu1 %3227 }
 0x9e6   : > { %v6622_v23 = vpop.permute.xlu0 %3242 }
 0x9e8   : > { %v6616_v17 = vpop.permute.xlu1 %3237 }
 0x9ea   : > { %v6626_v25 = vpop.permute.xlu0 %3252 }
 0x9eb   : > { %7456 = vst [vmem:[#allocation27_spill] sm:$0xff] %v6626_v25 }
 0x9ec   : > { %v6620_v20 = vpop.permute.xlu1 %3247 }
 0x9ed   : > { %7454 = vst [vmem:[#allocation25_spill] sm:$0xff] %v6620_v20 }
 0x9ee   : > { %v6630_v19 = vpop.permute.xlu0 %3262 }
 0x9ef   : > { %7458 = vst [vmem:[#allocation29_spill] sm:$0xff] %v6630_v19 }
 0x9f0   : > { %v6624_v8 = vpop.permute.xlu1 %3257 }
 0x9f1   : > { %7455 = vst [vmem:[#allocation26_spill] sm:$0xff] %v6624_v8 }
 0x9f2   : > { %v6634_v26 = vpop.permute.xlu0 %3272 }
 0x9f3   : > { %7460 = vst [vmem:[#allocation31_spill] sm:$0xff] %v6634_v26 }
 0x9f4   : > { %v6628_v22 = vpop.permute.xlu1 %3267 }
 0x9f5   : > { %7457 = vst [vmem:[#allocation28_spill] sm:$0xff] %v6628_v22 }
 0x9f6   : > { %v6638_v21 = vpop.permute.xlu0 %3282 }
 0x9f7   : > { %7462 = vst [vmem:[#allocation33_spill] sm:$0xff] %v6638_v21 }
 0x9f8   : > { %v6632_v7 = vpop.permute.xlu1 %3277 }
 0x9f9   : > { %7459 = vst [vmem:[#allocation30_spill] sm:$0xff] %v6632_v7 }
 0x9fa   : > { %v3293_v33 = vpop.permute.xlu0 %3292 }
 0x9fc   : > { %v6636_v27 = vpop.permute.xlu1 %3287 }
 0x9fd   : > { %7461 = vst [vmem:[#allocation32_spill] sm:$0xff] %v6636_v27 }
 0x9fe   : > { %v3303_v55 = vpop.permute.xlu0 %3302 }
 0xa00   : > { %v3298_v32 = vpop.permute.xlu1 %3297 }
 0xa02   : > { %v6644_v54 = vpop.permute.xlu0 %3312 }
 0xa04   : > { %v6640_v14 = vpop.permute.xlu1 %3307 }
 0xa06   : > { %v6648_v22 = vpop.permute.xlu0 %3322 }
 0xa07   : > { %7464 = vst [vmem:[#allocation35_spill] sm:$0xff] %v6648_v22 }
 0xa08   : > { %v6642_v34 = vpop.permute.xlu1 %3317 }
 0xa09   : > { %7463 = vst [vmem:[#allocation34_spill] sm:$0xff] %v6642_v34 }
 0xa0a   : > { %v6652_v36 = vpop.permute.xlu0 %3332 }
 0xa0b   : > { %7466 = vst [vmem:[#allocation37_spill] sm:$0xff] %v6652_v36 }
 0xa0c   : > { %v6646_v37 = vpop.permute.xlu1 %3327 }
 0xa0e   : > { %v3391_v26 = vpop.permute.xlu0 %3390 }
 0xa10   : > { %v6650_v7 = vpop.permute.xlu1 %3337 }
 0xa11   : > { %7465 = vst [vmem:[#allocation36_spill] sm:$0xff] %v6650_v7 }
 0xa12   : > { %v6656_v52 = vpop.permute.xlu0 %3400 }
 0xa13   : > { %7467 = vst [vmem:[#allocation38_spill] sm:$0xff] %v6656_v52 }
 0xa14   : > { %v3396_v27 = vpop.permute.xlu1 %3395 }
 0xa16   : > { %v6660_v61 = vpop.permute.xlu0 %3410 }
 0xa17   : > { %7469 = vst [vmem:[#allocation40_spill] sm:$0xff] %v6660_v61 }
 0xa18   : > { %v6654_v21 = vpop.permute.xlu1 %3405 }
 0xa1a   : > { %v6664_v19 = vpop.permute.xlu0 %3420 }
 0xa1b   : > { %7471 = vst [vmem:[#allocation42_spill] sm:$0xff] %v6664_v19 }
 0xa1c   : > { %v6658_v46 = vpop.permute.xlu1 %3415 }
 0xa1d   : > { %7468 = vst [vmem:[#allocation39_spill] sm:$0xff] %v6658_v46 }
 0xa1e   : > { %v6668_v8 = vpop.permute.xlu0 %3430 }
 0xa1f   : > { %7473 = vst [vmem:[#allocation44_spill] sm:$0xff] %v6668_v8 }
 0xa20   : > { %v6662_v51 = vpop.permute.xlu1 %3425 }
 0xa21   : > { %7470 = vst [vmem:[#allocation41_spill] sm:$0xff] %v6662_v51 }
 0xa22   : > { %v6672_v22 = vpop.permute.xlu0 %3440 }
 0xa23   : > { %7475 = vst [vmem:[#allocation46_spill] sm:$0xff] %v6672_v22 }
 0xa24   : > { %v6666_v49 = vpop.permute.xlu1 %3435 }
 0xa25   : > { %7472 = vst [vmem:[#allocation43_spill] sm:$0xff] %v6666_v49 }
 0xa26   : > { %v6676_v47 = vpop.permute.xlu0 %3450 }
 0xa27   : > { %7477 = vst [vmem:[#allocation48_spill] sm:$0xff] %v6676_v47 }
 0xa28   : > { %v6670_v7 = vpop.permute.xlu1 %3445 }
 0xa29   : > { %7474 = vst [vmem:[#allocation45_spill] sm:$0xff] %v6670_v7 }
 0xa2c   : > { %v6674_v50 = vpop.permute.xlu1 %3455 }
 0xa2d   : > { %7476 = vst [vmem:[#allocation47_spill] sm:$0xff] %v6674_v50 }
 0xa81   : > { %v5073_v5 = vpop.f32.mrb[2].mxu0  ;;  %v5094_v46 = vpop.f32.mrb[6].mxu1 }
 0xa82   : > { %v3005_v34 = vsub.f32 %v5073_v5, %v6435_v15  ;;  %v3019_v51 = vsub.f32 %v5094_v46, %v6476_v63  ;;  %v2597_v52 = vpop.f32.mrb[3].mxu0  ;;  %v2667_v19 = vpop.f32.mrb[7].mxu1 }
 0xa83   : > { %v3004_v49 = vsub.f32 %v2597_v52, %v6433_v0  ;;  %v3018_v8 = vsub.f32 %v2667_v19, %v6478_v12  ;;  %v3466_v46 = vpop.permute.xlu1 %3465  ;;  %v3461_v52 = vpop.permute.xlu0 %3460 }
 0xa84   : > { %v3149_v7 = vmul.f32 %v6572_v35, %v3005_v34  ;;  %v3163_v61 = vmul.f32 %v3106_v58, %v3019_v51 }
 0xa85   : > { %v3148_v22 = vmul.f32 %v6574_v38, %v3004_v49  ;;  %v3162_v50 = vmul.f32 %v3101_v10, %v3018_v8  ;;  %v5076_v9 = vpop.f32.mrb[4].mxu0  ;;  %v5097_v47 = vpop.f32.mrb[8].mxu1 }
 0xa86   : > { %v3341_v25 = vmul.f32 %v3228_v56, %v3149_v7  ;;  %v3355_v36 = vmul.f32 %v3298_v32, %v3163_v61  ;;  %v3007_v15 = vsub.f32 %v5076_v9, %v6439_v24  ;;  %v2607_v5 = vpop.f32.mrb[5].mxu0  ;;  %v2677_v63 = vpop.f32.mrb[9].mxu1  ;;  %v3021_v61 = vsub.f32 %v5097_v47, %v6506_v18 }
 0xa87   : > { %v3340_v20 = vmul.f32 %v3223_v13, %v3148_v22  ;;  %v3354_v2 = vmul.f32 %v3293_v33, %v3162_v50  ;;  %v3020_v0 = vsub.f32 %v2677_v63, %v6508_v57  ;;  %v3006_v13 = vsub.f32 %v2607_v5, %v6437_v16 }
 0xa88   : > { %v3523_v12 = vadd.f32 %v3466_v46, %v3355_v36  ;;  %v3509_v34 = vadd.f32 %v3396_v27, %v3341_v25  ;;  %v3151_v35 = vmul.f32 %v6576_v6, %v3007_v15  ;;  %v3165_v18 = vmul.f32 %v6600_v59, %v3021_v61 }
 0xa89   : > { %v3164_v49 = vmul.f32 %v6602_v62, %v3020_v0  ;;  %v5079_v38 = vpop.f32.mrb[6].mxu0  ;;  %v5100_v51 = vpop.f32.mrb[10].mxu1  ;;  %v3508_v10 = vadd.f32 %v3391_v26, %v3340_v20  ;;  %v3522_v9 = vadd.f32 %v3461_v52, %v3354_v2  ;;  %v3150_v26 = vmul.f32 %v6578_v40, %v3006_v13  ;;  %v7484_v13 = vld [vmem:[#allocation38_spill] sm:$0xff] }
 0xa8a   : > { %v2617_v58 = vpop.f32.mrb[7].mxu0  ;;  %v2687_v24 = vpop.f32.mrb[11].mxu1  ;;  %v3547_v56 = vmax.f32 %v3523_v12, 0.0  ;;  %v3533_v57 = vmax.f32 %v3509_v34, 0.0  ;;  %v3343_v36 = vmul.f32 %v6616_v17, %v3151_v35  ;;  %v3009_v19 = vsub.f32 %v5079_v38, %v6443_v30 }
 0xa8b   : > { %v3008_v50 = vsub.f32 %v2617_v58, %v6441_v29  ;;  %v3356_v6 = vmul.f32 %v3303_v55, %v3164_v49  ;;  %v3022_v62 = vsub.f32 %v2687_v24, %v6534_v60  ;;  %v3532_v22 = vmax.f32 %v3508_v10, 0.0  ;;  %v3471_v17 = vpop.permute.xlu0 %3470  ;;  %v3476_v0 = vpop.permute.xlu1 %3475  ;;  %v7480_v58 = vld [vmem:[#allocation37_spill] sm:$0xff]  ;;  %v7481_v10 = vld [vmem:[#allocation27_spill] sm:$0xff] }
 0xa8c   : > { %v3602_v47 = vsel %vm3556_vm6, %v3547_v56, -inf  ;;  %v3560_v16 = vsel %vm3556_vm6, %v3533_v57, -inf  ;;  %v3546_v55 = vmax.f32 %v3522_v9, 0.0  ;;  %v3511_v33 = vadd.f32 %v6654_v21, %v3343_v36  ;;  %v7483_v56 = vld [vmem:[#allocation40_spill] sm:$0xff] }
 0xa8d   : > { %v5103_v8 = vpop.f32.mrb[12].mxu1  ;;  %v6693_v25 = vpop.f32.mrb[8].mxu0  ;;  %3603 = vmax.xlane.f32.xlu0 %v3602_v47  ;;  %v3152_v60 = vmul.f32 %v6582_v53, %v3008_v50  ;;  %3561 = vmax.xlane.f32.xlu1 %v3560_v16  ;;  %v3524_v30 = vadd.f32 %v3471_v17, %v3356_v6  ;;  %v3357_v15 = vmul.f32 %v6640_v14, %v3165_v18  ;;  %v7486_v18 = vld [vmem:[#allocation16_spill] sm:$0xff] }
 0xa8e   : > { %v3025_v2 = vsub.f32 %v5103_v8, %v6555_v28  ;;  %v2627_v20 = vpop.f32.mrb[9].mxu0  ;;  %v2697_v29 = vpop.f32.mrb[13].mxu1  ;;  %v3166_v28 = vmul.f32 %v6606_v3, %v3022_v62  ;;  %v3023_v53 = vsub.f32 %v5100_v51, %v6532_v44  ;;  %v3153_v3 = vmul.f32 %v6580_v42, %v3009_v19  ;;  %v7479_v51 = vld [vmem:[#allocation25_spill] sm:$0xff]  ;;  %v7485_v8 = vld [vmem:[#allocation34_spill] sm:$0xff]  ;;  %v7488_v19 = vld [vmem:[#allocation12_spill] sm:$0xff] }
 0xa8f   : > { %v3010_v59 = vsub.f32 %v2627_v20, %v6445_v31  ;;  %v3557_v31 = vsel %vm3556_vm6, %v3532_v22, -inf  ;;  %v3599_v63 = vsel %vm3556_vm6, %v3546_v55, -inf  ;;  %v3344_v21 = vmul.f32 %v6622_v23, %v3152_v60  ;;  %v3481_v24 = vpop.permute.xlu0 %3480  ;;  %v7489_v60 = vld [vmem:[#allocation39_spill] sm:$0xff] }
 0xa90   : > { %v3169_v7 = vmul.f32 %v6608_v4, %v3025_v2  ;;  %v3024_v44 = vsub.f32 %v2697_v29, %v6557_v45  ;;  %v3342_v52 = vmul.f32 %v6618_v41, %v3150_v26  ;;  %v3358_v12 = vmul.f32 %v6644_v54, %v3166_v28  ;;  %v7487_v2 = vld [vmem:[#allocation18_spill] sm:$0xff] }
 0xa91   : > { %v6705_v27 = vpop.f32.mrb[14].mxu1  ;;  %v6707_v32 = vpop.f32.mrb[10].mxu0  ;;  %3558 = vmax.xlane.f32.xlu0 %v3557_v31  ;;  %v3154_v14 = vmul.f32 %v6586_v43, %v3010_v59  ;;  %3600 = vmax.xlane.f32.xlu1 %v3599_v63  ;;  %v3535_v34 = vmax.f32 %v3511_v33, 0.0  ;;  %v3011_v23 = vsub.f32 %v6693_v25, %v6447_v1  ;;  %v7478_v43 = vld [vmem:[#allocation9_spill] sm:$0xff]  ;;  %v3525_v38 = vadd.f32 %v3476_v0, %v3357_v15  ;;  %v7490_v59 = vld [vmem:[#allocation35_spill] sm:$0xff]  ;;  %v7491_v33 = vld [vmem:[#allocation42_spill] sm:$0xff] }
 0xa92   : > { %v6713_v4 = vmul.f32 %v6646_v37, %v3169_v7  ;;  %v2637_v5 = vpop.f32.mrb[11].mxu0  ;;  %v2707_v40 = vpop.f32.mrb[15].mxu1  ;;  %v3548_v37 = vmax.f32 %v3524_v30, 0.0  ;;  %v3345_v61 = vmul.f32 %v7479_v51, %v3153_v3  ;;  %v3512_v57 = vadd.f32 %v7483_v56, %v3344_v21  ;;  %v7492_v31 = vld [vmem:[#allocation26_spill] sm:$0xff]  ;;  %v7494_v63 = vld [vmem:[#allocation29_spill] sm:$0xff] }
 0xa93   : > { %v3026_v46 = vsub.f32 %v2707_v40, %v6569_v48  ;;  %v3167_v48 = vmul.f32 %v6604_v11, %v3023_v53  ;;  %v3012_v49 = vsub.f32 %v2637_v5, %v7478_v43  ;;  %v3346_v9 = vmul.f32 %v7481_v10, %v3154_v14  ;;  %v7482_v11 = vld [vmem:[#allocation23_spill] sm:$0xff]  ;;  %v3486_v53 = vpop.permute.xlu1 %3485  ;;  %v7493_v40 = vld [vmem:[#allocation10_spill] sm:$0xff]  ;;  %v3491_v21 = vpop.permute.xlu0 %3490  ;;  %v7495_v14 = vld [vmem:[#allocation20_spill] sm:$0xff] }
 0xa94   : > { %v3605_v54 = vsel %vm3556_vm6, %v3548_v37, -inf  ;;  %v3168_v50 = vmul.f32 %v7482_v11, %v3024_v44  ;;  %v3549_v1 = vmax.f32 %v3525_v38, 0.0  ;;  %v3510_v6 = vadd.f32 %v7484_v13, %v3342_v52  ;;  %v7497_v43 = vld [vmem:[#allocation17_spill] sm:$0xff]  ;;  %v7499_v38 = vld [vmem:[#allocation31_spill] sm:$0xff] }
 0xa95   : > { %v3170_v42 = vmul.f32 %v6614_v39, %v3026_v46  ;;  %v6725_v35 = vpop.f32.mrb[12].mxu0  ;;  %v3566_v39 = vsel %vm3556_vm6, %v3535_v34, -inf  ;;  %3606 = vmax.xlane.f32.xlu1 %v3605_v54  ;;  %v3526_v62 = vadd.f32 %v3481_v24, %v3358_v12  ;;  %v3359_v25 = vmul.f32 %v7485_v8, %v3167_v48  ;;  %v7496_v12 = vld [vmem:[#allocation14_spill] sm:$0xff]  ;;  %v7500_v54 = vld [vmem:[#allocation41_spill] sm:$0xff] }
 0xa96   : > { %v2647_v45 = vpop.f32.mrb[13].mxu0  ;;  %3567 = vmax.xlane.f32.xlu0 %v3566_v39  ;;  %v3155_v47 = vmul.f32 %v7486_v18, %v3011_v23  ;;  %v3156_v20 = vmul.f32 %v7487_v2, %v3012_v49  ;;  %v3536_v29 = vmax.f32 %v3512_v57, 0.0  ;;  %v3608_v55 = vsel %vm3556_vm6, %v3549_v1, -inf  ;;  %v7501_v24 = vld [vmem:[#allocation22_spill] sm:$0xff]  ;;  %v7503_v57 = vld [vmem:[#allocation28_spill] sm:$0xff]  ;;  %v7506_v2 = vld [vmem:[#allocation33_spill] sm:$0xff] }
 0xa97   : > { %v6733_v41 = vmul.f32 %v7480_v58, %v3170_v42  ;;  %v3014_v16 = vsub.f32 %v2647_v45, %v7488_v19  ;;  %v3534_v17 = vmax.f32 %v3510_v6, 0.0  ;;  %v3513_v7 = vadd.f32 %v7489_v60, %v3345_v61  ;;  %v3496_v56 = vpop.permute.xlu1 %3495  ;;  %v7507_v19 = vld [vmem:[#allocation46_spill] sm:$0xff] }
 0xa98   : > { %v3360_v26 = vmul.f32 %v7490_v59, %v3168_v50  ;;  %v3569_v28 = vsel %vm3556_vm6, %v3536_v29, -inf  ;;  %v3550_v30 = vmax.f32 %v3526_v62, 0.0  ;;  %v3514_v15 = vadd.f32 %v7491_v33, %v3346_v9  ;;  %v7502_v50 = vld [vmem:[#allocation44_spill] sm:$0xff]  ;;  %v7505_v62 = vld [vmem:[#allocation13_spill] sm:$0xff]  ;;  %v7509_v60 = vld [vmem:[#allocation30_spill] sm:$0xff] }
 0xa99   : > { %v5091_v36 = vpop.f32.mrb[14].mxu0  ;;  %3570 = vmax.xlane.f32.xlu1 %v3569_v28  ;;  %v3347_v5 = vmul.f32 %v7492_v31, %v3155_v47  ;;  %v3013_v3 = vsub.f32 %v6707_v32, %v7493_v40  ;;  %v3348_v46 = vmul.f32 %v7494_v63, %v3156_v20  ;;  %v3158_v44 = vmul.f32 %v7495_v14, %v3014_v16  ;;  %v7498_v32 = vld [vmem:[#allocation11_spill] sm:$0xff]  ;;  %v7515_v14 = vld [vmem:[#allocation45_spill] sm:$0xff] }
 0xa9a   : > { %v2657_v22 = vpop.f32.mrb[15].mxu0  ;;  %3609 = vmax.xlane.f32.xlu0 %v3608_v55  ;;  %v3563_v37 = vsel %vm3556_vm6, %v3534_v17, -inf  ;;  %v3537_v0 = vmax.f32 %v3513_v7, 0.0  ;;  %v3527_v52 = vadd.f32 %v3486_v53, %v3359_v25  ;;  %v3611_v34 = vsel %vm3556_vm6, %v3550_v30, -inf  ;;  %v7508_v55 = vld [vmem:[#allocation15_spill] sm:$0xff]  ;;  %v7512_v53 = vld [vmem:[#allocation48_spill] sm:$0xff] }
 0xa9b   : > { %v3016_v42 = vsub.f32 %v2657_v22, %v7496_v12  ;;  %v3538_v48 = vmax.f32 %v3514_v15, 0.0  ;;  %v3528_v23 = vadd.f32 %v3491_v21, %v3360_v26  ;;  %v3157_v49 = vmul.f32 %v7497_v43, %v3013_v3  ;;  %v3501_v3 = vpop.permute.xlu0 %3500  ;;  %v7516_v12 = vld [vmem:[#allocation36_spill] sm:$0xff] }
 0xa9c   : > { %v3015_v45 = vsub.f32 %v6725_v35, %v7498_v32  ;;  %v3350_v51 = vmul.f32 %v7499_v38, %v3158_v44  ;;  %v3572_v61 = vsel %vm3556_vm6, %v3537_v0, -inf  ;;  %v3551_v58 = vmax.f32 %v3527_v52, 0.0  ;;  %v7504_v35 = vld [vmem:[#allocation19_spill] sm:$0xff] }
 0xa9d   : > { %3612 = vmax.xlane.f32.xlu1 %v3611_v34  ;;  %v3515_v39 = vadd.f32 %v7500_v54, %v3347_v5  ;;  %v3160_v10 = vmul.f32 %v7501_v24, %v3016_v42  ;;  %v3575_v9 = vsel %vm3556_vm6, %v3538_v48, -inf  ;;  %v3552_v11 = vmax.f32 %v3528_v23, 0.0  ;;  %v7513_v5 = vld [vmem:[#allocation24_spill] sm:$0xff]  ;;  %v7517_v23 = vld [vmem:[#allocation47_spill] sm:$0xff] }
 0xa9e   : > { %3564 = vmax.xlane.f32.xlu0 %v3563_v37  ;;  %v3516_v1 = vadd.f32 %v7502_v50, %v3348_v46  ;;  %v3349_v13 = vmul.f32 %v7503_v57, %v3157_v49  ;;  %v3159_v6 = vmul.f32 %v7504_v35, %v3015_v45  ;;  %v3017_v8 = vsub.f32 %v5091_v36, %v7505_v62  ;;  %v7510_v36 = vld [vmem:[#allocation21_spill] sm:$0xff]  ;;  %v3506_v45 = vpop.permute.xlu1 %3505  ;;  %v3632_v50 = vld [vmem:[#allocation8 + $0x8] sm:$0xff] }
 0xa9f   : > { %v3614_v25 = vsel %vm3556_vm6, %v3551_v58, -inf  ;;  %v3539_v18 = vmax.f32 %v3515_v39, 0.0  ;;  %v3529_v47 = vadd.f32 %v3496_v56, %v6713_v4  ;;  %v3352_v20 = vmul.f32 %v7506_v2, %v3160_v10  ;;  %v7511_v4 = vld [vmem:[#allocation43_spill] sm:$0xff] }
 0xaa0   : > { %v3617_v29 = vsel %vm3556_vm6, %v3552_v11, -inf  ;;  %v3540_v22 = vmax.f32 %v3516_v1, 0.0  ;;  %v3518_v16 = vadd.f32 %v7507_v19, %v3350_v51  ;;  %v3027_v17 = vsub.f32 %v6705_v27, %v7508_v55  ;;  %v7514_v27 = vld [vmem:[#allocation32_spill] sm:$0xff] }
 0xaa1   : > { %3576 = vmax.xlane.f32.xlu1 %v3575_v9  ;;  %v3351_v7 = vmul.f32 %v7509_v60, %v3159_v6  ;;  %v3161_v59 = vmul.f32 %v7510_v36, %v3017_v8  ;;  %v3578_v26 = vsel %vm3556_vm6, %v3539_v18, -inf  ;;  %v3553_v28 = vmax.f32 %v3529_v47, 0.0  ;;  %v3646_v11 = vld [vmem:[#allocation8 + $0x78] sm:$0xff]  ;;  %v3631_v6 = vld [vmem:[#allocation8] sm:$0xff]  ;;  %v3645_v8 = vld [vmem:[#allocation8 + $0x70] sm:$0xff] }
 0xaa2   : > { %3573 = vmax.xlane.f32.xlu0 %v3572_v61  ;;  %v3517_v30 = vadd.f32 %v7511_v4, %v3349_v13  ;;  %v3581_v33 = vsel %vm3556_vm6, %v3540_v22, -inf  ;;  %v3542_v15 = vmax.f32 %v3518_v16, 0.0  ;;  %v3520_v31 = vadd.f32 %v7512_v53, %v3352_v20  ;;  %v3647_v22 = vld [vmem:[#allocation8 + $0x80] sm:$0xff]  ;;  %v3634_v19 = vld [vmem:[#allocation8 + $0x18] sm:$0xff]  ;;  %v3648_v36 = vld [vmem:[#allocation8 + $0x88] sm:$0xff] }
 0xaa3   : > { %v3171_v40 = vmul.f32 %v7513_v5, %v3027_v17  ;;  %v3353_v63 = vmul.f32 %v7514_v27, %v3161_v59  ;;  %v3620_v46 = vsel %vm3556_vm6, %v3553_v28, -inf  ;;  %v3519_v44 = vadd.f32 %v7515_v14, %v3351_v7  ;;  %v3635_v28 = vld [vmem:[#allocation8 + $0x20] sm:$0xff]  ;;  %v3633_v53 = vld [vmem:[#allocation8 + $0x10] sm:$0xff] }
 0xaa4   : > { %v3541_v21 = vmax.f32 %v3517_v30, 0.0  ;;  %v3587_v37 = vsel %vm3556_vm6, %v3542_v15, -inf  ;;  %v3544_v0 = vmax.f32 %v3520_v31, 0.0  ;;  %v3530_v52 = vadd.f32 %v3501_v3, %v6733_v41  ;;  %v3649_v5 = vld [vmem:[#allocation8 + $0x90] sm:$0xff] }
 0xaa5   : > { %3618 = vmax.xlane.f32.xlu1 %v3617_v29  ;;  %v3363_v42 = vmul.f32 %v7516_v12, %v3171_v40  ;;  %v3543_v48 = vmax.f32 %v3519_v44, 0.0  ;;  %v3521_v43 = vadd.f32 %v7517_v23, %v3353_v63  ;;  %v3629_v24 = vlaneseq  ;;  %v3637_v44 = vld [vmem:[#allocation8 + $0x30] sm:$0xff]  ;;  %v3651_v23 = vld [vmem:[#allocation8 + $0xa0] sm:$0xff] }
 0xaa6   : > { %3615 = vmax.xlane.f32.xlu0 %v3614_v25  ;;  %v3584_v34 = vsel %vm3556_vm6, %v3541_v21, -inf  ;;  %v3593_v49 = vsel %vm3556_vm6, %v3544_v0, -inf  ;;  %v3554_v32 = vmax.f32 %v3530_v52, 0.0  ;;  %v3655_v9 = vstv %s5459_s27  ;;  %v3636_v21 = vld [vmem:[#allocation8 + $0x28] sm:$0xff] }
 0xaa7   : > { %v3590_v38 = vsel %vm3556_vm6, %v3543_v48, -inf  ;;  %v3545_v51 = vmax.f32 %v3521_v43, 0.0  ;;  %v3531_v41 = vadd.f32 %v3506_v45, %v3363_v42  ;;  %v3630_v10 = vand.u32 127, %v3629_v24 }
 0xaa8   : > { %v3623_v61 = vsel %vm3556_vm6, %v3554_v32, -inf }
 0xaa9   : > { %3582 = vmax.xlane.f32.xlu1 %v3581_v33  ;;  %v3596_v58 = vsel %vm3556_vm6, %v3545_v51, -inf  ;;  %v3555_v54 = vmax.f32 %v3531_v41, 0.0  ;;  %vm6799_vm7 = vcmp.eq.s32.totalorder %v3630_v10, %v3655_v9  ;;  %v3638_v51 = vld [vmem:[#allocation8 + $0x38] sm:$0xff]  ;;  %v3652_v9 = vld [vmem:[#allocation8 + $0xa8] sm:$0xff] }
 0xaaa   : > { %3579 = vmax.xlane.f32.xlu0 %v3578_v26 }
 0xaab   : > { %v3626_v39 = vsel %vm3556_vm6, %v3555_v54, -inf }
 0xaad   : > { %3588 = vmax.xlane.f32.xlu1 %v3587_v37 }
 0xaae   : > { %3621 = vmax.xlane.f32.xlu0 %v3620_v46 }
 0xab1   : > { %3594 = vmax.xlane.f32.xlu1 %v3593_v49 }
 0xab2   : > { %3585 = vmax.xlane.f32.xlu0 %v3584_v34  ;;  %v3650_v34 = vld [vmem:[#allocation8 + $0x98] sm:$0xff] }
 0xab5   : > { %3624 = vmax.xlane.f32.xlu1 %v3623_v61  ;;  %v3639_v61 = vld [vmem:[#allocation8 + $0x40] sm:$0xff] }
 0xab6   : > { %3591 = vmax.xlane.f32.xlu0 %v3590_v38 }
 0xaba   : > { %3597 = vmax.xlane.f32.xlu0 %v3596_v58 }
 0xabe   : > { %3627 = vmax.xlane.f32.xlu0 %v3626_v39 }
 0xb1a   : > { %v3604_v56 = vpop.xlane.xlu0 %3603  ;;  %v3562_v13 = vpop.xlane.xlu1 %3561 }
 0xb1b   : > { %v3672_v57 = vmax.f32 %v3646_v11, %v3604_v56  ;;  %v3658_v35 = vmax.f32 %v3632_v50, %v3562_v13 }
 0xb1d   : > { %v3696_v62 = vsel %vm6799_vm7, %v3672_v57, %v3646_v11  ;;  %v3682_v25 = vsel %vm6799_vm7, %v3658_v35, %v3632_v50  ;;  %v3641_v50 = vld [vmem:[#allocation8 + $0x50] sm:$0xff] }
 0xb1e   : > { %3721 = vst.msk [vmem:[#allocation8 + $0x78] sm:$0xff] %vm3705_vm8, %v3696_v62  ;;  %v3559_v18 = vpop.xlane.xlu0 %3558  ;;  %3707 = vst.msk [vmem:[#allocation8 + $0x8] sm:$0xff] %vm3705_vm8, %v3682_v25  ;;  %v3601_v47 = vpop.xlane.xlu1 %3600  ;;  %v3640_v62 = vld [vmem:[#allocation8 + $0x48] sm:$0xff]  ;;  %v3643_v25 = vld [vmem:[#allocation8 + $0x60] sm:$0xff] }
 0xb1f   : > { %v3657_v2 = vmax.f32 %v3631_v6, %v3559_v18  ;;  %v3671_v20 = vmax.f32 %v3645_v8, %v3601_v47 }
 0xb21   : > { %v3681_v29 = vsel %vm6799_vm7, %v3657_v2, %v3631_v6  ;;  %v3695_v16 = vsel %vm6799_vm7, %v3671_v20, %v3645_v8 }
 0xb22   : > { %3706 = vst.msk [vmem:[#allocation8] sm:$0xff] %vm3705_vm8, %v3681_v29  ;;  %3720 = vst.msk [vmem:[#allocation8 + $0x70] sm:$0xff] %vm3705_vm8, %v3695_v16  ;;  %v3607_v55 = vpop.xlane.xlu1 %3606  ;;  %v3653_v16 = vld [vmem:[#allocation8 + $0xb0] sm:$0xff] }
 0xb23   : > { %v3568_v17 = vpop.xlane.xlu0 %3567  ;;  %v3673_v60 = vmax.f32 %v3647_v22, %v3607_v55 }
 0xb24   : > { %v3660_v7 = vmax.f32 %v3634_v19, %v3568_v17 }
 0xb25   : > { %v3697_v59 = vsel %vm6799_vm7, %v3673_v60, %v3647_v22  ;;  %v3642_v22 = vld [vmem:[#allocation8 + $0x58] sm:$0xff] }
 0xb26   : > { %v3684_v26 = vsel %vm6799_vm7, %v3660_v7, %v3634_v19  ;;  %3722 = vst.msk [vmem:[#allocation8 + $0x80] sm:$0xff] %vm3705_vm8, %v3697_v59  ;;  %v3571_v33 = vpop.xlane.xlu1 %3570  ;;  %v3644_v59 = vld [vmem:[#allocation8 + $0x68] sm:$0xff] }
 0xb27   : > { %3709 = vst.msk [vmem:[#allocation8 + $0x18] sm:$0xff] %vm3705_vm8, %v3684_v26  ;;  %v3610_v4 = vpop.xlane.xlu0 %3609  ;;  %v3661_v15 = vmax.f32 %v3635_v28, %v3571_v33  ;;  %v3654_v33 = vld [vmem:[#allocation8 + $0xb8] sm:$0xff] }
 0xb28   : > { %v3674_v30 = vmax.f32 %v3648_v36, %v3610_v4 }
 0xb29   : > { %v3685_v40 = vsel %vm6799_vm7, %v3661_v15, %v3635_v28 }
 0xb2a   : > { %v3698_v31 = vsel %vm6799_vm7, %v3674_v30, %v3648_v36  ;;  %3710 = vst.msk [vmem:[#allocation8 + $0x20] sm:$0xff] %vm3705_vm8, %v3685_v40  ;;  %v3613_v63 = vpop.xlane.xlu1 %3612  ;;  %v3735_v40 = vld [vmem:[#allocation8] sm:$0xff] (%p3730_p11) }
 0xb2b   : > { %3723 = vst.msk [vmem:[#allocation8 + $0x88] sm:$0xff] %vm3705_vm8, %v3698_v31  ;;  %v3565_v3 = vpop.xlane.xlu0 %3564  ;;  %v3675_v46 = vmax.f32 %v3649_v5, %v3613_v63  ;;  %v5496_v63 = vmov (%p3730_p11), 0.0|0.0  }
 0xb2c   : > { %v3659_v27 = vmax.f32 %v3633_v53, %v3565_v3  ;;  %v3736_v3 = vld [vmem:[#allocation8 + $0x8] sm:$0xff] (%p3730_p11)  ;;  %5178 = vmatprep.subr.bf16.mxu0 (%p3730_p11), %v5496_v63 }
 0xb2d   : > { %v3699_v37 = vsel %vm6799_vm7, %v3675_v46, %v3649_v5  ;;  %v5179_v46 = vpack.c.bf16 (%p3730_p11), %v3736_v3, %v3735_v40  ;;  %v3768_v40 = vld [vmem:[%s7407_s10 + $0x48] sm:$0xff] (%p3730_p11)  ;;  %v4076_v3 = vld [vmem:[%s7408_s11 + $0x50] sm:$0xff] (%p3730_p11) }
 0xb2e   : > { %v3683_v14 = vsel %vm6799_vm7, %v3659_v27, %v3633_v53  ;;  %3724 = vst.msk [vmem:[#allocation8 + $0x90] sm:$0xff] %vm3705_vm8, %v3699_v37  ;;  %v3577_v12 = vpop.xlane.xlu1 %3576 }
 0xb2f   : > { %3708 = vst.msk [vmem:[#allocation8 + $0x10] sm:$0xff] %vm3705_vm8, %v3683_v14  ;;  %v3574_v0 = vpop.xlane.xlu0 %3573  ;;  %v3663_v42 = vmax.f32 %v3637_v44, %v3577_v12  ;;  %v5497_v14 = vmov (%p3730_p11), 0   ;;  %5180 = vmatpush1.bf16.msra.mxu0 (%p3730_p11), %v5179_v46  ;;  %v3769_v46 = vld [vmem:[%s7407_s10 + $0x50] sm:$0xff] (%p3730_p11) }
 0xb30   : > { %v3662_v52 = vmax.f32 %v3636_v21, %v3574_v0  ;;  %5400 = vset.pattern.permute.xlu1 (%p3730_p11), %v5497_v14  ;;  %5399 = vset.pattern.permute.xlu0 (%p3730_p11), %v5497_v14  ;;  %v3771_v14 = vld [vmem:[%s7407_s10 + $0x60] sm:$0xff] (%p3730_p11) }
 0xb31   : > { %v3687_v43 = vsel %vm6799_vm7, %v3663_v42, %v3637_v44  ;;  %5181 = vmatprep.subr.bf16.mxu0 (%p3730_p11), %v5496_v63  ;;  %v3739_v1 = vld [vmem:[#allocation8 + $0x20] sm:$0xff] (%p3730_p11)  ;;  %v3760_v42 = vld [vmem:[%s7407_s10 + $0x8] sm:$0xff] (%p3730_p11) }
 0xb32   : > { %v3686_v48 = vsel %vm6799_vm7, %v3662_v52, %v3636_v21  ;;  %3712 = vst.msk [vmem:[#allocation8 + $0x30] sm:$0xff] %vm3705_vm8, %v3687_v43  ;;  %v3619_v45 = vpop.xlane.xlu1 %3618  ;;  %v3738_v21 = vld [vmem:[#allocation8 + $0x18] sm:$0xff] (%p3730_p11)  ;;  %4829 = vmatprep.mubr.msk.f32.mxu0 (%p3730_p11), %vm3783_vm9, %v3760_v42  ;;  %v3780_v42 = vld [vmem:[%s7407_s10 + $0xa8] sm:$0xff] (%p3730_p11) }
 0xb33   : > { %3711 = vst.msk [vmem:[#allocation8 + $0x28] sm:$0xff] %vm3705_vm8, %v3686_v48  ;;  %v3616_v49 = vpop.xlane.xlu0 %3615  ;;  %v3677_v38 = vmax.f32 %v3651_v23, %v3619_v45  ;;  %v4067_v45 = vld [vmem:[%s7408_s11 + $0x8] sm:$0xff] (%p3730_p11) }
 0xb34   : > { %v3676_v32 = vmax.f32 %v3650_v34, %v3616_v49  ;;  %4085 = vperm.xlu1 (%p3730_p11), %5400, %v4067_v45  }
 0xb35   : > { %v3701_v58 = vsel %vm6799_vm7, %v3677_v38, %v3651_v23  ;;  %v4066_v38 = vld [vmem:[%s7408_s11] sm:$0xff] (%p3730_p11) }
 0xb36   : > { %v3700_v41 = vsel %vm6799_vm7, %v3676_v32, %v3650_v34  ;;  %3726 = vst.msk [vmem:[#allocation8 + $0xa0] sm:$0xff] %vm3705_vm8, %v3701_v58  ;;  %v3583_v24 = vpop.xlane.xlu1 %3582  ;;  %v3737_v27 = vld [vmem:[#allocation8 + $0x10] sm:$0xff] (%p3730_p11)  ;;  %4080 = vperm.xlu0 (%p3730_p11), %5399, %v4066_v38  }
 0xb37   : > { %3725 = vst.msk [vmem:[#allocation8 + $0x98] sm:$0xff] %vm3705_vm8, %v3700_v41  ;;  %v3580_v54 = vpop.xlane.xlu0 %3579  ;;  %v3665_v10 = vmax.f32 %v3639_v61, %v3583_v24  ;;  %v5182_v44 = vpack.c.bf16 (%p3730_p11), %v3738_v21, %v3737_v27  ;;  %v3767_v27 = vld [vmem:[%s7407_s10 + $0x40] sm:$0xff] (%p3730_p11)  ;;  %v3772_v21 = vld [vmem:[%s7407_s10 + $0x68] sm:$0xff] (%p3730_p11) }
 0xb38   : > { %v3664_v39 = vmax.f32 %v3638_v51, %v3580_v54 }
 0xb39   : > { %v3689_v56 = vsel %vm6799_vm7, %v3665_v10, %v3639_v61  ;;  %5183 = vmatpush1.bf16.msra.mxu0 (%p3730_p11), %v5182_v44  ;;  %v3741_v52 = vld [vmem:[#allocation8 + $0x30] sm:$0xff] (%p3730_p11)  ;;  %v4189_v61 = vld [vmem:[%s7409_s12 + $0x18] sm:$0xff] (%p3730_p11) }
 0xb3a   : > { %v3688_v11 = vsel %vm6799_vm7, %v3664_v39, %v3638_v51  ;;  %3714 = vst.msk [vmem:[#allocation8 + $0x40] sm:$0xff] %vm3705_vm8, %v3689_v56  ;;  %v3589_v35 = vpop.xlane.xlu1 %3588  ;;  %v3740_v37 = vld [vmem:[#allocation8 + $0x28] sm:$0xff] (%p3730_p11)  ;;  %5184 = vmatprep.subr.bf16.mxu0 (%p3730_p11), %v5496_v63  ;;  %v4068_v51 = vld [vmem:[%s7408_s11 + $0x10] sm:$0xff] (%p3730_p11)  ;;  %v4069_v39 = vld [vmem:[%s7408_s11 + $0x18] sm:$0xff] (%p3730_p11)  ;;  %4215 = vperm.xlu0 (%p3730_p11), %5399, %v4189_v61  }
 0xb3b   : > { %3713 = vst.msk [vmem:[#allocation8 + $0x38] sm:$0xff] %vm3705_vm8, %v3688_v11  ;;  %v3622_v57 = vpop.xlane.xlu0 %3621  ;;  %v3667_v6 = vmax.f32 %v3641_v50, %v3589_v35  ;;  %v5185_v0 = vpack.c.bf16 (%p3730_p11), %v3740_v37, %v3739_v1  ;;  %4090 = vperm.xlu1 (%p3730_p11), %5400, %v4068_v51   ;;  %v4073_v10 = vld [vmem:[%s7408_s11 + $0x38] sm:$0xff] (%p3730_p11)  ;;  %v3750_v11 = vld [vmem:[#allocation8 + $0x78] sm:$0xff] (%p3730_p11)  ;;  %v3752_v35 = vld [vmem:[#allocation8 + $0x88] sm:$0xff] (%p3730_p11) }
 0xb3c   : > { %v3678_v13 = vmax.f32 %v3652_v9, %v3622_v57  ;;  %v4191_v57 = vld [vmem:[%s7409_s12 + $0x28] sm:$0xff] (%p3730_p11)  ;;  %v3774_v44 = vld [vmem:[%s7407_s10 + $0x78] sm:$0xff] (%p3730_p11)  ;;  %v3773_v1 = vld [vmem:[%s7407_s10 + $0x70] sm:$0xff] (%p3730_p11) }
 0xb3d   : > { %v3691_v18 = vsel %vm6799_vm7, %v3667_v6, %v3641_v50  ;;  %5186 = vmatpush1.bf16.msra.mxu0 (%p3730_p11), %v5185_v0  ;;  %v4186_v50 = vld [vmem:[%s7409_s12] sm:$0xff] (%p3730_p11)  ;;  %v4187_v6 = vld [vmem:[%s7409_s12 + $0x8] sm:$0xff] (%p3730_p11) }
 0xb3e   : > { %v3702_v8 = vsel %vm6799_vm7, %v3678_v13, %v3652_v9  ;;  %3716 = vst.msk [vmem:[#allocation8 + $0x50] sm:$0xff] %vm3705_vm8, %v3691_v18  ;;  %v3595_v20 = vpop.xlane.xlu1 %3594  ;;  %5187 = vmatprep.subr.bf16.mxu0 (%p3730_p11), %v5496_v63  ;;  %v3749_v9 = vld [vmem:[#allocation8 + $0x70] sm:$0xff] (%p3730_p11)  ;;  %4115 = vperm.xlu0 (%p3730_p11), %5399, %v4073_v10   ;;  %v3751_v13 = vld [vmem:[#allocation8 + $0x80] sm:$0xff] (%p3730_p11)  ;;  %v3754_v18 = vld [vmem:[#allocation8 + $0x98] sm:$0xff] (%p3730_p11) }
 0xb3f   : > { %3727 = vst.msk [vmem:[#allocation8 + $0xa8] sm:$0xff] %vm3705_vm8, %v3702_v8  ;;  %v3586_v47 = vpop.xlane.xlu0 %3585  ;;  %v3669_v29 = vmax.f32 %v3643_v25, %v3595_v20  ;;  %4095 = vperm.xlu1 (%p3730_p11), %5400, %v4069_v39   ;;  %v5200_v56 = vpack.c.bf16 (%p3730_p11), %v3750_v11, %v3749_v9  ;;  %v4075_v8 = vld [vmem:[%s7408_s11 + $0x48] sm:$0xff] (%p3730_p11)  ;;  %v4193_v20 = vld [vmem:[%s7409_s12 + $0x38] sm:$0xff] (%p3730_p11)  ;;  %v3775_v0 = vld [vmem:[%s7407_s10 + $0x80] sm:$0xff] (%p3730_p11) }
 0xb40   : > { %v3666_v2 = vmax.f32 %v3640_v62, %v3586_v47  ;;  %v4070_v47 = vld [vmem:[%s7408_s11 + $0x20] sm:$0xff] (%p3730_p11)  ;;  %v3776_v37 = vld [vmem:[%s7407_s10 + $0x88] sm:$0xff] (%p3730_p11) }
 0xb41   : > { %v3693_v55 = vsel %vm6799_vm7, %v3669_v29, %v3643_v25  ;;  %v3743_v48 = vld [vmem:[#allocation8 + $0x40] sm:$0xff] (%p3730_p11)  ;;  %v3753_v25 = vld [vmem:[#allocation8 + $0x90] sm:$0xff] (%p3730_p11) }
 0xb42   : > { %v3690_v19 = vsel %vm6799_vm7, %v3666_v2, %v3640_v62  ;;  %3718 = vst.msk [vmem:[#allocation8 + $0x60] sm:$0xff] %vm3705_vm8, %v3693_v55  ;;  %v3625_v7 = vpop.xlane.xlu1 %3624  ;;  %v3742_v12 = vld [vmem:[#allocation8 + $0x38] sm:$0xff] (%p3730_p11)  ;;  %4225 = vperm.xlu0 (%p3730_p11), %5399, %v4191_v57   ;;  %v5203_v62 = vpack.c.bf16 (%p3730_p11), %v3752_v35, %v3751_v13  ;;  %v5206_v2 = vpack.c.bf16 (%p3730_p11), %v3754_v18, %v3753_v25  ;;  %v3755_v29 = vld [vmem:[#allocation8 + $0xa0] sm:$0xff] (%p3730_p11) }
 0xb43   : > { %3715 = vst.msk [vmem:[#allocation8 + $0x48] sm:$0xff] %vm3705_vm8, %v3690_v19  ;;  %v3592_v17 = vpop.xlane.xlu0 %3591  ;;  %v3679_v36 = vmax.f32 %v3653_v16, %v3625_v7  ;;  %v5188_v34 = vpack.c.bf16 (%p3730_p11), %v3742_v12, %v3741_v52  ;;  %4200 = vperm.xlu1 (%p3730_p11), %5400, %v4186_v50   ;;  %v4071_v19 = vld [vmem:[%s7408_s11 + $0x28] sm:$0xff] (%p3730_p11)  ;;  %v3778_v52 = vld [vmem:[%s7407_s10 + $0x98] sm:$0xff] (%p3730_p11)  ;;  %v3777_v12 = vld [vmem:[%s7407_s10 + $0x90] sm:$0xff] (%p3730_p11) }
 0xb44   : > { %v3668_v60 = vmax.f32 %v3642_v22, %v3592_v17  ;;  %v4077_v35 = vld [vmem:[%s7408_s11 + $0x58] sm:$0xff] (%p3730_p11) }
 0xb45   : > { %v3703_v28 = vsel %vm6799_vm7, %v3679_v36, %v3653_v16  ;;  %5189 = vmatpush1.bf16.msra.mxu0 (%p3730_p11), %v5188_v34  ;;  %v3745_v49 = vld [vmem:[#allocation8 + $0x50] sm:$0xff] (%p3730_p11)  ;;  %v4072_v36 = vld [vmem:[%s7408_s11 + $0x30] sm:$0xff] (%p3730_p11)  ;;  %v3779_v34 = vld [vmem:[%s7407_s10 + $0xa0] sm:$0xff] (%p3730_p11) }
 0xb46   : > { %v3692_v26 = vsel %vm6799_vm7, %v3668_v60, %v3642_v22  ;;  %3728 = vst.msk [vmem:[#allocation8 + $0xb0] sm:$0xff] %vm3705_vm8, %v3703_v28  ;;  %5190 = vmatprep.subr.bf16.mxu0 (%p3730_p11), %v5496_v63  ;;  %4125 = vperm.xlu0 (%p3730_p11), %5399, %v4075_v8   ;;  %v3756_v22 = vld [vmem:[#allocation8 + $0xa8] sm:$0xff] (%p3730_p11)  ;;  %v4188_v60 = vld [vmem:[%s7409_s12 + $0x10] sm:$0xff] (%p3730_p11) }
 0xb47   : > { %3717 = vst.msk [vmem:[#allocation8 + $0x58] sm:$0xff] %vm3705_vm8, %v3692_v26  ;;  %v3598_v4 = vpop.xlane.xlu0 %3597  ;;  %4205 = vperm.xlu1 (%p3730_p11), %5400, %v4187_v6   ;;  %v5209_v16 = vpack.c.bf16 (%p3730_p11), %v3756_v22, %v3755_v29  ;;  %v3762_v26 = vld [vmem:[%s7407_s10 + $0x18] sm:$0xff] (%p3730_p11)  ;;  %v4190_v28 = vld [vmem:[%s7409_s12 + $0x20] sm:$0xff] (%p3730_p11) }
 0xb48   : > { %v3670_v30 = vmax.f32 %v3644_v59, %v3598_v4  ;;  %v3761_v4 = vld [vmem:[%s7407_s10 + $0x10] sm:$0xff] (%p3730_p11) }
 0xb49   : > { %3734 = sbr.rel (!%p3730_p11) target bundleno = 4285 (0x10bd), region = 128  ;;  %v3747_v58 = vld [vmem:[#allocation8 + $0x60] sm:$0xff] (%p3730_p11) }
 0xb4a   : > { %v3694_v15 = vsel %vm6799_vm7, %v3670_v30, %v3644_v59  ;;  %v3744_v23 = vld [vmem:[#allocation8 + $0x48] sm:$0xff] (%p3730_p11)  ;;  %4235 = vperm.xlu0 (%p3730_p11), %5399, %v4193_v20   ;;  %v3764_v30 = vld [vmem:[%s7407_s10 + $0x28] sm:$0xff] (%p3730_p11) }
 0xb4b   : > { %3719 = vst.msk [vmem:[#allocation8 + $0x68] sm:$0xff] %vm3705_vm8, %v3694_v15  ;;  %v3628_v53 = vpop.xlane.xlu0 %3627  ;;  %v5191_v43 = vpack.c.bf16 (%p3730_p11), %v3744_v23, %v3743_v48  ;;  %4100 = vperm.xlu1 (%p3730_p11), %5400, %v4070_v47   ;;  %v3759_v59 = vld [vmem:[%s7407_s10] sm:$0xff] (%p3730_p11)  ;;  %v3782_v48 = vld [vmem:[%s7407_s10 + $0xb8] sm:$0xff] (%p3730_p11)  ;;  %v3781_v23 = vld [vmem:[%s7407_s10 + $0xb0] sm:$0xff] (%p3730_p11) }
 0xb4c   : > { %v3680_v31 = vmax.f32 %v3654_v33, %v3628_v53  ;;  %v3763_v15 = vld [vmem:[%s7407_s10 + $0x20] sm:$0xff] (%p3730_p11)  ;;  %v3766_v53 = vld [vmem:[%s7407_s10 + $0x38] sm:$0xff] (%p3730_p11) }
 0xb4d   : > { %5192 = vmatpush1.bf16.msra.mxu0 (%p3730_p11), %v5191_v43  ;;  %v3757_v55 = vld [vmem:[#allocation8 + $0xb0] sm:$0xff] (%p3730_p11) }
 0xb4e   : > { %v3704_v5 = vsel %vm6799_vm7, %v3680_v31, %v3654_v33  ;;  %v3746_v32 = vld [vmem:[#allocation8 + $0x58] sm:$0xff] (%p3730_p11)  ;;  %5193 = vmatprep.subr.bf16.mxu0 (%p3730_p11), %v5496_v63  ;;  %v4074_v33 = vld [vmem:[%s7408_s11 + $0x40] sm:$0xff] (%p3730_p11) }
 0xb4f   : > { %3729 = vst.msk [vmem:[#allocation8 + $0xb8] sm:$0xff] %vm3705_vm8, %v3704_v5  ;;  %v5194_v41 = vpack.c.bf16 (%p3730_p11), %v3746_v32, %v3745_v49  ;;  %4105 = vperm.xlu1 (%p3730_p11), %5400, %v4071_v19   ;;  %v4192_v31 = vld [vmem:[%s7409_s12 + $0x30] sm:$0xff] (%p3730_p11) }
 0xb50   : > { %v3765_v5 = vld [vmem:[%s7407_s10 + $0x30] sm:$0xff] }
 0xb51   : > { %5195 = vmatpush1.bf16.msra.mxu0 %v5194_v41 }
 0xb52   : > { %v3748_v54 = vld [vmem:[#allocation8 + $0x68] sm:$0xff]  ;;  %5196 = vmatprep.subr.bf16.mxu0 %v5496_v63 }
 0xb53   : > { %v5197_v24 = vpack.c.bf16 %v3748_v54, %v3747_v58  ;;  %4210 = vperm.xlu1 %5400, %v4188_v60   ;;  %v4194_v60 = vld [vmem:[%s7409_s12 + $0x40] sm:$0xff] }
 0xb55   : > { %5198 = vmatpush1.bf16.msra.mxu0 %v5197_v24 }
 0xb56   : > { %5199 = vmatprep.subr.bf16.mxu0 %v5496_v63  ;;  %v3758_v17 = vld [vmem:[#allocation8 + $0xb8] sm:$0xff] }
 0xb57   : > { %v5212_v7 = vpack.c.bf16 %v3758_v17, %v3757_v55  ;;  %4110 = vperm.xlu1 %5400, %v4072_v36  }
 0xb59   : > { %5201 = vmatpush1.bf16.msra.mxu0 %v5200_v56 }
 0xb5a   : > { %5202 = vmatprep.subr.bf16.mxu0 %v5496_v63 }
 0xb5b   : > { %4220 = vperm.xlu1 %5400, %v4190_v28  }
 0xb5d   : > { %5204 = vmatpush1.bf16.msra.mxu0 %v5203_v62 }
 0xb5e   : > { %5205 = vmatprep.subr.bf16.mxu0 %v5496_v63 }
 0xb5f   : > { %4120 = vperm.xlu1 %5400, %v4074_v33  }
 0xb61   : > { %5207 = vmatpush1.bf16.msra.mxu0 %v5206_v2 }
 0xb62   : > { %5208 = vmatprep.subr.bf16.mxu0 %v5496_v63 }
 0xb63   : > { %4230 = vperm.xlu1 %5400, %v4192_v31  }
 0xb65   : > { %5210 = vmatpush1.bf16.msra.mxu0 %v5209_v16 }
 0xb66   : > { %5211 = vmatprep.subr.bf16.mxu0 %v5496_v63  ;;  %v3770_v63 = vld [vmem:[%s7407_s10 + $0x58] sm:$0xff] }
 0xb67   : > { %4130 = vperm.xlu1 %5400, %v4076_v3  }
 0xb69   : > { %5213 = vmatpush1.bf16.msra.mxu0 %v5212_v7 }
 0xb6c   : > { %3885 = vmatmul.mubr.f32.vlgmr.msra.gmra.mrb[0].mxu0 %v3759_v59 }
 0xb6d   : > { %4830 = vmatprep.mubr.msk.f32.mxu0 %vm3783_vm9, %v3762_v26 }
 0xb70   : > { %3890 = vmatmul.mubr.f32.gmra.mrb[2].mxu0 %v3761_v4 }
 0xb71   : > { %4831 = vmatprep.mubr.msk.f32.mxu0 %vm3783_vm9, %v3764_v30  ;;  %v4195_v30 = vld [vmem:[%s7409_s12 + $0x48] sm:$0xff] }
 0xb74   : > { %3895 = vmatmul.mubr.f32.gmra.mrb[4].mxu0 %v3763_v15 }
 0xb75   : > { %4832 = vmatprep.mubr.msk.f32.mxu0 %vm3783_vm9, %v3766_v53 }
 0xb78   : > { %3900 = vmatmul.mubr.f32.gmra.mrb[6].mxu0 %v3765_v5 }
 0xb79   : > { %4833 = vmatprep.mubr.msk.f32.mxu0 %vm3783_vm9, %v3768_v40 }
 0xb7c   : > { %3905 = vmatmul.mubr.f32.gmra.mrb[8].mxu0 %v3767_v27 }
 0xb7d   : > { %4834 = vmatprep.mubr.msk.f32.mxu0 %vm3783_vm9, %v3770_v63 }
 0xb80   : > { %3910 = vmatmul.mubr.f32.gmra.mrb[10].mxu0 %v3769_v46 }
 0xb81   : > { %4835 = vmatprep.mubr.msk.f32.mxu0 %vm3783_vm9, %v3772_v21 }
 0xb84   : > { %3915 = vmatmul.mubr.f32.gmra.mrb[12].mxu0 %v3771_v14 }
 0xb85   : > { %4836 = vmatprep.mubr.msk.f32.mxu0 %vm3783_vm9, %v3774_v44 }
 0xb88   : > { %3920 = vmatmul.mubr.f32.gmra.mrb[14].mxu0 %v3773_v1 }
 0xb89   : > { %4837 = vmatprep.mubr.msk.f32.mxu0 %vm3783_vm9, %v3776_v37 }
 0xb8c   : > { %3925 = vmatmul.mubr.f32.gmra.mrb[16].mxu0 %v3775_v0 }
 0xb8d   : > { %4838 = vmatprep.mubr.msk.f32.mxu0 %vm3783_vm9, %v3778_v52 }
 0xb90   : > { %3930 = vmatmul.mubr.f32.gmra.mrb[18].mxu0 %v3777_v12 }
 0xb91   : > { %4839 = vmatprep.mubr.msk.f32.mxu0 %vm3783_vm9, %v3780_v42 }
 0xb94   : > { %3935 = vmatmul.mubr.f32.gmra.mrb[20].mxu0 %v3779_v34 }
 0xb95   : > { %4840 = vmatprep.mubr.msk.f32.mxu0 %vm3783_vm9, %v3782_v48 }
 0xb98   : > { %3940 = vmatmul.mubr.f32.gmra.mrb[22].mxu0 %v3781_v23 }
 0xbb3   : > { %v7084_v26 = vpop.permute.xlu1 %4085 }
 0xbb5   : > { %v7099_v31 = vpop.permute.xlu0 %4080 }
 0xbb9   : > { %v7103_v40 = vpop.permute.xlu0 %4215 }
 0xbba   : > { %v7086_v28 = vpop.permute.xlu1 %4090 }
 0xbbd   : > { %v7107_v27 = vpop.permute.xlu0 %4115 }
 0xbbe   : > { %v7088_v4 = vpop.permute.xlu1 %4095 }
 0xbc1   : > { %v7111_v46 = vpop.permute.xlu0 %4225 }
 0xbc2   : > { %v7093_v33 = vpop.permute.xlu1 %4200 }
 0xbc5   : > { %v7115_v14 = vpop.permute.xlu0 %4125 }
 0xbc6   : > { %v7095_v15 = vpop.permute.xlu1 %4205 }
 0xbc9   : > { %v7119_v1 = vpop.permute.xlu0 %4235 }
 0xbca   : > { %v7097_v53 = vpop.permute.xlu1 %4100 }
 0xbce   : > { %v7101_v5 = vpop.permute.xlu1 %4105 }
 0xbd2   : > { %v7105_v3 = vpop.permute.xlu1 %4210 }
 0xbd6   : > { %v7109_v63 = vpop.permute.xlu1 %4110 }
 0xbda   : > { %v7113_v21 = vpop.permute.xlu1 %4220 }
 0xbde   : > { %v7117_v44 = vpop.permute.xlu1 %4120 }
 0xbe2   : > { %v7121_v37 = vpop.permute.xlu1 %4230 }
 0xbe6   : > { %v7126_v42 = vpop.permute.xlu1 %4130 }
 0xc3f   : > { %v7030_v43 = vpop.f32.mrb[0].mxu0 }
 0xc40   : > { %v3888_v49 = vpop.f32.mrb[1].mxu0  ;;  %v3945_v32 = vsel %vm3705_vm8, %v7030_v43, 0.0 }
 0xc41   : > { %3946 = vadd.xlane.f32.xlu0 %v3945_v32 }
 0xc43   : > { %v7034_v45 = vpop.f32.mrb[2].mxu0 }
 0xc44   : > { %v3893_v38 = vpop.f32.mrb[3].mxu0  ;;  %v3948_v51 = vsel %vm3705_vm8, %v7034_v45, 0.0 }
 0xc45   : > { %3949 = vadd.xlane.f32.xlu0 %v3948_v51 }
 0xc47   : > { %v7038_v41 = vpop.f32.mrb[4].mxu0 }
 0xc48   : > { %v3951_v61 = vsel %vm3705_vm8, %v7038_v41, 0.0  ;;  %v3898_v58 = vpop.f32.mrb[5].mxu0 }
 0xc49   : > { %3952 = vadd.xlane.f32.xlu1 %v3951_v61 }
 0xc4b   : > { %v7042_v54 = vpop.f32.mrb[6].mxu0 }
 0xc4c   : > { %v3954_v39 = vsel %vm3705_vm8, %v7042_v54, 0.0  ;;  %v3903_v24 = vpop.f32.mrb[7].mxu0 }
 0xc4d   : > { %3955 = vadd.xlane.f32.xlu1 %v3954_v39 }
 0xc4f   : > { %v7046_v10 = vpop.f32.mrb[8].mxu0 }
 0xc50   : > { %v3908_v9 = vpop.f32.mrb[9].mxu0  ;;  %v3957_v17 = vsel %vm3705_vm8, %v7046_v10, 0.0 }
 0xc53   : > { %v7048_v11 = vpop.f32.mrb[10].mxu0 }
 0xc54   : > { %v3960_v50 = vsel %vm3705_vm8, %v7048_v11, 0.0  ;;  %v3913_v56 = vpop.f32.mrb[11].mxu0 }
 0xc55   : > { %3961 = vadd.xlane.f32.xlu1 %v3960_v50 }
 0xc57   : > { %v7052_v57 = vpop.f32.mrb[12].mxu0 }
 0xc58   : > { %v3918_v13 = vpop.f32.mrb[13].mxu0  ;;  %v3963_v7 = vsel %vm3705_vm8, %v7052_v57, 0.0 }
 0xc5b   : > { %4135 = vperm.xlu0 %5399, %v4077_v35   ;;  %v7057_v6 = vpop.f32.mrb[14].mxu0 }
 0xc5c   : > { %v3966_v62 = vsel %vm3705_vm8, %v7057_v6, 0.0  ;;  %v3923_v8 = vpop.f32.mrb[15].mxu0 }
 0xc5d   : > { %3967 = vadd.xlane.f32.xlu1 %v3966_v62 }
 0xc5f   : > { %v7061_v25 = vpop.f32.mrb[16].mxu0 }
 0xc60   : > { %v3928_v18 = vpop.f32.mrb[17].mxu0  ;;  %v3969_v36 = vsel %vm3705_vm8, %v7061_v25, 0.0 }
 0xc63   : > { %v7063_v47 = vpop.f32.mrb[18].mxu0 }
 0xc64   : > { %v3972_v2 = vsel %vm3705_vm8, %v7063_v47, 0.0  ;;  %v3933_v20 = vpop.f32.mrb[19].mxu0 }
 0xc65   : > { %3973 = vadd.xlane.f32.xlu1 %v3972_v2 }
 0xc67   : > { %v7067_v29 = vpop.f32.mrb[20].mxu0 }
 0xc68   : > { %v3938_v22 = vpop.f32.mrb[21].mxu0  ;;  %v3975_v59 = vsel %vm3705_vm8, %v7067_v29, 0.0 }
 0xc6b   : > { %v7069_v19 = vpop.f32.mrb[22].mxu0 }
 0xc6c   : > { %v3978_v16 = vsel %vm3705_vm8, %v7069_v19, 0.0  ;;  %v3943_v55 = vpop.f32.mrb[23].mxu0 }
 0xc6d   : > { %3979 = vadd.xlane.f32.xlu1 %v3978_v16 }
 0xc7a   : > { %3958 = vadd.xlane.f32.xlu0 %v3957_v17 }
 0xc7e   : > { %3964 = vadd.xlane.f32.xlu0 %v3963_v7  ;;  %4240 = vperm.xlu1 %5400, %v4194_v60  }
 0xc82   : > { %3970 = vadd.xlane.f32.xlu0 %v3969_v36 }
 0xc86   : > { %3976 = vadd.xlane.f32.xlu0 %v3975_v59 }
 0xc9c   : > { %4245 = vperm.xlu0 %5399, %v4195_v30  }
 0xcce   : > { %v3947_v0 = vpop.xlane.xlu0 %3946 }
 0xccf   : > { %v3982_v52 = vmul.f32 0.5, %v3947_v0 }
 0xcd1   : > { %v7124_v12 = vsub.f32 %v7030_v43, %v3982_v52 }
 0xcd2   : > { %v3950_v34 = vpop.xlane.xlu0 %3949 }
 0xcd3   : > { %v3983_v48 = vmul.f32 0.5, %v3950_v34  ;;  %v4006_v23 = vmul.f32 %v7124_v12, %v7124_v12 }
 0xcd5   : > { %v7131_v49 = vsub.f32 %v7034_v45, %v3983_v48  ;;  %v4018_v32 = vsel %vm3705_vm8, %v4006_v23, 0.0 }
 0xcd6   : > { %v3953_v38 = vpop.xlane.xlu1 %3952  ;;  %4019 = vadd.xlane.f32.xlu0 %v4018_v32 }
 0xcd7   : > { %v3984_v51 = vmul.f32 0.5, %v3953_v38  ;;  %v4007_v61 = vmul.f32 %v7131_v49, %v7131_v49 }
 0xcd9   : > { %v7137_v43 = vsub.f32 %v7038_v41, %v3984_v51  ;;  %v4021_v58 = vsel %vm3705_vm8, %v4007_v61, 0.0 }
 0xcda   : > { %v3956_v39 = vpop.xlane.xlu1 %3955  ;;  %4022 = vadd.xlane.f32.xlu1 %v4021_v58  ;;  %v4136_v30 = vpop.permute.xlu0 %4135 }
 0xcdb   : > { %v3985_v24 = vmul.f32 0.5, %v3956_v39  ;;  %v4008_v45 = vmul.f32 %v7137_v43, %v7137_v43 }
 0xcdd   : > { %v7143_v9 = vsub.f32 %v7042_v54, %v3985_v24  ;;  %v4024_v50 = vsel %vm3705_vm8, %v4008_v45, 0.0 }
 0xcde   : > { %4025 = vadd.xlane.f32.xlu0 %v4024_v50 }
 0xcdf   : > { %v4009_v56 = vmul.f32 %v7143_v9, %v7143_v9 }
 0xce1   : > { %v4027_v41 = vsel %vm3705_vm8, %v4009_v56, 0.0 }
 0xce2   : > { %v3962_v13 = vpop.xlane.xlu1 %3961  ;;  %4028 = vadd.xlane.f32.xlu1 %v4027_v41 }
 0xce3   : > { %v3987_v35 = vmul.f32 0.5, %v3962_v13  ;;  %v4463_v13 = vld [vmem:[%s7411_s14 + $0x8] sm:$0xff] }
 0xce5   : > { %v7150_v62 = vsub.f32 %v7048_v11, %v3987_v35 }
 0xce7   : > { %v4011_v8 = vmul.f32 %v7150_v62, %v7150_v62 }
 0xce9   : > { %v4033_v54 = vsel %vm3705_vm8, %v4011_v8, 0.0 }
 0xcea   : > { %v3968_v18 = vpop.xlane.xlu1 %3967  ;;  %4034 = vadd.xlane.f32.xlu1 %v4033_v54  ;;  %v4464_v54 = vld [vmem:[%s7411_s14 + $0x10] sm:$0xff] }
 0xceb   : > { %v3989_v2 = vmul.f32 0.5, %v3968_v18 }
 0xced   : > { %v7156_v20 = vsub.f32 %v7057_v6, %v3989_v2  ;;  %v4462_v2 = vld [vmem:[%s7411_s14] sm:$0xff] }
 0xcef   : > { %v4013_v22 = vmul.f32 %v7156_v20, %v7156_v20 }
 0xcf1   : > { %v4039_v16 = vsel %vm3705_vm8, %v4013_v22, 0.0  ;;  %v4282_v22 = vld [vmem:[%s7410_s13] sm:$0xff] }
 0xcf2   : > { %v3974_v55 = vpop.xlane.xlu1 %3973  ;;  %4040 = vadd.xlane.f32.xlu1 %v4039_v16  ;;  %5131 = vmatprep.mubr.msk.f32.mxu1 %vm4288_vm10, %v4282_v22 }
 0xcf3   : > { %v3991_v11 = vmul.f32 0.5, %v3974_v55 }
 0xcf5   : > { %v7162_v17 = vsub.f32 %v7063_v47, %v3991_v11 }
 0xcf7   : > { %v4015_v60 = vmul.f32 %v7162_v17, %v7162_v17 }
 0xcf9   : > { %v4045_v7 = vsel %vm3705_vm8, %v4015_v60, 0.0 }
 0xcfa   : > { %4046 = vadd.xlane.f32.xlu1 %v4045_v7  ;;  %v3980_v36 = vpop.xlane.xlu1 %3979 }
 0xcfb   : > { %v3993_v6 = vmul.f32 0.5, %v3980_v36 }
 0xcfd   : > { %v4005_v59 = vsub.f32 %v7069_v19, %v3993_v6 }
 0xcfe   : > { %v7214_v55 = vpop.permute.xlu1 %4240 }
 0xcff   : > { %v4017_v0 = vmul.f32 %v4005_v59, %v4005_v59  ;;  %v7168_v52 = vmul.f32 %v4136_v30, %v4005_v59 }
 0xd01   : > { %v4051_v34 = vsel %vm3705_vm8, %v4017_v0, 0.0 }
 0xd02   : > { %4052 = vadd.xlane.f32.xlu1 %v4051_v34 }
 0xd07   : > { %v3959_v48 = vpop.xlane.xlu0 %3958 }
 0xd08   : > { %v3986_v47 = vmul.f32 0.5, %v3959_v48 }
 0xd0a   : > { %v7172_v23 = vsub.f32 %v7046_v10, %v3986_v47  ;;  %v4196_v10 = vld [vmem:[%s7409_s12 + $0x50] sm:$0xff] }
 0xd0b   : > { %v3965_v32 = vpop.xlane.xlu0 %3964 }
 0xd0c   : > { %v3988_v38 = vmul.f32 0.5, %v3965_v32  ;;  %v4010_v51 = vmul.f32 %v7172_v23, %v7172_v23  ;;  %v4138_v32 = vmul.f32 %v7099_v31, %v7124_v12  ;;  %v4141_v12 = vmul.f32 %v7088_v4, %v7143_v9 }
 0xd0d   : > { %v4147_v9 = vmul.f32 %v7115_v14, %v7162_v17 }
 0xd0e   : > { %v7177_v61 = vsub.f32 %v7052_v57, %v3988_v38  ;;  %v4030_v19 = vsel %vm3705_vm8, %v4010_v51, 0.0 }
 0xd0f   : > { %v3971_v58 = vpop.xlane.xlu0 %3970  ;;  %4031 = vadd.xlane.f32.xlu0 %v4030_v19 }
 0xd10   : > { %v3990_v39 = vmul.f32 0.5, %v3971_v58  ;;  %v4012_v24 = vmul.f32 %v7177_v61, %v7177_v61  ;;  %v4139_v58 = vmul.f32 %v7084_v26, %v7131_v49 }
 0xd12   : > { %v7186_v45 = vsub.f32 %v7061_v25, %v3990_v39  ;;  %v4036_v50 = vsel %vm3705_vm8, %v4012_v24, 0.0 }
 0xd13   : > { %4037 = vadd.xlane.f32.xlu0 %v4036_v50  ;;  %v3977_v57 = vpop.xlane.xlu0 %3976  ;;  %4250 = vperm.xlu1 %5400, %v4196_v10   ;;  %v4140_v50 = vmul.f32 %v7086_v28, %v7137_v43 }
 0xd14   : > { %v3992_v56 = vmul.f32 0.5, %v3977_v57  ;;  %v4014_v41 = vmul.f32 %v7186_v45, %v7186_v45 }
 0xd16   : > { %v7195_v35 = vsub.f32 %v7067_v29, %v3992_v56  ;;  %v4042_v8 = vsel %vm3705_vm8, %v4014_v41, 0.0  ;;  %v4197_v29 = vld [vmem:[%s7409_s12 + $0x58] sm:$0xff] }
 0xd17   : > { %4043 = vadd.xlane.f32.xlu0 %v4042_v8  ;;  %4475 = vperm.xlu1 %5400, %v4463_v13  }
 0xd18   : > { %v4016_v25 = vmul.f32 %v7195_v35, %v7195_v35 }
 0xd1a   : > { %v4048_v18 = vsel %vm3705_vm8, %v4016_v25, 0.0 }
 0xd1b   : > { %4049 = vadd.xlane.f32.xlu0 %v4048_v18  ;;  %4480 = vperm.xlu1 %5400, %v4464_v54   ;;  %v4246_v16 = vpop.permute.xlu0 %4245 }
 0xd31   : > { %4255 = vperm.xlu0 %5399, %v4197_v29  }
 0xd35   : > { %4470 = vperm.xlu0 %5399, %v4462_v2  }
 0xd63   : > { %v4020_v11 = vpop.xlane.xlu0 %4019 }
 0xd64   : > { %v4054_v60 = vmul.f32 0.5, %v4020_v11 }
 0xd66   : > { %v4150_v7 = vadd.f32 1e-05, %v4054_v60 }
 0xd67   : > { %v4023_v36 = vpop.xlane.xlu1 %4022 }
 0xd68   : > { %5401 = vrsqrt.f32 %v4150_v7  ;;  %v4055_v6 = vmul.f32 0.5, %v4023_v36 }
 0xd6a   : > { %v4151_v59 = vadd.f32 1e-05, %v4055_v6 }
 0xd6b   : > { %v4026_v30 = vpop.xlane.xlu0 %4025 }
 0xd6c   : > { %5403 = vrsqrt.f32 %v4151_v59  ;;  %v4056_v0 = vmul.f32 0.5, %v4026_v30 }
 0xd6e   : > { %v4152_v34 = vadd.f32 1e-05, %v4056_v0 }
 0xd6f   : > { %v4029_v48 = vpop.xlane.xlu1 %4028 }
 0xd70   : > { %5405 = vrsqrt.f32 %v4152_v34  ;;  %v4057_v47 = vmul.f32 0.5, %v4029_v48 }
 0xd72   : > { %v5402_v38 = vpop.eup %5401  ;;  %v4153_v51 = vadd.f32 1e-05, %v4057_v47 }
 0xd73   : > { %v4174_v19 = vmul.f32 %v5402_v38, %v4138_v32 }
 0xd74   : > { %5407 = vrsqrt.f32 %v4153_v51 }
 0xd75   : > { %v4258_v10 = vadd.f32 %v7093_v33, %v4174_v19 }
 0xd76   : > { %v5404_v39 = vpop.eup %5403 }
 0xd77   : > { %v4175_v24 = vmul.f32 %v5404_v39, %v4139_v58  ;;  %v4270_v41 = vmax.f32 %v4258_v10, 0.0  ;;  %v4035_v54 = vpop.xlane.xlu1 %4034 }
 0xd78   : > { %v4059_v4 = vmul.f32 0.5, %v4035_v54 }
 0xd79   : > { %v4259_v57 = vadd.f32 %v7095_v15, %v4175_v24 }
 0xd7a   : > { %v5406_v56 = vpop.eup %5405  ;;  %v4155_v60 = vadd.f32 1e-05, %v4059_v4 }
 0xd7b   : > { %v4271_v13 = vmax.f32 %v4259_v57, 0.0  ;;  %v4176_v31 = vmul.f32 %v5406_v56, %v4140_v50  ;;  %v4145_v50 = vmul.f32 %v7107_v27, %v7156_v20  ;;  %v4142_v57 = vmul.f32 %v7097_v53, %v7172_v23 }
 0xd7c   : > { %v4146_v53 = vmul.f32 %v7117_v44, %v7186_v45 }
 0xd7d   : > { %v5214_v8 = vpack.c.bf16 %v4271_v13, %v4270_v41  ;;  %v4260_v49 = vadd.f32 %v7105_v3, %v4176_v31 }
 0xd7e   : > { %v5408_v25 = vpop.eup %5407 }
 0xd7f   : > { %5215 = vmatprep.subr.bf16.mxu1 %v5214_v8  ;;  %v4177_v26 = vmul.f32 %v5408_v25, %v4141_v12  ;;  %v4041_v28 = vpop.xlane.xlu1 %4040  ;;  %v4272_v43 = vmax.f32 %v4260_v49, 0.0 }
 0xd80   : > { %5217 = vmatpush3.bf16.msra.mxu1 %v5214_v8  ;;  %v4061_v3 = vmul.f32 0.5, %v4041_v28 }
 0xd81   : > { %v4261_v33 = vadd.f32 %v7103_v40, %v4177_v26 }
 0xd82   : > { %v4157_v40 = vadd.f32 1e-05, %v4061_v3  ;;  %v4287_v3 = vld [vmem:[%s7410_s13 + $0x28] sm:$0xff] }
 0xd83   : > { %v4273_v15 = vmax.f32 %v4261_v33, 0.0 }
 0xd85   : > { %v5218_v18 = vpack.c.bf16 %v4273_v15, %v4272_v43 }
 0xd87   : > { %5219 = vmatprep.subr.bf16.mxu1 %v5218_v18  ;;  %v4047_v29 = vpop.xlane.xlu1 %4046 }
 0xd88   : > { %v4063_v2 = vmul.f32 0.5, %v4047_v29  ;;  %5221 = vmatpush3.bf16.msra.mxu1 %v5218_v18 }
 0xd8a   : > { %v4159_v22 = vadd.f32 1e-05, %v4063_v2 }
 0xd8c   : > { %5409 = vrsqrt.f32 %v4159_v22 }
 0xd8d   : > { %5411 = vrsqrt.f32 %v4155_v60  ;;  %v4286_v60 = vld [vmem:[%s7410_s13 + $0x20] sm:$0xff] }
 0xd8e   : > { %5413 = vrsqrt.f32 %v4157_v40 }
 0xd8f   : > { %v4053_v59 = vpop.xlane.xlu1 %4052 }
 0xd90   : > { %v4065_v34 = vmul.f32 0.5, %v4053_v59 }
 0xd92   : > { %v4161_v38 = vadd.f32 1e-05, %v4065_v34 }
 0xd93   : > { %v4251_v2 = vpop.permute.xlu1 %4250 }
 0xd96   : > { %v5410_v11 = vpop.eup %5409 }
 0xd97   : > { %v4183_v7 = vmul.f32 %v5410_v11, %v4147_v9  ;;  %v5412_v17 = vpop.eup %5411 }
 0xd98   : > { %v5414_v24 = vpop.eup %5413 }
 0xd99   : > { %v7230_v36 = vadd.f32 %v4246_v16, %v4183_v7  ;;  %v4143_v16 = vmul.f32 %v7101_v5, %v7150_v62  ;;  %v4181_v12 = vmul.f32 %v5414_v24, %v4145_v50  ;;  %v4144_v5 = vmul.f32 %v7109_v63, %v7177_v61  ;;  %v7298_v24 = vpop.permute.xlu1 %4475 }
 0xd9b   : > { %v4179_v39 = vmul.f32 %v5412_v17, %v4143_v16  ;;  %v4265_v27 = vadd.f32 %v7119_v1, %v4181_v12  ;;  %v4279_v29 = vmax.f32 %v7230_v36, 0.0  ;;  %v4466_v17 = vld [vmem:[%s7411_s14 + $0x20] sm:$0xff]  ;;  %v4524_v16 = vld [vmem:[%s7412_s15 + $0x10] sm:$0xff] }
 0xd9c   : > { %v4032_v6 = vpop.xlane.xlu0 %4031 }
 0xd9d   : > { %v4058_v30 = vmul.f32 0.5, %v4032_v6  ;;  %v4263_v31 = vadd.f32 %v7111_v46, %v4179_v39  ;;  %v4277_v28 = vmax.f32 %v4265_v27, 0.0  ;;  %v4525_v39 = vld [vmem:[%s7412_s15 + $0x18] sm:$0xff]  ;;  %v4481_v50 = vpop.permute.xlu1 %4480 }
 0xd9f   : > { %v4154_v0 = vadd.f32 1e-05, %v4058_v30  ;;  %v4275_v54 = vmax.f32 %v4263_v31, 0.0 }
 0xda0   : > { %v4038_v48 = vpop.xlane.xlu0 %4037 }
 0xda1   : > { %5415 = vrsqrt.f32 %v4154_v0  ;;  %v4060_v47 = vmul.f32 0.5, %v4038_v48 }
 0xda3   : > { %v4156_v32 = vadd.f32 1e-05, %v4060_v47 }
 0xda4   : > { %v4044_v14 = vpop.xlane.xlu0 %4043 }
 0xda5   : > { %5417 = vrsqrt.f32 %v4156_v32  ;;  %v4062_v51 = vmul.f32 0.5, %v4044_v14  ;;  %v4522_v14 = vld [vmem:[%s7412_s15] sm:$0xff] }
 0xda6   : > { %5419 = vrsqrt.f32 %v4161_v38 }
 0xda7   : > { %v4158_v19 = vadd.f32 1e-05, %v4062_v51  ;;  %v4465_v51 = vld [vmem:[%s7411_s14 + $0x18] sm:$0xff] }
 0xda8   : > { %v4050_v58 = vpop.xlane.xlu0 %4049 }
 0xda9   : > { %5421 = vrsqrt.f32 %v4158_v19  ;;  %v4064_v10 = vmul.f32 0.5, %v4050_v58  ;;  %v4523_v19 = vld [vmem:[%s7412_s15 + $0x8] sm:$0xff] }
 0xdaa   : > { %v4467_v58 = vld [vmem:[%s7411_s14 + $0x28] sm:$0xff] }
 0xdab   : > { %v5416_v56 = vpop.eup %5415  ;;  %v4160_v41 = vadd.f32 1e-05, %v4064_v10 }
 0xdac   : > { %v4178_v13 = vmul.f32 %v5416_v56, %v4142_v57 }
 0xdad   : > { %5423 = vrsqrt.f32 %v4160_v41 }
 0xdae   : > { %v4262_v62 = vadd.f32 %v7113_v21, %v4178_v13  ;;  %v4148_v21 = vmul.f32 %v7126_v42, %v7195_v35  ;;  %v4284_v35 = vld [vmem:[%s7410_s13 + $0x10] sm:$0xff] }
 0xdaf   : > { %v5418_v8 = vpop.eup %5417 }
 0xdb0   : > { %v4274_v25 = vmax.f32 %v4262_v62, 0.0  ;;  %v4180_v26 = vmul.f32 %v5418_v8, %v4144_v5  ;;  %v5420_v20 = vpop.eup %5419  ;;  %v4256_v61 = vpop.permute.xlu0 %4255 }
 0xdb1   : > { %v4185_v43 = vmul.f32 %v5420_v20, %v7168_v52  ;;  %v4283_v52 = vld [vmem:[%s7410_s13 + $0x8] sm:$0xff] }
 0xdb2   : > { %v5222_v23 = vpack.c.bf16 %v4275_v54, %v4274_v25  ;;  %v4264_v46 = vadd.f32 %v7121_v37, %v4180_v26 }
 0xdb3   : > { %v5422_v49 = vpop.eup %5421  ;;  %v4269_v45 = vadd.f32 %v4256_v61, %v4185_v43 }
 0xdb4   : > { %5223 = vmatprep.subr.bf16.mxu1 %v5222_v23  ;;  %v4276_v33 = vmax.f32 %v4264_v46, 0.0  ;;  %v4182_v63 = vmul.f32 %v5422_v49, %v4146_v53  ;;  %v4471_v10 = vpop.permute.xlu0 %4470 }
 0xdb5   : > { %5225 = vmatpush3.bf16.msra.mxu1 %v5222_v23  ;;  %v4281_v11 = vmax.f32 %v4269_v45, 0.0 }
 0xdb6   : > { %v5226_v1 = vpack.c.bf16 %v4277_v28, %v4276_v33  ;;  %v4266_v15 = vadd.f32 %v7214_v55, %v4182_v63  ;;  %v4285_v55 = vld [vmem:[%s7410_s13 + $0x18] sm:$0xff] }
 0xdb7   : > { %v5424_v18 = vpop.eup %5423 }
 0xdb8   : > { %v4184_v44 = vmul.f32 %v5424_v18, %v4148_v21  ;;  %5227 = vmatprep.subr.bf16.mxu1 %v5226_v1  ;;  %v4278_v37 = vmax.f32 %v4266_v15, 0.0 }
 0xdb9   : > { %5229 = vmatpush3.bf16.msra.mxu1 %v5226_v1 }
 0xdba   : > { %v4268_v22 = vadd.f32 %v4251_v2, %v4184_v44  ;;  %v5230_v4 = vpack.c.bf16 %v4279_v29, %v4278_v37 }
 0xdbc   : > { %v4280_v9 = vmax.f32 %v4268_v22, 0.0  ;;  %5231 = vmatprep.subr.bf16.mxu1 %v5230_v4  ;;  %v4526_v22 = vld [vmem:[%s7412_s15 + $0x20] sm:$0xff] }
 0xdbd   : > { %5233 = vmatpush3.bf16.msra.mxu1 %v5230_v4  ;;  %v4574_v4 = vld [vmem:[%s7414_s17] sm:$0xff] }
 0xdbe   : > { %v5234_v42 = vpack.c.bf16 %v4281_v11, %v4280_v9  ;;  %v4527_v9 = vld [vmem:[%s7412_s15 + $0x28] sm:$0xff]  ;;  %v4576_v11 = vld [vmem:[%s7414_s17 + $0x10] sm:$0xff] }
 0xdc0   : > { %5235 = vmatprep.subr.bf16.mxu1 %v5234_v42 }
 0xdc1   : > { %5237 = vmatpush3.bf16.msra.mxu1 %v5234_v42  ;;  %v4575_v42 = vld [vmem:[%s7414_s17 + $0x8] sm:$0xff] }
 0xdc4   : > { %5132 = vmatmul.mubr.msk.f32.vlgmr.msra.gmra.mrb[0].mxu1 %vm4288_vm10, %v4283_v52  ;;  %v4577_v52 = vld [vmem:[%s7414_s17 + $0x18] sm:$0x1] }
 0xdc5   : > { %5134 = vmatprep.mubr.msk.f32.mxu1 %vm4288_vm10, %v4284_v35  ;;  %v4570_v35 = vld [vmem:[%s7413_s16] sm:$0xff] }
 0xdc8   : > { %5135 = vmatmul.mubr.msk.f32.gmra.mrb[2].mxu1 %vm4288_vm10, %v4285_v55 }
 0xdc9   : > { %5137 = vmatprep.mubr.msk.f32.mxu1 %vm4288_vm10, %v4286_v60 }
 0xdcc   : > { %5138 = vmatmul.mubr.msk.f32.gmra.mrb[4].mxu1 %vm4288_vm10, %v4287_v3 }
 0xdcd   : > { %5152 = vmatprep.mubr.msk.f32.mxu1 %vm4598_vm11, %v4570_v35 }
 0xe97   : > { %v5133_v7 = vpop.f32.mrb[0].mxu1 }
 0xe98   : > { %v4373_v36 = vpop.f32.mrb[1].mxu1  ;;  %v4405_v40 = vsel %vm3705_vm8, %v5133_v7, 0.0 }
 0xe99   : > { %4406 = vadd.xlane.f32.xlu0 %v4405_v40  ;;  %v4402_v6 = vsel %vm3705_vm8, %v4373_v36, 0.0 }
 0xe9a   : > { %4403 = vadd.xlane.f32.xlu1 %v4402_v6 }
 0xe9b   : > { %v5136_v59 = vpop.f32.mrb[2].mxu1 }
 0xe9c   : > { %v4383_v30 = vpop.f32.mrb[3].mxu1  ;;  %v4411_v0 = vsel %vm3705_vm8, %v5136_v59, 0.0 }
 0xe9d   : > { %v4408_v34 = vsel %vm3705_vm8, %v4383_v30, 0.0 }
 0xe9e   : > { %4412 = vadd.xlane.f32.xlu1 %v4411_v0  ;;  %4409 = vadd.xlane.f32.xlu0 %v4408_v34 }
 0xe9f   : > { %v5139_v48 = vpop.f32.mrb[4].mxu1 }
 0xea0   : > { %v4393_v47 = vpop.f32.mrb[5].mxu1  ;;  %v4417_v32 = vsel %vm3705_vm8, %v5139_v48, 0.0 }
 0xea1   : > { %v4414_v38 = vsel %vm3705_vm8, %v4393_v47, 0.0 }
 0xea2   : > { %4418 = vadd.xlane.f32.xlu1 %v4417_v32  ;;  %4415 = vadd.xlane.f32.xlu0 %v4414_v38 }
 0xeb3   : > { %4530 = vperm.xlu1 %5400, %v4522_v14  }
 0xeb7   : > { %4490 = vperm.xlu1 %5400, %v4466_v17  }
 0xeb8   : > { %4485 = vperm.xlu0 %5399, %v4465_v51  }
 0xebb   : > { %4540 = vperm.xlu1 %5400, %v4524_v16  }
 0xebc   : > { %4535 = vperm.xlu0 %5399, %v4523_v19  }
 0xec0   : > { %4495 = vperm.xlu0 %5399, %v4467_v58  }
 0xec4   : > { %4545 = vperm.xlu0 %5399, %v4525_v39  }
 0xf26   : > { %v4407_v57 = vpop.xlane.xlu0 %4406 }
 0xf27   : > { %v4421_v56 = vmul.f32 0.5, %v4407_v57  ;;  %v4404_v41 = vpop.xlane.xlu1 %4403 }
 0xf28   : > { %v4420_v13 = vmul.f32 0.5, %v4404_v41 }
 0xf29   : > { %v7300_v31 = vsub.f32 %v5133_v7, %v4421_v56 }
 0xf2a   : > { %v4426_v12 = vsub.f32 %v4373_v36, %v4420_v13 }
 0xf2b   : > { %v4410_v5 = vpop.xlane.xlu0 %4409  ;;  %v4413_v62 = vpop.xlane.xlu1 %4412  ;;  %v4433_v8 = vmul.f32 %v7300_v31, %v7300_v31  ;;  %v4499_v56 = vmul.f32 %v7298_v24, %v7300_v31 }
 0xf2c   : > { %v7304_v25 = vmul.f32 %v4471_v10, %v4426_v12  ;;  %v4422_v54 = vmul.f32 0.5, %v4410_v5  ;;  %v4423_v26 = vmul.f32 0.5, %v4413_v62  ;;  %v4432_v27 = vmul.f32 %v4426_v12, %v4426_v12 }
 0xf2d   : > { %v4441_v20 = vsel %vm3705_vm8, %v4433_v8, 0.0 }
 0xf2e   : > { %v4428_v53 = vsub.f32 %v4383_v30, %v4422_v54  ;;  %v7307_v23 = vsub.f32 %v5136_v59, %v4423_v26  ;;  %4442 = vadd.xlane.f32.xlu1 %v4441_v20  ;;  %v4438_v46 = vsel %vm3705_vm8, %v4432_v27, 0.0 }
 0xf2f   : > { %v4416_v49 = vpop.xlane.xlu0 %4415  ;;  %4439 = vadd.xlane.f32.xlu0 %v4438_v46  ;;  %v4419_v33 = vpop.xlane.xlu1 %4418 }
 0xf30   : > { %v7310_v28 = vmul.f32 %v4481_v50, %v4428_v53  ;;  %v4424_v63 = vmul.f32 0.5, %v4416_v49  ;;  %v4425_v61 = vmul.f32 0.5, %v4419_v33  ;;  %v4434_v21 = vmul.f32 %v4428_v53, %v4428_v53 }
 0xf31   : > { %v4435_v43 = vmul.f32 %v7307_v23, %v7307_v23 }
 0xf32   : > { %v7314_v1 = vsub.f32 %v4393_v47, %v4424_v63  ;;  %v7316_v15 = vsub.f32 %v5139_v48, %v4425_v61  ;;  %v4444_v18 = vsel %vm3705_vm8, %v4434_v21, 0.0 }
 0xf33   : > { %4445 = vadd.xlane.f32.xlu0 %v4444_v18  ;;  %v4447_v44 = vsel %vm3705_vm8, %v4435_v43, 0.0  ;;  %v4531_v60 = vpop.permute.xlu1 %4530 }
 0xf34   : > { %4448 = vadd.xlane.f32.xlu1 %v4447_v44  ;;  %v4436_v45 = vmul.f32 %v7314_v1, %v7314_v1  ;;  %v4437_v37 = vmul.f32 %v7316_v15, %v7316_v15 }
 0xf36   : > { %v4450_v29 = vsel %vm3705_vm8, %v4436_v45, 0.0  ;;  %v4453_v2 = vsel %vm3705_vm8, %v4437_v37, 0.0 }
 0xf37   : > { %4451 = vadd.xlane.f32.xlu0 %v4450_v29  ;;  %v4486_v55 = vpop.permute.xlu0 %4485  ;;  %v4491_v7 = vpop.permute.xlu1 %4490 }
 0xf38   : > { %4454 = vadd.xlane.f32.xlu1 %v4453_v2  ;;  %v4501_v26 = vmul.f32 %v4486_v55, %v7307_v23  ;;  %v4502_v24 = vmul.f32 %v4491_v7, %v7314_v1 }
 0xf3b   : > { %v4536_v3 = vpop.permute.xlu0 %4535  ;;  %v4541_v40 = vpop.permute.xlu1 %4540 }
 0xf3f   : > { %v4496_v36 = vpop.permute.xlu0 %4495 }
 0xf40   : > { %v4503_v61 = vmul.f32 %v4496_v36, %v7316_v15  ;;  %v4571_v15 = vld [vmem:[%s7413_s16 + $0x8] sm:$0xff] }
 0xf43   : > { %v4546_v6 = vpop.permute.xlu0 %4545 }
 0xf49   : > { %4550 = vperm.xlu1 %5400, %v4526_v22  }
 0xf4d   : > { %4580 = vperm.xlu1 %5400, %v4574_v4   ;;  %4555 = vperm.xlu0 %5399, %v4527_v9   ;;  %v4572_v9 = vld [vmem:[%s7413_s16 + $0x10] sm:$0xff] }
 0xf51   : > { %4590 = vperm.xlu1 %5400, %v4576_v11   ;;  %4585 = vperm.xlu0 %5399, %v4575_v42   ;;  %v4573_v11 = vld [vmem:[%s7413_s16 + $0x18] sm:$0x1] }
 0xf55   : > { %4595 = vperm.xlu0 %5399, %v4577_v52  }
 0xfbb   : > { %v4443_v59 = vpop.xlane.xlu1 %4442 }
 0xfbc   : > { %v4457_v30 = vmul.f32 0.5, %v4443_v59  ;;  %v4440_v0 = vpop.xlane.xlu0 %4439 }
 0xfbd   : > { %v4456_v34 = vmul.f32 0.5, %v4440_v0 }
 0xfbe   : > { %v4505_v48 = vadd.f32 1e-05, %v4457_v30 }
 0xfbf   : > { %v4504_v47 = vadd.f32 1e-05, %v4456_v34 }
 0xfc0   : > { %5425 = vrsqrt.f32 %v4505_v48  ;;  %v4446_v32 = vpop.xlane.xlu0 %4445 }
 0xfc1   : > { %5427 = vrsqrt.f32 %v4504_v47  ;;  %v4458_v38 = vmul.f32 0.5, %v4446_v32  ;;  %v4449_v14 = vpop.xlane.xlu1 %4448 }
 0xfc2   : > { %v4459_v17 = vmul.f32 0.5, %v4449_v14 }
 0xfc3   : > { %v4506_v51 = vadd.f32 1e-05, %v4458_v38 }
 0xfc4   : > { %v4507_v16 = vadd.f32 1e-05, %v4459_v17  ;;  %v4452_v19 = vpop.xlane.xlu0 %4451 }
 0xfc5   : > { %5429 = vrsqrt.f32 %v4506_v51  ;;  %v4460_v58 = vmul.f32 0.5, %v4452_v19  ;;  %v4455_v39 = vpop.xlane.xlu1 %4454 }
 0xfc6   : > { %5431 = vrsqrt.f32 %v4507_v16  ;;  %v4461_v10 = vmul.f32 0.5, %v4455_v39 }
 0xfc7   : > { %v4508_v50 = vadd.f32 1e-05, %v4460_v58 }
 0xfc8   : > { %v4509_v57 = vadd.f32 1e-05, %v4461_v10 }
 0xfc9   : > { %5433 = vrsqrt.f32 %v4508_v50  ;;  %v4551_v44 = vpop.permute.xlu1 %4550 }
 0xfca   : > { %v5426_v41 = vpop.eup %5425  ;;  %5435 = vrsqrt.f32 %v4509_v57 }
 0xfcb   : > { %v5428_v13 = vpop.eup %5427  ;;  %v4517_v12 = vmul.f32 %v5426_v41, %v4499_v56 }
 0xfcc   : > { %v4516_v5 = vmul.f32 %v5428_v13, %v7304_v25  ;;  %v4556_v29 = vpop.permute.xlu0 %4555 }
 0xfcd   : > { %v4559_v62 = vadd.f32 %v4536_v3, %v4517_v12  ;;  %v4581_v52 = vpop.permute.xlu1 %4580 }
 0xfce   : > { %v4558_v8 = vadd.f32 %v4531_v60, %v4516_v5 }
 0xfcf   : > { %v5430_v54 = vpop.eup %5429  ;;  %v4565_v27 = vmax.f32 %v4559_v62, 0.0 }
 0xfd0   : > { %v5432_v20 = vpop.eup %5431  ;;  %v4564_v53 = vmax.f32 %v4558_v8, 0.0  ;;  %v4518_v46 = vmul.f32 %v5430_v54, %v7310_v28  ;;  %v4586_v42 = vpop.permute.xlu0 %4585 }
 0xfd1   : > { %v4519_v49 = vmul.f32 %v5432_v20, %v4501_v26 }
 0xfd2   : > { %v5238_v31 = vpack.c.bf16 %v4565_v27, %v4564_v53  ;;  %v4560_v33 = vadd.f32 %v4541_v40, %v4518_v46  ;;  %v4591_v40 = vpop.permute.xlu1 %4590 }
 0xfd3   : > { %v5434_v63 = vpop.eup %5433  ;;  %v4561_v21 = vadd.f32 %v4546_v6, %v4519_v49 }
 0xfd4   : > { %v5436_v25 = vpop.eup %5435  ;;  %v4520_v43 = vmul.f32 %v5434_v63, %v4502_v24  ;;  %5239 = vmatprep.subr.bf16.mxu1 %v5238_v31  ;;  %v4566_v18 = vmax.f32 %v4560_v33, 0.0  ;;  %v4596_v7 = vpop.permute.xlu0 %4595 }
 0xfd5   : > { %v4521_v23 = vmul.f32 %v5436_v25, %v4503_v61  ;;  %5241 = vmatpush3.bf16.msra.mxu1 %v5238_v31  ;;  %v4567_v45 = vmax.f32 %v4561_v21, 0.0 }
 0xfd6   : > { %v4562_v37 = vadd.f32 %v4551_v44, %v4520_v43 }
 0xfd7   : > { %v4563_v28 = vadd.f32 %v4556_v29, %v4521_v23  ;;  %v5242_v2 = vpack.c.bf16 %v4567_v45, %v4566_v18 }
 0xfd8   : > { %v4568_v22 = vmax.f32 %v4562_v37, 0.0 }
 0xfd9   : > { %v4569_v1 = vmax.f32 %v4563_v28, 0.0  ;;  %5243 = vmatprep.subr.bf16.mxu1 %v5242_v2 }
 0xfda   : > { %5245 = vmatpush3.bf16.msra.mxu1 %v5242_v2 }
 0xfdb   : > { %v5246_v4 = vpack.c.bf16 %v4569_v1, %v4568_v22 }
 0xfdd   : > { %5247 = vmatprep.subr.bf16.mxu1 %v5246_v4 }
 0xfde   : > { %5249 = vmatpush3.bf16.msra.mxu1 %v5246_v4 }
 0xfe1   : > { %5153 = vmatmul.mubr.msk.f32.vlgmr.msra.gmra.mrb[6].mxu1 %vm4598_vm11, %v4571_v15 }
 0xfe2   : > { %5155 = vmatprep.mubr.msk.f32.mxu1 %vm4598_vm11, %v4572_v9 }
 0xfe5   : > { %5156 = vmatmul.mubr.msk.f32.gmra.mrb[8].mxu1 %vm4598_vm11, %v4573_v11 }
0x10b4   : > { %v5154_v35 = vpop.f32.mrb[6].mxu1 }
0x10b5   : > { %v4683_v55 = vadd.f32 %v5154_v35, %v4586_v42  ;;  %v4677_v60 = vpop.f32.mrb[7].mxu1 }
0x10b6   : > { %v4678_v3 = vadd.f32 %v4677_v60, %v4581_v52 }
0x10b7   : > { %4697 = vst.msk [vmem:[%s7415_s18 + $0x8] sm:$0xff] %vm3705_vm8, %v4683_v55 }
0x10b8   : > { %4696 = vst.msk [vmem:[%s7415_s18] sm:$0xff] %vm3705_vm8, %v4678_v3  ;;  %v5157_v36 = vpop.f32.mrb[8].mxu1 }
0x10b9   : > { %v4693_v6 = vadd.f32 %v5157_v36, %v4596_v7  ;;  %v4687_v59 = vpop.f32.mrb[9].mxu1 }
0x10ba   : > { %v4688_v30 = vadd.f32 %v4687_v59, %v4591_v40 }
0x10bb   : > { %4700 = vst.msk [vmem:[%s7415_s18 + $0x18] sm:$0x1] %vm4699_vm12, %v4693_v6 }
0x10bc   : > { %4698 = vst.msk [vmem:[%s7415_s18 + $0x10] sm:$0xff] %vm3705_vm8, %v4688_v30 }
0x10bd PF: > { %s28_s0 = sadd.s32 1, %s5475_s0   ;;  %s7520_s27 = smov %s5467_s29 }
0x10be   : > { %p25_p12 = scmp.ge.s32.totalorder %s28_s0, 10   ;;  %s7521_s28 = smov %s5471_s30 }
0x10bf   : > { %s7522_s29 = smov %s7525_s19  ;;  %s7523_s30 = smov %s7529_s1 }
0x10c0   :  { %27 = sbr.rel (!%p25_p12) target bundleno = 5 (0x5), region = 154 }

</bundles_post_ra>
